<compile_context>
chip_gen: v7x
topology: tpu7x:2x2x1
jax: 0.10.0
libtpu: 0.0.40
codegen_flags: <defaults>
</compile_context>

<pallas_src>
import jax
import jax.numpy as jnp
from jax import lax
from jax.experimental import pallas as pl
from jax.experimental.pallas import tpu as pltpu

# ---------------- static problem constants (from the module spec) -----------
C = 3                        # channels at every stage
K1, K2, K3 = 4, 3, 2         # conv kernel sizes
H_IN = W_IN = 8              # spatial input size
O1 = H_IN - K1 + 1           # 5 : conv1 valid output size
O2 = O1 - K2 + 1             # 3 : conv2 valid output size
O3 = O2 + 2 - K3 + 1         # 4 : conv3 output size (padding=1 both sides)
SUB, LANE = 8, 128           # one f32 vreg: 8 sublanes x 128 lanes

# flat offsets into the packed parameter vector (all f32)
OFF_W1 = 0
OFF_B1 = OFF_W1 + C * C * K1 * K1      # 144
OFF_W2 = OFF_B1 + C                    # 147
OFF_B2 = OFF_W2 + C * C * K2 * K2      # 228
OFF_W3 = OFF_B2 + C                    # 231
OFF_B3 = OFF_W3 + C * C * K3 * K3      # 267
OFF_G  = OFF_B3 + C                    # 270
OFF_BT = OFF_G + C                     # 273
N_PARAMS = OFF_BT + C                  # 276


def _shift_up_left(v, di, dj):
    """result[i, j] = v[i + di, j + dj] on a full (8,128) vreg.

    pltpu.roll follows jnp.roll semantics (result[j] = x[(j - shift) % n]),
    so shifting "up/left" by k is a positive roll by (n - k).  Wrap-around
    rows/columns only ever land outside the valid top-left region that later
    stages read."""
    if di:
        v = pltpu.roll(v, SUB - di, axis=0)    # sublane rotate (XLU)
    if dj:
        v = pltpu.roll(v, LANE - dj, axis=1)   # lane rotate (XLU)
    return v


def model_kernel(x_ref, prm, out_ref, wide_ref):
    N = x_ref.shape[0]

    def conv_stage(planes, w_off, b_off, K):
        """Valid stride-1 KxK conv; every operand is a full (8,128) vreg.

        Each tap is generated once with rolls and reused for all C output
        channels; accumulation stays in registers.  Only the top-left valid
        region of the result is meaningful."""
        n_taps = C * K * K
        accs = [jnp.zeros((SUB, LANE), jnp.float32) + prm[b_off + co]
                for co in range(C)]
        t = 0
        for ci in range(C):
            for ki in range(K):
                rowv = _shift_up_left(planes[ci], ki, 0)
                for kj in range(K):
                    tap = _shift_up_left(rowv, 0, kj)
                    for co in range(C):
                        accs[co] = accs[co] + prm[w_off + co * n_taps + t] * tap
                    t += 1
        return accs

    row = lax.broadcasted_iota(jnp.int32, (SUB, LANE), 0)
    col = lax.broadcasted_iota(jnp.int32, (SUB, LANE), 1)
    # conv3 padding=1: place the true 3x3 conv2 output at offset (1,1), zero
    # everywhere else on the canvas.
    center = (row >= 1) & (row < 1 + O2) & (col >= 1) & (col < 1 + O2)
    # region of the canvas holding the true conv3 / bn1 output
    valid = (row < O3) & (col < O3)

    # Widen every input channel plane once into an aligned (8,128) vreg:
    # zero the scratch, drop the (8,8) plane in its top-left corner, read the
    # full vreg back.  This is the only VMEM round-trip in the conv chain.
    wide_ref[...] = jnp.zeros_like(wide_ref)
    for n in range(N):
        for ci in range(C):
            wide_ref[n, ci, :, 0:W_IN] = x_ref[n, ci, :, :]

    s3_all = []                                    # [n][co] -> (8,128) value
    for n in range(N):
        planes = [wide_ref[n, ci, :, :] for ci in range(C)]
        s1 = conv_stage(planes, OFF_W1, OFF_B1, K1)          # valid 5x5
        s2 = conv_stage(s1, OFF_W2, OFF_B2, K2)              # valid 3x3
        # conv3's zero padding: shift the valid 3x3 down-right by (1,1) and
        # mask the border ring (and everything beyond) to exactly zero.
        pad = [jnp.where(center,
                         pltpu.roll(pltpu.roll(s2[c], 1, axis=0), 1, axis=1),
                         0.0)
               for c in range(C)]
        s3_all.append(conv_stage(pad, OFF_W3, OFF_B3, K3))   # valid 4x4

    # BatchNorm2d, training mode: per-channel batch stats over (N, H, W),
    # biased variance, eps=1e-5, affine gamma/beta.  Sum and sum-of-squares
    # are computed in one pass (independent reductions); scale/shift folded so
    # per-element work is one mul + one add; per-channel direct stores.
    eps = 1e-5
    inv_cnt = 1.0 / (N * O3 * O3)
    for co in range(C):
        vs = [jnp.where(valid, s3_all[n][co], 0.0) for n in range(N)]
        total = sum([jnp.sum(v) for v in vs])
        total_sq = sum([jnp.sum(v * v) for v in vs])
        mu = total * inv_cnt
        var = total_sq * inv_cnt - mu * mu
        scale = prm[OFF_G + co] * lax.rsqrt(var + eps)
        shift = prm[OFF_BT + co] - mu * scale
        for n in range(N):
            res = s3_all[n][co] * scale + shift
            out_ref[n, co, :, :] = res[0:O3, 0:O3]


def pack_params(w1, b1, w2, b2, w3, b3, gamma, beta):
    """Done ONCE at init (hoisted out of the per-forward path)."""
    p = jnp.concatenate([w1.reshape(-1), b1, w2.reshape(-1), b2,
                         w3.reshape(-1), b3, gamma, beta]).astype(jnp.float32)
    assert p.shape[0] == N_PARAMS
    return p


@jax.jit
def model_forward(x, packed_params):
    N = x.shape[0]
    vmem = pl.BlockSpec(memory_space=pltpu.MemorySpace.VMEM)
    smem = pl.BlockSpec(memory_space=pltpu.MemorySpace.SMEM)
    return pl.pallas_call(
        model_kernel,
        out_shape=jax.ShapeDtypeStruct((N, C, O3, O3), jnp.float32),
        in_specs=[vmem, smem],
        out_specs=vmem,
        scratch_shapes=[
            pltpu.VMEM((N, C, SUB, LANE), jnp.float32),  # widened input planes
        ],
        cost_estimate=pl.CostEstimate(
            flops=11_000, transcendentals=3,
            bytes_accessed=4 * (N * C * H_IN * W_IN + N_PARAMS + N * C * O3 * O3)),
    )(x, packed_params)


def reference_forward(x, w1, b1, w2, b2, w3, b3, gamma, beta):
    dn = ('NCHW', 'OIHW', 'NCHW')
    s1 = lax.conv_general_dilated(x, w1, (1, 1), 'VALID', dimension_numbers=dn) \
        + b1.reshape(1, -1, 1, 1)
    s2 = lax.conv_general_dilated(s1, w2, (1, 1), 'VALID', dimension_numbers=dn) \
        + b2.reshape(1, -1, 1, 1)
    s3 = lax.conv_general_dilated(s2, w3, (1, 1), [(1, 1), (1, 1)],
                                  dimension_numbers=dn) + b3.reshape(1, -1, 1, 1)
    mu = s3.mean(axis=(0, 2, 3), keepdims=True)
    var = ((s3 - mu) ** 2).mean(axis=(0, 2, 3), keepdims=True)
    return (s3 - mu) / jnp.sqrt(var + 1e-5) * gamma.reshape(1, -1, 1, 1) \
        + beta.reshape(1, -1, 1, 1)


def init_params(key):
    # Deterministic init mimicking PyTorch Conv2d default scale
    # (uniform +-1/sqrt(fan_in)).
    ks = jax.random.split(key, 6)

    def conv_init(kw, kb, cout, cin, k):
        bound = 1.0 / jnp.sqrt(cin * k * k)
        w = jax.random.uniform(kw, (cout, cin, k, k), jnp.float32, -bound, bound)
        b = jax.random.uniform(kb, (cout,), jnp.float32, -bound, bound)
        return w, b

    w1, b1 = conv_init(ks[0], ks[1], 3, 3, 4)
    w2, b2 = conv_init(ks[2], ks[3], 3, 3, 3)
    w3, b3 = conv_init(ks[4], ks[5], 3, 3, 2)
    gamma = jnp.ones((3,), jnp.float32)   # BatchNorm2d default weight
    beta = jnp.zeros((3,), jnp.float32)   # BatchNorm2d default bias
    return w1, b1, w2, b2, w3, b3, gamma, beta


if __name__ == "__main__":
    key = jax.random.PRNGKey(0)
    kx, kp = jax.random.split(key)
    x = jax.random.normal(kx, (1, 3, 8, 8), jnp.float32)  # matches torch.randn(1,3,8,8)
    params = init_params(kp)
    packed = pack_params(*params)          # once, outside the forward path

    out = jax.block_until_ready(model_forward(x, packed))
    ref = jax.block_until_ready(reference_forward(x, *params))

    assert out.shape == (1, 3, 4, 4), out.shape
    assert jnp.allclose(out, ref, atol=1e-4, rtol=1e-4), \
        f"max err {jnp.max(jnp.abs(out - ref))}"
    print("KERNEL_OK")
</pallas_src>

<mosaic_0001>
module attributes {stable_mosaic.version = 11 : i64} {
  func.func @model_kernel(%arg0: memref<1x3x8x8xf32, #tpu.memory_space<vmem>>, %arg1: memref<276xf32, #tpu.memory_space<smem>>, %arg2: memref<1x3x4x4xf32, #tpu.memory_space<vmem>>, %arg3: memref<1x3x8x128xf32, #tpu.memory_space<vmem>>) attributes {dimension_semantics = [], scalar_prefetch = 0 : i64, scratch_operands = 1 : i64, tpu.core_type = #tpu.core_type<tc>} {
    %0 = tpu.iota {dimensions = array<i32: 0>} : vector<8x128xi32>
    %1 = tpu.iota {dimensions = array<i32: 1>} : vector<8x128xi32>
    %c1_i32 = arith.constant 1 : i32
    %2 = vector.broadcast %c1_i32 : i32 to vector<8x128xi32>
    %3 = arith.cmpi sge, %0, %2 : vector<8x128xi32>
    %c4_i32 = arith.constant 4 : i32
    %4 = vector.broadcast %c4_i32 : i32 to vector<8x128xi32>
    %5 = arith.cmpi slt, %0, %4 : vector<8x128xi32>
    %6 = arith.andi %3, %5 : vector<8x128xi1>
    %c1_i32_0 = arith.constant 1 : i32
    %7 = vector.broadcast %c1_i32_0 : i32 to vector<8x128xi32>
    %8 = arith.cmpi sge, %1, %7 : vector<8x128xi32>
    %9 = arith.andi %6, %8 : vector<8x128xi1>
    %c4_i32_1 = arith.constant 4 : i32
    %10 = vector.broadcast %c4_i32_1 : i32 to vector<8x128xi32>
    %11 = arith.cmpi slt, %1, %10 : vector<8x128xi32>
    %12 = arith.andi %9, %11 : vector<8x128xi1>
    %c4_i32_2 = arith.constant 4 : i32
    %13 = vector.broadcast %c4_i32_2 : i32 to vector<8x128xi32>
    %14 = arith.cmpi slt, %0, %13 : vector<8x128xi32>
    %c4_i32_3 = arith.constant 4 : i32
    %15 = vector.broadcast %c4_i32_3 : i32 to vector<8x128xi32>
    %16 = arith.cmpi slt, %1, %15 : vector<8x128xi32>
    %17 = arith.andi %14, %16 : vector<8x128xi1>
    %cst = arith.constant 0.000000e+00 : f32
    %18 = vector.broadcast %cst : f32 to vector<1x3x8x128xf32>
    %c0 = arith.constant 0 : index
    %c0_4 = arith.constant 0 : index
    %c0_5 = arith.constant 0 : index
    %c0_6 = arith.constant 0 : index
    %19 = vector.load %arg3[%c0, %c0_4, %c0_5, %c0_6] : memref<1x3x8x128xf32, #tpu.memory_space<vmem>>, vector<1x3x8x128xf32>
    tpu.vector_store %arg3[%c0, %c0_4, %c0_5, %c0_6], %18 {strides = array<i32>} : memref<1x3x8x128xf32, #tpu.memory_space<vmem>>, vector<1x3x8x128xf32>,
    %c0_7 = arith.constant 0 : index
    %c0_8 = arith.constant 0 : index
    %c0_9 = arith.constant 0 : index
    %c0_10 = arith.constant 0 : index
    %20 = vector.load %arg0[%c0_7, %c0_8, %c0_9, %c0_10] : memref<1x3x8x8xf32, #tpu.memory_space<vmem>>, vector<1x1x8x8xf32>
    %21 = vector.shape_cast %20 : vector<1x1x8x8xf32> to vector<8x8xf32>
    %c0_11 = arith.constant 0 : index
    %c0_12 = arith.constant 0 : index
    %c0_13 = arith.constant 0 : index
    %c0_14 = arith.constant 0 : index
    %22 = vector.load %arg3[%c0_11, %c0_12, %c0_13, %c0_14] : memref<1x3x8x128xf32, #tpu.memory_space<vmem>>, vector<1x1x8x8xf32>
    %23 = vector.shape_cast %22 : vector<1x1x8x8xf32> to vector<8x8xf32>
    %24 = vector.shape_cast %21 : vector<8x8xf32> to vector<1x1x8x8xf32>
    tpu.vector_store %arg3[%c0_11, %c0_12, %c0_13, %c0_14], %24 {strides = array<i32>} : memref<1x3x8x128xf32, #tpu.memory_space<vmem>>, vector<1x1x8x8xf32>,
    %c0_15 = arith.constant 0 : index
    %c1 = arith.constant 1 : index
    %c0_16 = arith.constant 0 : index
    %c0_17 = arith.constant 0 : index
    %25 = vector.load %arg0[%c0_15, %c1, %c0_16, %c0_17] : memref<1x3x8x8xf32, #tpu.memory_space<vmem>>, vector<1x1x8x8xf32>
    %26 = vector.shape_cast %25 : vector<1x1x8x8xf32> to vector<8x8xf32>
    %c0_18 = arith.constant 0 : index
    %c1_19 = arith.constant 1 : index
    %c0_20 = arith.constant 0 : index
    %c0_21 = arith.constant 0 : index
    %27 = vector.load %arg3[%c0_18, %c1_19, %c0_20, %c0_21] : memref<1x3x8x128xf32, #tpu.memory_space<vmem>>, vector<1x1x8x8xf32>
    %28 = vector.shape_cast %27 : vector<1x1x8x8xf32> to vector<8x8xf32>
    %29 = vector.shape_cast %26 : vector<8x8xf32> to vector<1x1x8x8xf32>
    tpu.vector_store %arg3[%c0_18, %c1_19, %c0_20, %c0_21], %29 {strides = array<i32>} : memref<1x3x8x128xf32, #tpu.memory_space<vmem>>, vector<1x1x8x8xf32>,
    %c0_22 = arith.constant 0 : index
    %c2 = arith.constant 2 : index
    %c0_23 = arith.constant 0 : index
    %c0_24 = arith.constant 0 : index
    %30 = vector.load %arg0[%c0_22, %c2, %c0_23, %c0_24] : memref<1x3x8x8xf32, #tpu.memory_space<vmem>>, vector<1x1x8x8xf32>
    %31 = vector.shape_cast %30 : vector<1x1x8x8xf32> to vector<8x8xf32>
    %c0_25 = arith.constant 0 : index
    %c2_26 = arith.constant 2 : index
    %c0_27 = arith.constant 0 : index
    %c0_28 = arith.constant 0 : index
    %32 = vector.load %arg3[%c0_25, %c2_26, %c0_27, %c0_28] : memref<1x3x8x128xf32, #tpu.memory_space<vmem>>, vector<1x1x8x8xf32>
    %33 = vector.shape_cast %32 : vector<1x1x8x8xf32> to vector<8x8xf32>
    %34 = vector.shape_cast %31 : vector<8x8xf32> to vector<1x1x8x8xf32>
    tpu.vector_store %arg3[%c0_25, %c2_26, %c0_27, %c0_28], %34 {strides = array<i32>} : memref<1x3x8x128xf32, #tpu.memory_space<vmem>>, vector<1x1x8x8xf32>,
    %c0_29 = arith.constant 0 : index
    %c0_30 = arith.constant 0 : index
    %c0_31 = arith.constant 0 : index
    %c0_32 = arith.constant 0 : index
    %35 = vector.load %arg3[%c0_29, %c0_30, %c0_31, %c0_32] : memref<1x3x8x128xf32, #tpu.memory_space<vmem>>, vector<1x1x8x128xf32>
    %36 = vector.shape_cast %35 : vector<1x1x8x128xf32> to vector<8x128xf32>
    %c0_33 = arith.constant 0 : index
    %c1_34 = arith.constant 1 : index
    %c0_35 = arith.constant 0 : index
    %c0_36 = arith.constant 0 : index
    %37 = vector.load %arg3[%c0_33, %c1_34, %c0_35, %c0_36] : memref<1x3x8x128xf32, #tpu.memory_space<vmem>>, vector<1x1x8x128xf32>
    %38 = vector.shape_cast %37 : vector<1x1x8x128xf32> to vector<8x128xf32>
    %c0_37 = arith.constant 0 : index
    %c2_38 = arith.constant 2 : index
    %c0_39 = arith.constant 0 : index
    %c0_40 = arith.constant 0 : index
    %39 = vector.load %arg3[%c0_37, %c2_38, %c0_39, %c0_40] : memref<1x3x8x128xf32, #tpu.memory_space<vmem>>, vector<1x1x8x128xf32>
    %40 = vector.shape_cast %39 : vector<1x1x8x128xf32> to vector<8x128xf32>
    %cst_41 = arith.constant 0.000000e+00 : f32
    %41 = vector.broadcast %cst_41 : f32 to vector<8x128xf32>
    %c144 = arith.constant 144 : index
    %42 = memref.load %arg1[%c144] : memref<276xf32, #tpu.memory_space<smem>>
    %43 = vector.broadcast %42 : f32 to vector<8x128xf32>
    %44 = arith.addf %41, %43 : vector<8x128xf32>
    %cst_42 = arith.constant 0.000000e+00 : f32
    %45 = vector.broadcast %cst_42 : f32 to vector<8x128xf32>
    %c145 = arith.constant 145 : index
    %46 = memref.load %arg1[%c145] : memref<276xf32, #tpu.memory_space<smem>>
    %47 = vector.broadcast %46 : f32 to vector<8x128xf32>
    %48 = arith.addf %45, %47 : vector<8x128xf32>
    %cst_43 = arith.constant 0.000000e+00 : f32
    %49 = vector.broadcast %cst_43 : f32 to vector<8x128xf32>
    %c146 = arith.constant 146 : index
    %50 = memref.load %arg1[%c146] : memref<276xf32, #tpu.memory_space<smem>>
    %51 = vector.broadcast %50 : f32 to vector<8x128xf32>
    %52 = arith.addf %49, %51 : vector<8x128xf32>
    %c0_44 = arith.constant 0 : index
    %53 = memref.load %arg1[%c0_44] : memref<276xf32, #tpu.memory_space<smem>>
    %54 = vector.broadcast %53 : f32 to vector<8x128xf32>
    %55 = arith.mulf %54, %36 : vector<8x128xf32>
    %56 = arith.addf %44, %55 : vector<8x128xf32>
    %c48 = arith.constant 48 : index
    %57 = memref.load %arg1[%c48] : memref<276xf32, #tpu.memory_space<smem>>
    %58 = vector.broadcast %57 : f32 to vector<8x128xf32>
    %59 = arith.mulf %58, %36 : vector<8x128xf32>
    %60 = arith.addf %48, %59 : vector<8x128xf32>
    %c96 = arith.constant 96 : index
    %61 = memref.load %arg1[%c96] : memref<276xf32, #tpu.memory_space<smem>>
    %62 = vector.broadcast %61 : f32 to vector<8x128xf32>
    %63 = arith.mulf %62, %36 : vector<8x128xf32>
    %64 = arith.addf %52, %63 : vector<8x128xf32>
    %c127_i32 = arith.constant 127 : i32
    %65 = tpu.dynamic_rotate %36 by %c127_i32 dim 1 : vector<8x128xf32>, i32 -> vector<8x128xf32>
    %c1_45 = arith.constant 1 : index
    %66 = memref.load %arg1[%c1_45] : memref<276xf32, #tpu.memory_space<smem>>
    %67 = vector.broadcast %66 : f32 to vector<8x128xf32>
    %68 = arith.mulf %67, %65 : vector<8x128xf32>
    %69 = arith.addf %56, %68 : vector<8x128xf32>
    %c49 = arith.constant 49 : index
    %70 = memref.load %arg1[%c49] : memref<276xf32, #tpu.memory_space<smem>>
    %71 = vector.broadcast %70 : f32 to vector<8x128xf32>
    %72 = arith.mulf %71, %65 : vector<8x128xf32>
    %73 = arith.addf %60, %72 : vector<8x128xf32>
    %c97 = arith.constant 97 : index
    %74 = memref.load %arg1[%c97] : memref<276xf32, #tpu.memory_space<smem>>
    %75 = vector.broadcast %74 : f32 to vector<8x128xf32>
    %76 = arith.mulf %75, %65 : vector<8x128xf32>
    %77 = arith.addf %64, %76 : vector<8x128xf32>
    %c126_i32 = arith.constant 126 : i32
    %78 = tpu.dynamic_rotate %36 by %c126_i32 dim 1 : vector<8x128xf32>, i32 -> vector<8x128xf32>
    %c2_46 = arith.constant 2 : index
    %79 = memref.load %arg1[%c2_46] : memref<276xf32, #tpu.memory_space<smem>>
    %80 = vector.broadcast %79 : f32 to vector<8x128xf32>
    %81 = arith.mulf %80, %78 : vector<8x128xf32>
    %82 = arith.addf %69, %81 : vector<8x128xf32>
    %c50 = arith.constant 50 : index
    %83 = memref.load %arg1[%c50] : memref<276xf32, #tpu.memory_space<smem>>
    %84 = vector.broadcast %83 : f32 to vector<8x128xf32>
    %85 = arith.mulf %84, %78 : vector<8x128xf32>
    %86 = arith.addf %73, %85 : vector<8x128xf32>
    %c98 = arith.constant 98 : index
    %87 = memref.load %arg1[%c98] : memref<276xf32, #tpu.memory_space<smem>>
    %88 = vector.broadcast %87 : f32 to vector<8x128xf32>
    %89 = arith.mulf %88, %78 : vector<8x128xf32>
    %90 = arith.addf %77, %89 : vector<8x128xf32>
    %c125_i32 = arith.constant 125 : i32
    %91 = tpu.dynamic_rotate %36 by %c125_i32 dim 1 : vector<8x128xf32>, i32 -> vector<8x128xf32>
    %c3 = arith.constant 3 : index
    %92 = memref.load %arg1[%c3] : memref<276xf32, #tpu.memory_space<smem>>
    %93 = vector.broadcast %92 : f32 to vector<8x128xf32>
    %94 = arith.mulf %93, %91 : vector<8x128xf32>
    %95 = arith.addf %82, %94 : vector<8x128xf32>
    %c51 = arith.constant 51 : index
    %96 = memref.load %arg1[%c51] : memref<276xf32, #tpu.memory_space<smem>>
    %97 = vector.broadcast %96 : f32 to vector<8x128xf32>
    %98 = arith.mulf %97, %91 : vector<8x128xf32>
    %99 = arith.addf %86, %98 : vector<8x128xf32>
    %c99 = arith.constant 99 : index
    %100 = memref.load %arg1[%c99] : memref<276xf32, #tpu.memory_space<smem>>
    %101 = vector.broadcast %100 : f32 to vector<8x128xf32>
    %102 = arith.mulf %101, %91 : vector<8x128xf32>
    %103 = arith.addf %90, %102 : vector<8x128xf32>
    %c7_i32 = arith.constant 7 : i32
    %104 = tpu.dynamic_rotate %36 by %c7_i32 dim 0 : vector<8x128xf32>, i32 -> vector<8x128xf32>
    %c4 = arith.constant 4 : index
    %105 = memref.load %arg1[%c4] : memref<276xf32, #tpu.memory_space<smem>>
    %106 = vector.broadcast %105 : f32 to vector<8x128xf32>
    %107 = arith.mulf %106, %104 : vector<8x128xf32>
    %108 = arith.addf %95, %107 : vector<8x128xf32>
    %c52 = arith.constant 52 : index
    %109 = memref.load %arg1[%c52] : memref<276xf32, #tpu.memory_space<smem>>
    %110 = vector.broadcast %109 : f32 to vector<8x128xf32>
    %111 = arith.mulf %110, %104 : vector<8x128xf32>
    %112 = arith.addf %99, %111 : vector<8x128xf32>
    %c100 = arith.constant 100 : index
    %113 = memref.load %arg1[%c100] : memref<276xf32, #tpu.memory_space<smem>>
    %114 = vector.broadcast %113 : f32 to vector<8x128xf32>
    %115 = arith.mulf %114, %104 : vector<8x128xf32>
    %116 = arith.addf %103, %115 : vector<8x128xf32>
    %c127_i32_47 = arith.constant 127 : i32
    %117 = tpu.dynamic_rotate %104 by %c127_i32_47 dim 1 : vector<8x128xf32>, i32 -> vector<8x128xf32>
    %c5 = arith.constant 5 : index
    %118 = memref.load %arg1[%c5] : memref<276xf32, #tpu.memory_space<smem>>
    %119 = vector.broadcast %118 : f32 to vector<8x128xf32>
    %120 = arith.mulf %119, %117 : vector<8x128xf32>
    %121 = arith.addf %108, %120 : vector<8x128xf32>
    %c53 = arith.constant 53 : index
    %122 = memref.load %arg1[%c53] : memref<276xf32, #tpu.memory_space<smem>>
    %123 = vector.broadcast %122 : f32 to vector<8x128xf32>
    %124 = arith.mulf %123, %117 : vector<8x128xf32>
    %125 = arith.addf %112, %124 : vector<8x128xf32>
    %c101 = arith.constant 101 : index
    %126 = memref.load %arg1[%c101] : memref<276xf32, #tpu.memory_space<smem>>
    %127 = vector.broadcast %126 : f32 to vector<8x128xf32>
    %128 = arith.mulf %127, %117 : vector<8x128xf32>
    %129 = arith.addf %116, %128 : vector<8x128xf32>
    %c126_i32_48 = arith.constant 126 : i32
    %130 = tpu.dynamic_rotate %104 by %c126_i32_48 dim 1 : vector<8x128xf32>, i32 -> vector<8x128xf32>
    %c6 = arith.constant 6 : index
    %131 = memref.load %arg1[%c6] : memref<276xf32, #tpu.memory_space<smem>>
    %132 = vector.broadcast %131 : f32 to vector<8x128xf32>
    %133 = arith.mulf %132, %130 : vector<8x128xf32>
    %134 = arith.addf %121, %133 : vector<8x128xf32>
    %c54 = arith.constant 54 : index
    %135 = memref.load %arg1[%c54] : memref<276xf32, #tpu.memory_space<smem>>
    %136 = vector.broadcast %135 : f32 to vector<8x128xf32>
    %137 = arith.mulf %136, %130 : vector<8x128xf32>
    %138 = arith.addf %125, %137 : vector<8x128xf32>
    %c102 = arith.constant 102 : index
    %139 = memref.load %arg1[%c102] : memref<276xf32, #tpu.memory_space<smem>>
    %140 = vector.broadcast %139 : f32 to vector<8x128xf32>
    %141 = arith.mulf %140, %130 : vector<8x128xf32>
    %142 = arith.addf %129, %141 : vector<8x128xf32>
    %c125_i32_49 = arith.constant 125 : i32
    %143 = tpu.dynamic_rotate %104 by %c125_i32_49 dim 1 : vector<8x128xf32>, i32 -> vector<8x128xf32>
    %c7 = arith.constant 7 : index
    %144 = memref.load %arg1[%c7] : memref<276xf32, #tpu.memory_space<smem>>
    %145 = vector.broadcast %144 : f32 to vector<8x128xf32>
    %146 = arith.mulf %145, %143 : vector<8x128xf32>
    %147 = arith.addf %134, %146 : vector<8x128xf32>
    %c55 = arith.constant 55 : index
    %148 = memref.load %arg1[%c55] : memref<276xf32, #tpu.memory_space<smem>>
    %149 = vector.broadcast %148 : f32 to vector<8x128xf32>
    %150 = arith.mulf %149, %143 : vector<8x128xf32>
    %151 = arith.addf %138, %150 : vector<8x128xf32>
    %c103 = arith.constant 103 : index
    %152 = memref.load %arg1[%c103] : memref<276xf32, #tpu.memory_space<smem>>
    %153 = vector.broadcast %152 : f32 to vector<8x128xf32>
    %154 = arith.mulf %153, %143 : vector<8x128xf32>
    %155 = arith.addf %142, %154 : vector<8x128xf32>
    %c6_i32 = arith.constant 6 : i32
    %156 = tpu.dynamic_rotate %36 by %c6_i32 dim 0 : vector<8x128xf32>, i32 -> vector<8x128xf32>
    %c8 = arith.constant 8 : index
    %157 = memref.load %arg1[%c8] : memref<276xf32, #tpu.memory_space<smem>>
    %158 = vector.broadcast %157 : f32 to vector<8x128xf32>
    %159 = arith.mulf %158, %156 : vector<8x128xf32>
    %160 = arith.addf %147, %159 : vector<8x128xf32>
    %c56 = arith.constant 56 : index
    %161 = memref.load %arg1[%c56] : memref<276xf32, #tpu.memory_space<smem>>
    %162 = vector.broadcast %161 : f32 to vector<8x128xf32>
    %163 = arith.mulf %162, %156 : vector<8x128xf32>
    %164 = arith.addf %151, %163 : vector<8x128xf32>
    %c104 = arith.constant 104 : index
    %165 = memref.load %arg1[%c104] : memref<276xf32, #tpu.memory_space<smem>>
    %166 = vector.broadcast %165 : f32 to vector<8x128xf32>
    %167 = arith.mulf %166, %156 : vector<8x128xf32>
    %168 = arith.addf %155, %167 : vector<8x128xf32>
    %c127_i32_50 = arith.constant 127 : i32
    %169 = tpu.dynamic_rotate %156 by %c127_i32_50 dim 1 : vector<8x128xf32>, i32 -> vector<8x128xf32>
    %c9 = arith.constant 9 : index
    %170 = memref.load %arg1[%c9] : memref<276xf32, #tpu.memory_space<smem>>
    %171 = vector.broadcast %170 : f32 to vector<8x128xf32>
    %172 = arith.mulf %171, %169 : vector<8x128xf32>
    %173 = arith.addf %160, %172 : vector<8x128xf32>
    %c57 = arith.constant 57 : index
    %174 = memref.load %arg1[%c57] : memref<276xf32, #tpu.memory_space<smem>>
    %175 = vector.broadcast %174 : f32 to vector<8x128xf32>
    %176 = arith.mulf %175, %169 : vector<8x128xf32>
    %177 = arith.addf %164, %176 : vector<8x128xf32>
    %c105 = arith.constant 105 : index
    %178 = memref.load %arg1[%c105] : memref<276xf32, #tpu.memory_space<smem>>
    %179 = vector.broadcast %178 : f32 to vector<8x128xf32>
    %180 = arith.mulf %179, %169 : vector<8x128xf32>
    %181 = arith.addf %168, %180 : vector<8x128xf32>
    %c126_i32_51 = arith.constant 126 : i32
    %182 = tpu.dynamic_rotate %156 by %c126_i32_51 dim 1 : vector<8x128xf32>, i32 -> vector<8x128xf32>
    %c10 = arith.constant 10 : index
    %183 = memref.load %arg1[%c10] : memref<276xf32, #tpu.memory_space<smem>>
    %184 = vector.broadcast %183 : f32 to vector<8x128xf32>
    %185 = arith.mulf %184, %182 : vector<8x128xf32>
    %186 = arith.addf %173, %185 : vector<8x128xf32>
    %c58 = arith.constant 58 : index
    %187 = memref.load %arg1[%c58] : memref<276xf32, #tpu.memory_space<smem>>
    %188 = vector.broadcast %187 : f32 to vector<8x128xf32>
    %189 = arith.mulf %188, %182 : vector<8x128xf32>
    %190 = arith.addf %177, %189 : vector<8x128xf32>
    %c106 = arith.constant 106 : index
    %191 = memref.load %arg1[%c106] : memref<276xf32, #tpu.memory_space<smem>>
    %192 = vector.broadcast %191 : f32 to vector<8x128xf32>
    %193 = arith.mulf %192, %182 : vector<8x128xf32>
    %194 = arith.addf %181, %193 : vector<8x128xf32>
    %c125_i32_52 = arith.constant 125 : i32
    %195 = tpu.dynamic_rotate %156 by %c125_i32_52 dim 1 : vector<8x128xf32>, i32 -> vector<8x128xf32>
    %c11 = arith.constant 11 : index
    %196 = memref.load %arg1[%c11] : memref<276xf32, #tpu.memory_space<smem>>
    %197 = vector.broadcast %196 : f32 to vector<8x128xf32>
    %198 = arith.mulf %197, %195 : vector<8x128xf32>
    %199 = arith.addf %186, %198 : vector<8x128xf32>
    %c59 = arith.constant 59 : index
    %200 = memref.load %arg1[%c59] : memref<276xf32, #tpu.memory_space<smem>>
    %201 = vector.broadcast %200 : f32 to vector<8x128xf32>
    %202 = arith.mulf %201, %195 : vector<8x128xf32>
    %203 = arith.addf %190, %202 : vector<8x128xf32>
    %c107 = arith.constant 107 : index
    %204 = memref.load %arg1[%c107] : memref<276xf32, #tpu.memory_space<smem>>
    %205 = vector.broadcast %204 : f32 to vector<8x128xf32>
    %206 = arith.mulf %205, %195 : vector<8x128xf32>
    %207 = arith.addf %194, %206 : vector<8x128xf32>
    %c5_i32 = arith.constant 5 : i32
    %208 = tpu.dynamic_rotate %36 by %c5_i32 dim 0 : vector<8x128xf32>, i32 -> vector<8x128xf32>
    %c12 = arith.constant 12 : index
    %209 = memref.load %arg1[%c12] : memref<276xf32, #tpu.memory_space<smem>>
    %210 = vector.broadcast %209 : f32 to vector<8x128xf32>
    %211 = arith.mulf %210, %208 : vector<8x128xf32>
    %212 = arith.addf %199, %211 : vector<8x128xf32>
    %c60 = arith.constant 60 : index
    %213 = memref.load %arg1[%c60] : memref<276xf32, #tpu.memory_space<smem>>
    %214 = vector.broadcast %213 : f32 to vector<8x128xf32>
    %215 = arith.mulf %214, %208 : vector<8x128xf32>
    %216 = arith.addf %203, %215 : vector<8x128xf32>
    %c108 = arith.constant 108 : index
    %217 = memref.load %arg1[%c108] : memref<276xf32, #tpu.memory_space<smem>>
    %218 = vector.broadcast %217 : f32 to vector<8x128xf32>
    %219 = arith.mulf %218, %208 : vector<8x128xf32>
    %220 = arith.addf %207, %219 : vector<8x128xf32>
    %c127_i32_53 = arith.constant 127 : i32
    %221 = tpu.dynamic_rotate %208 by %c127_i32_53 dim 1 : vector<8x128xf32>, i32 -> vector<8x128xf32>
    %c13 = arith.constant 13 : index
    %222 = memref.load %arg1[%c13] : memref<276xf32, #tpu.memory_space<smem>>
    %223 = vector.broadcast %222 : f32 to vector<8x128xf32>
    %224 = arith.mulf %223, %221 : vector<8x128xf32>
    %225 = arith.addf %212, %224 : vector<8x128xf32>
    %c61 = arith.constant 61 : index
    %226 = memref.load %arg1[%c61] : memref<276xf32, #tpu.memory_space<smem>>
    %227 = vector.broadcast %226 : f32 to vector<8x128xf32>
    %228 = arith.mulf %227, %221 : vector<8x128xf32>
    %229 = arith.addf %216, %228 : vector<8x128xf32>
    %c109 = arith.constant 109 : index
    %230 = memref.load %arg1[%c109] : memref<276xf32, #tpu.memory_space<smem>>
    %231 = vector.broadcast %230 : f32 to vector<8x128xf32>
    %232 = arith.mulf %231, %221 : vector<8x128xf32>
    %233 = arith.addf %220, %232 : vector<8x128xf32>
    %c126_i32_54 = arith.constant 126 : i32
    %234 = tpu.dynamic_rotate %208 by %c126_i32_54 dim 1 : vector<8x128xf32>, i32 -> vector<8x128xf32>
    %c14 = arith.constant 14 : index
    %235 = memref.load %arg1[%c14] : memref<276xf32, #tpu.memory_space<smem>>
    %236 = vector.broadcast %235 : f32 to vector<8x128xf32>
    %237 = arith.mulf %236, %234 : vector<8x128xf32>
    %238 = arith.addf %225, %237 : vector<8x128xf32>
    %c62 = arith.constant 62 : index
    %239 = memref.load %arg1[%c62] : memref<276xf32, #tpu.memory_space<smem>>
    %240 = vector.broadcast %239 : f32 to vector<8x128xf32>
    %241 = arith.mulf %240, %234 : vector<8x128xf32>
    %242 = arith.addf %229, %241 : vector<8x128xf32>
    %c110 = arith.constant 110 : index
    %243 = memref.load %arg1[%c110] : memref<276xf32, #tpu.memory_space<smem>>
    %244 = vector.broadcast %243 : f32 to vector<8x128xf32>
    %245 = arith.mulf %244, %234 : vector<8x128xf32>
    %246 = arith.addf %233, %245 : vector<8x128xf32>
    %c125_i32_55 = arith.constant 125 : i32
    %247 = tpu.dynamic_rotate %208 by %c125_i32_55 dim 1 : vector<8x128xf32>, i32 -> vector<8x128xf32>
    %c15 = arith.constant 15 : index
    %248 = memref.load %arg1[%c15] : memref<276xf32, #tpu.memory_space<smem>>
    %249 = vector.broadcast %248 : f32 to vector<8x128xf32>
    %250 = arith.mulf %249, %247 : vector<8x128xf32>
    %251 = arith.addf %238, %250 : vector<8x128xf32>
    %c63 = arith.constant 63 : index
    %252 = memref.load %arg1[%c63] : memref<276xf32, #tpu.memory_space<smem>>
    %253 = vector.broadcast %252 : f32 to vector<8x128xf32>
    %254 = arith.mulf %253, %247 : vector<8x128xf32>
    %255 = arith.addf %242, %254 : vector<8x128xf32>
    %c111 = arith.constant 111 : index
    %256 = memref.load %arg1[%c111] : memref<276xf32, #tpu.memory_space<smem>>
    %257 = vector.broadcast %256 : f32 to vector<8x128xf32>
    %258 = arith.mulf %257, %247 : vector<8x128xf32>
    %259 = arith.addf %246, %258 : vector<8x128xf32>
    %c16 = arith.constant 16 : index
    %260 = memref.load %arg1[%c16] : memref<276xf32, #tpu.memory_space<smem>>
    %261 = vector.broadcast %260 : f32 to vector<8x128xf32>
    %262 = arith.mulf %261, %38 : vector<8x128xf32>
    %263 = arith.addf %251, %262 : vector<8x128xf32>
    %c64 = arith.constant 64 : index
    %264 = memref.load %arg1[%c64] : memref<276xf32, #tpu.memory_space<smem>>
    %265 = vector.broadcast %264 : f32 to vector<8x128xf32>
    %266 = arith.mulf %265, %38 : vector<8x128xf32>
    %267 = arith.addf %255, %266 : vector<8x128xf32>
    %c112 = arith.constant 112 : index
    %268 = memref.load %arg1[%c112] : memref<276xf32, #tpu.memory_space<smem>>
    %269 = vector.broadcast %268 : f32 to vector<8x128xf32>
    %270 = arith.mulf %269, %38 : vector<8x128xf32>
    %271 = arith.addf %259, %270 : vector<8x128xf32>
    %c127_i32_56 = arith.constant 127 : i32
    %272 = tpu.dynamic_rotate %38 by %c127_i32_56 dim 1 : vector<8x128xf32>, i32 -> vector<8x128xf32>
    %c17 = arith.constant 17 : index
    %273 = memref.load %arg1[%c17] : memref<276xf32, #tpu.memory_space<smem>>
    %274 = vector.broadcast %273 : f32 to vector<8x128xf32>
    %275 = arith.mulf %274, %272 : vector<8x128xf32>
    %276 = arith.addf %263, %275 : vector<8x128xf32>
    %c65 = arith.constant 65 : index
    %277 = memref.load %arg1[%c65] : memref<276xf32, #tpu.memory_space<smem>>
    %278 = vector.broadcast %277 : f32 to vector<8x128xf32>
    %279 = arith.mulf %278, %272 : vector<8x128xf32>
    %280 = arith.addf %267, %279 : vector<8x128xf32>
    %c113 = arith.constant 113 : index
    %281 = memref.load %arg1[%c113] : memref<276xf32, #tpu.memory_space<smem>>
    %282 = vector.broadcast %281 : f32 to vector<8x128xf32>
    %283 = arith.mulf %282, %272 : vector<8x128xf32>
    %284 = arith.addf %271, %283 : vector<8x128xf32>
    %c126_i32_57 = arith.constant 126 : i32
    %285 = tpu.dynamic_rotate %38 by %c126_i32_57 dim 1 : vector<8x128xf32>, i32 -> vector<8x128xf32>
    %c18 = arith.constant 18 : index
    %286 = memref.load %arg1[%c18] : memref<276xf32, #tpu.memory_space<smem>>
    %287 = vector.broadcast %286 : f32 to vector<8x128xf32>
    %288 = arith.mulf %287, %285 : vector<8x128xf32>
    %289 = arith.addf %276, %288 : vector<8x128xf32>
    %c66 = arith.constant 66 : index
    %290 = memref.load %arg1[%c66] : memref<276xf32, #tpu.memory_space<smem>>
    %291 = vector.broadcast %290 : f32 to vector<8x128xf32>
    %292 = arith.mulf %291, %285 : vector<8x128xf32>
    %293 = arith.addf %280, %292 : vector<8x128xf32>
    %c114 = arith.constant 114 : index
    %294 = memref.load %arg1[%c114] : memref<276xf32, #tpu.memory_space<smem>>
    %295 = vector.broadcast %294 : f32 to vector<8x128xf32>
    %296 = arith.mulf %295, %285 : vector<8x128xf32>
    %297 = arith.addf %284, %296 : vector<8x128xf32>
    %c125_i32_58 = arith.constant 125 : i32
    %298 = tpu.dynamic_rotate %38 by %c125_i32_58 dim 1 : vector<8x128xf32>, i32 -> vector<8x128xf32>
    %c19 = arith.constant 19 : index
    %299 = memref.load %arg1[%c19] : memref<276xf32, #tpu.memory_space<smem>>
    %300 = vector.broadcast %299 : f32 to vector<8x128xf32>
    %301 = arith.mulf %300, %298 : vector<8x128xf32>
    %302 = arith.addf %289, %301 : vector<8x128xf32>
    %c67 = arith.constant 67 : index
    %303 = memref.load %arg1[%c67] : memref<276xf32, #tpu.memory_space<smem>>
    %304 = vector.broadcast %303 : f32 to vector<8x128xf32>
    %305 = arith.mulf %304, %298 : vector<8x128xf32>
    %306 = arith.addf %293, %305 : vector<8x128xf32>
    %c115 = arith.constant 115 : index
    %307 = memref.load %arg1[%c115] : memref<276xf32, #tpu.memory_space<smem>>
    %308 = vector.broadcast %307 : f32 to vector<8x128xf32>
    %309 = arith.mulf %308, %298 : vector<8x128xf32>
    %310 = arith.addf %297, %309 : vector<8x128xf32>
    %c7_i32_59 = arith.constant 7 : i32
    %311 = tpu.dynamic_rotate %38 by %c7_i32_59 dim 0 : vector<8x128xf32>, i32 -> vector<8x128xf32>
    %c20 = arith.constant 20 : index
    %312 = memref.load %arg1[%c20] : memref<276xf32, #tpu.memory_space<smem>>
    %313 = vector.broadcast %312 : f32 to vector<8x128xf32>
    %314 = arith.mulf %313, %311 : vector<8x128xf32>
    %315 = arith.addf %302, %314 : vector<8x128xf32>
    %c68 = arith.constant 68 : index
    %316 = memref.load %arg1[%c68] : memref<276xf32, #tpu.memory_space<smem>>
    %317 = vector.broadcast %316 : f32 to vector<8x128xf32>
    %318 = arith.mulf %317, %311 : vector<8x128xf32>
    %319 = arith.addf %306, %318 : vector<8x128xf32>
    %c116 = arith.constant 116 : index
    %320 = memref.load %arg1[%c116] : memref<276xf32, #tpu.memory_space<smem>>
    %321 = vector.broadcast %320 : f32 to vector<8x128xf32>
    %322 = arith.mulf %321, %311 : vector<8x128xf32>
    %323 = arith.addf %310, %322 : vector<8x128xf32>
    %c127_i32_60 = arith.constant 127 : i32
    %324 = tpu.dynamic_rotate %311 by %c127_i32_60 dim 1 : vector<8x128xf32>, i32 -> vector<8x128xf32>
    %c21 = arith.constant 21 : index
    %325 = memref.load %arg1[%c21] : memref<276xf32, #tpu.memory_space<smem>>
    %326 = vector.broadcast %325 : f32 to vector<8x128xf32>
    %327 = arith.mulf %326, %324 : vector<8x128xf32>
    %328 = arith.addf %315, %327 : vector<8x128xf32>
    %c69 = arith.constant 69 : index
    %329 = memref.load %arg1[%c69] : memref<276xf32, #tpu.memory_space<smem>>
    %330 = vector.broadcast %329 : f32 to vector<8x128xf32>
    %331 = arith.mulf %330, %324 : vector<8x128xf32>
    %332 = arith.addf %319, %331 : vector<8x128xf32>
    %c117 = arith.constant 117 : index
    %333 = memref.load %arg1[%c117] : memref<276xf32, #tpu.memory_space<smem>>
    %334 = vector.broadcast %333 : f32 to vector<8x128xf32>
    %335 = arith.mulf %334, %324 : vector<8x128xf32>
    %336 = arith.addf %323, %335 : vector<8x128xf32>
    %c126_i32_61 = arith.constant 126 : i32
    %337 = tpu.dynamic_rotate %311 by %c126_i32_61 dim 1 : vector<8x128xf32>, i32 -> vector<8x128xf32>
    %c22 = arith.constant 22 : index
    %338 = memref.load %arg1[%c22] : memref<276xf32, #tpu.memory_space<smem>>
    %339 = vector.broadcast %338 : f32 to vector<8x128xf32>
    %340 = arith.mulf %339, %337 : vector<8x128xf32>
    %341 = arith.addf %328, %340 : vector<8x128xf32>
    %c70 = arith.constant 70 : index
    %342 = memref.load %arg1[%c70] : memref<276xf32, #tpu.memory_space<smem>>
    %343 = vector.broadcast %342 : f32 to vector<8x128xf32>
    %344 = arith.mulf %343, %337 : vector<8x128xf32>
    %345 = arith.addf %332, %344 : vector<8x128xf32>
    %c118 = arith.constant 118 : index
    %346 = memref.load %arg1[%c118] : memref<276xf32, #tpu.memory_space<smem>>
    %347 = vector.broadcast %346 : f32 to vector<8x128xf32>
    %348 = arith.mulf %347, %337 : vector<8x128xf32>
    %349 = arith.addf %336, %348 : vector<8x128xf32>
    %c125_i32_62 = arith.constant 125 : i32
    %350 = tpu.dynamic_rotate %311 by %c125_i32_62 dim 1 : vector<8x128xf32>, i32 -> vector<8x128xf32>
    %c23 = arith.constant 23 : index
    %351 = memref.load %arg1[%c23] : memref<276xf32, #tpu.memory_space<smem>>
    %352 = vector.broadcast %351 : f32 to vector<8x128xf32>
    %353 = arith.mulf %352, %350 : vector<8x128xf32>
    %354 = arith.addf %341, %353 : vector<8x128xf32>
    %c71 = arith.constant 71 : index
    %355 = memref.load %arg1[%c71] : memref<276xf32, #tpu.memory_space<smem>>
    %356 = vector.broadcast %355 : f32 to vector<8x128xf32>
    %357 = arith.mulf %356, %350 : vector<8x128xf32>
    %358 = arith.addf %345, %357 : vector<8x128xf32>
    %c119 = arith.constant 119 : index
    %359 = memref.load %arg1[%c119] : memref<276xf32, #tpu.memory_space<smem>>
    %360 = vector.broadcast %359 : f32 to vector<8x128xf32>
    %361 = arith.mulf %360, %350 : vector<8x128xf32>
    %362 = arith.addf %349, %361 : vector<8x128xf32>
    %c6_i32_63 = arith.constant 6 : i32
    %363 = tpu.dynamic_rotate %38 by %c6_i32_63 dim 0 : vector<8x128xf32>, i32 -> vector<8x128xf32>
    %c24 = arith.constant 24 : index
    %364 = memref.load %arg1[%c24] : memref<276xf32, #tpu.memory_space<smem>>
    %365 = vector.broadcast %364 : f32 to vector<8x128xf32>
    %366 = arith.mulf %365, %363 : vector<8x128xf32>
    %367 = arith.addf %354, %366 : vector<8x128xf32>
    %c72 = arith.constant 72 : index
    %368 = memref.load %arg1[%c72] : memref<276xf32, #tpu.memory_space<smem>>
    %369 = vector.broadcast %368 : f32 to vector<8x128xf32>
    %370 = arith.mulf %369, %363 : vector<8x128xf32>
    %371 = arith.addf %358, %370 : vector<8x128xf32>
    %c120 = arith.constant 120 : index
    %372 = memref.load %arg1[%c120] : memref<276xf32, #tpu.memory_space<smem>>
    %373 = vector.broadcast %372 : f32 to vector<8x128xf32>
    %374 = arith.mulf %373, %363 : vector<8x128xf32>
    %375 = arith.addf %362, %374 : vector<8x128xf32>
    %c127_i32_64 = arith.constant 127 : i32
    %376 = tpu.dynamic_rotate %363 by %c127_i32_64 dim 1 : vector<8x128xf32>, i32 -> vector<8x128xf32>
    %c25 = arith.constant 25 : index
    %377 = memref.load %arg1[%c25] : memref<276xf32, #tpu.memory_space<smem>>
    %378 = vector.broadcast %377 : f32 to vector<8x128xf32>
    %379 = arith.mulf %378, %376 : vector<8x128xf32>
    %380 = arith.addf %367, %379 : vector<8x128xf32>
    %c73 = arith.constant 73 : index
    %381 = memref.load %arg1[%c73] : memref<276xf32, #tpu.memory_space<smem>>
    %382 = vector.broadcast %381 : f32 to vector<8x128xf32>
    %383 = arith.mulf %382, %376 : vector<8x128xf32>
    %384 = arith.addf %371, %383 : vector<8x128xf32>
    %c121 = arith.constant 121 : index
    %385 = memref.load %arg1[%c121] : memref<276xf32, #tpu.memory_space<smem>>
    %386 = vector.broadcast %385 : f32 to vector<8x128xf32>
    %387 = arith.mulf %386, %376 : vector<8x128xf32>
    %388 = arith.addf %375, %387 : vector<8x128xf32>
    %c126_i32_65 = arith.constant 126 : i32
    %389 = tpu.dynamic_rotate %363 by %c126_i32_65 dim 1 : vector<8x128xf32>, i32 -> vector<8x128xf32>
    %c26 = arith.constant 26 : index
    %390 = memref.load %arg1[%c26] : memref<276xf32, #tpu.memory_space<smem>>
    %391 = vector.broadcast %390 : f32 to vector<8x128xf32>
    %392 = arith.mulf %391, %389 : vector<8x128xf32>
    %393 = arith.addf %380, %392 : vector<8x128xf32>
    %c74 = arith.constant 74 : index
    %394 = memref.load %arg1[%c74] : memref<276xf32, #tpu.memory_space<smem>>
    %395 = vector.broadcast %394 : f32 to vector<8x128xf32>
    %396 = arith.mulf %395, %389 : vector<8x128xf32>
    %397 = arith.addf %384, %396 : vector<8x128xf32>
    %c122 = arith.constant 122 : index
    %398 = memref.load %arg1[%c122] : memref<276xf32, #tpu.memory_space<smem>>
    %399 = vector.broadcast %398 : f32 to vector<8x128xf32>
    %400 = arith.mulf %399, %389 : vector<8x128xf32>
    %401 = arith.addf %388, %400 : vector<8x128xf32>
    %c125_i32_66 = arith.constant 125 : i32
    %402 = tpu.dynamic_rotate %363 by %c125_i32_66 dim 1 : vector<8x128xf32>, i32 -> vector<8x128xf32>
    %c27 = arith.constant 27 : index
    %403 = memref.load %arg1[%c27] : memref<276xf32, #tpu.memory_space<smem>>
    %404 = vector.broadcast %403 : f32 to vector<8x128xf32>
    %405 = arith.mulf %404, %402 : vector<8x128xf32>
    %406 = arith.addf %393, %405 : vector<8x128xf32>
    %c75 = arith.constant 75 : index
    %407 = memref.load %arg1[%c75] : memref<276xf32, #tpu.memory_space<smem>>
    %408 = vector.broadcast %407 : f32 to vector<8x128xf32>
    %409 = arith.mulf %408, %402 : vector<8x128xf32>
    %410 = arith.addf %397, %409 : vector<8x128xf32>
    %c123 = arith.constant 123 : index
    %411 = memref.load %arg1[%c123] : memref<276xf32, #tpu.memory_space<smem>>
    %412 = vector.broadcast %411 : f32 to vector<8x128xf32>
    %413 = arith.mulf %412, %402 : vector<8x128xf32>
    %414 = arith.addf %401, %413 : vector<8x128xf32>
    %c5_i32_67 = arith.constant 5 : i32
    %415 = tpu.dynamic_rotate %38 by %c5_i32_67 dim 0 : vector<8x128xf32>, i32 -> vector<8x128xf32>
    %c28 = arith.constant 28 : index
    %416 = memref.load %arg1[%c28] : memref<276xf32, #tpu.memory_space<smem>>
    %417 = vector.broadcast %416 : f32 to vector<8x128xf32>
    %418 = arith.mulf %417, %415 : vector<8x128xf32>
    %419 = arith.addf %406, %418 : vector<8x128xf32>
    %c76 = arith.constant 76 : index
    %420 = memref.load %arg1[%c76] : memref<276xf32, #tpu.memory_space<smem>>
    %421 = vector.broadcast %420 : f32 to vector<8x128xf32>
    %422 = arith.mulf %421, %415 : vector<8x128xf32>
    %423 = arith.addf %410, %422 : vector<8x128xf32>
    %c124 = arith.constant 124 : index
    %424 = memref.load %arg1[%c124] : memref<276xf32, #tpu.memory_space<smem>>
    %425 = vector.broadcast %424 : f32 to vector<8x128xf32>
    %426 = arith.mulf %425, %415 : vector<8x128xf32>
    %427 = arith.addf %414, %426 : vector<8x128xf32>
    %c127_i32_68 = arith.constant 127 : i32
    %428 = tpu.dynamic_rotate %415 by %c127_i32_68 dim 1 : vector<8x128xf32>, i32 -> vector<8x128xf32>
    %c29 = arith.constant 29 : index
    %429 = memref.load %arg1[%c29] : memref<276xf32, #tpu.memory_space<smem>>
    %430 = vector.broadcast %429 : f32 to vector<8x128xf32>
    %431 = arith.mulf %430, %428 : vector<8x128xf32>
    %432 = arith.addf %419, %431 : vector<8x128xf32>
    %c77 = arith.constant 77 : index
    %433 = memref.load %arg1[%c77] : memref<276xf32, #tpu.memory_space<smem>>
    %434 = vector.broadcast %433 : f32 to vector<8x128xf32>
    %435 = arith.mulf %434, %428 : vector<8x128xf32>
    %436 = arith.addf %423, %435 : vector<8x128xf32>
    %c125 = arith.constant 125 : index
    %437 = memref.load %arg1[%c125] : memref<276xf32, #tpu.memory_space<smem>>
    %438 = vector.broadcast %437 : f32 to vector<8x128xf32>
    %439 = arith.mulf %438, %428 : vector<8x128xf32>
    %440 = arith.addf %427, %439 : vector<8x128xf32>
    %c126_i32_69 = arith.constant 126 : i32
    %441 = tpu.dynamic_rotate %415 by %c126_i32_69 dim 1 : vector<8x128xf32>, i32 -> vector<8x128xf32>
    %c30 = arith.constant 30 : index
    %442 = memref.load %arg1[%c30] : memref<276xf32, #tpu.memory_space<smem>>
    %443 = vector.broadcast %442 : f32 to vector<8x128xf32>
    %444 = arith.mulf %443, %441 : vector<8x128xf32>
    %445 = arith.addf %432, %444 : vector<8x128xf32>
    %c78 = arith.constant 78 : index
    %446 = memref.load %arg1[%c78] : memref<276xf32, #tpu.memory_space<smem>>
    %447 = vector.broadcast %446 : f32 to vector<8x128xf32>
    %448 = arith.mulf %447, %441 : vector<8x128xf32>
    %449 = arith.addf %436, %448 : vector<8x128xf32>
    %c126 = arith.constant 126 : index
    %450 = memref.load %arg1[%c126] : memref<276xf32, #tpu.memory_space<smem>>
    %451 = vector.broadcast %450 : f32 to vector<8x128xf32>
    %452 = arith.mulf %451, %441 : vector<8x128xf32>
    %453 = arith.addf %440, %452 : vector<8x128xf32>
    %c125_i32_70 = arith.constant 125 : i32
    %454 = tpu.dynamic_rotate %415 by %c125_i32_70 dim 1 : vector<8x128xf32>, i32 -> vector<8x128xf32>
    %c31 = arith.constant 31 : index
    %455 = memref.load %arg1[%c31] : memref<276xf32, #tpu.memory_space<smem>>
    %456 = vector.broadcast %455 : f32 to vector<8x128xf32>
    %457 = arith.mulf %456, %454 : vector<8x128xf32>
    %458 = arith.addf %445, %457 : vector<8x128xf32>
    %c79 = arith.constant 79 : index
    %459 = memref.load %arg1[%c79] : memref<276xf32, #tpu.memory_space<smem>>
    %460 = vector.broadcast %459 : f32 to vector<8x128xf32>
    %461 = arith.mulf %460, %454 : vector<8x128xf32>
    %462 = arith.addf %449, %461 : vector<8x128xf32>
    %c127 = arith.constant 127 : index
    %463 = memref.load %arg1[%c127] : memref<276xf32, #tpu.memory_space<smem>>
    %464 = vector.broadcast %463 : f32 to vector<8x128xf32>
    %465 = arith.mulf %464, %454 : vector<8x128xf32>
    %466 = arith.addf %453, %465 : vector<8x128xf32>
    %c32 = arith.constant 32 : index
    %467 = memref.load %arg1[%c32] : memref<276xf32, #tpu.memory_space<smem>>
    %468 = vector.broadcast %467 : f32 to vector<8x128xf32>
    %469 = arith.mulf %468, %40 : vector<8x128xf32>
    %470 = arith.addf %458, %469 : vector<8x128xf32>
    %c80 = arith.constant 80 : index
    %471 = memref.load %arg1[%c80] : memref<276xf32, #tpu.memory_space<smem>>
    %472 = vector.broadcast %471 : f32 to vector<8x128xf32>
    %473 = arith.mulf %472, %40 : vector<8x128xf32>
    %474 = arith.addf %462, %473 : vector<8x128xf32>
    %c128 = arith.constant 128 : index
    %475 = memref.load %arg1[%c128] : memref<276xf32, #tpu.memory_space<smem>>
    %476 = vector.broadcast %475 : f32 to vector<8x128xf32>
    %477 = arith.mulf %476, %40 : vector<8x128xf32>
    %478 = arith.addf %466, %477 : vector<8x128xf32>
    %c127_i32_71 = arith.constant 127 : i32
    %479 = tpu.dynamic_rotate %40 by %c127_i32_71 dim 1 : vector<8x128xf32>, i32 -> vector<8x128xf32>
    %c33 = arith.constant 33 : index
    %480 = memref.load %arg1[%c33] : memref<276xf32, #tpu.memory_space<smem>>
    %481 = vector.broadcast %480 : f32 to vector<8x128xf32>
    %482 = arith.mulf %481, %479 : vector<8x128xf32>
    %483 = arith.addf %470, %482 : vector<8x128xf32>
    %c81 = arith.constant 81 : index
    %484 = memref.load %arg1[%c81] : memref<276xf32, #tpu.memory_space<smem>>
    %485 = vector.broadcast %484 : f32 to vector<8x128xf32>
    %486 = arith.mulf %485, %479 : vector<8x128xf32>
    %487 = arith.addf %474, %486 : vector<8x128xf32>
    %c129 = arith.constant 129 : index
    %488 = memref.load %arg1[%c129] : memref<276xf32, #tpu.memory_space<smem>>
    %489 = vector.broadcast %488 : f32 to vector<8x128xf32>
    %490 = arith.mulf %489, %479 : vector<8x128xf32>
    %491 = arith.addf %478, %490 : vector<8x128xf32>
    %c126_i32_72 = arith.constant 126 : i32
    %492 = tpu.dynamic_rotate %40 by %c126_i32_72 dim 1 : vector<8x128xf32>, i32 -> vector<8x128xf32>
    %c34 = arith.constant 34 : index
    %493 = memref.load %arg1[%c34] : memref<276xf32, #tpu.memory_space<smem>>
    %494 = vector.broadcast %493 : f32 to vector<8x128xf32>
    %495 = arith.mulf %494, %492 : vector<8x128xf32>
    %496 = arith.addf %483, %495 : vector<8x128xf32>
    %c82 = arith.constant 82 : index
    %497 = memref.load %arg1[%c82] : memref<276xf32, #tpu.memory_space<smem>>
    %498 = vector.broadcast %497 : f32 to vector<8x128xf32>
    %499 = arith.mulf %498, %492 : vector<8x128xf32>
    %500 = arith.addf %487, %499 : vector<8x128xf32>
    %c130 = arith.constant 130 : index
    %501 = memref.load %arg1[%c130] : memref<276xf32, #tpu.memory_space<smem>>
    %502 = vector.broadcast %501 : f32 to vector<8x128xf32>
    %503 = arith.mulf %502, %492 : vector<8x128xf32>
    %504 = arith.addf %491, %503 : vector<8x128xf32>
    %c125_i32_73 = arith.constant 125 : i32
    %505 = tpu.dynamic_rotate %40 by %c125_i32_73 dim 1 : vector<8x128xf32>, i32 -> vector<8x128xf32>
    %c35 = arith.constant 35 : index
    %506 = memref.load %arg1[%c35] : memref<276xf32, #tpu.memory_space<smem>>
    %507 = vector.broadcast %506 : f32 to vector<8x128xf32>
    %508 = arith.mulf %507, %505 : vector<8x128xf32>
    %509 = arith.addf %496, %508 : vector<8x128xf32>
    %c83 = arith.constant 83 : index
    %510 = memref.load %arg1[%c83] : memref<276xf32, #tpu.memory_space<smem>>
    %511 = vector.broadcast %510 : f32 to vector<8x128xf32>
    %512 = arith.mulf %511, %505 : vector<8x128xf32>
    %513 = arith.addf %500, %512 : vector<8x128xf32>
    %c131 = arith.constant 131 : index
    %514 = memref.load %arg1[%c131] : memref<276xf32, #tpu.memory_space<smem>>
    %515 = vector.broadcast %514 : f32 to vector<8x128xf32>
    %516 = arith.mulf %515, %505 : vector<8x128xf32>
    %517 = arith.addf %504, %516 : vector<8x128xf32>
    %c7_i32_74 = arith.constant 7 : i32
    %518 = tpu.dynamic_rotate %40 by %c7_i32_74 dim 0 : vector<8x128xf32>, i32 -> vector<8x128xf32>
    %c36 = arith.constant 36 : index
    %519 = memref.load %arg1[%c36] : memref<276xf32, #tpu.memory_space<smem>>
    %520 = vector.broadcast %519 : f32 to vector<8x128xf32>
    %521 = arith.mulf %520, %518 : vector<8x128xf32>
    %522 = arith.addf %509, %521 : vector<8x128xf32>
    %c84 = arith.constant 84 : index
    %523 = memref.load %arg1[%c84] : memref<276xf32, #tpu.memory_space<smem>>
    %524 = vector.broadcast %523 : f32 to vector<8x128xf32>
    %525 = arith.mulf %524, %518 : vector<8x128xf32>
    %526 = arith.addf %513, %525 : vector<8x128xf32>
    %c132 = arith.constant 132 : index
    %527 = memref.load %arg1[%c132] : memref<276xf32, #tpu.memory_space<smem>>
    %528 = vector.broadcast %527 : f32 to vector<8x128xf32>
    %529 = arith.mulf %528, %518 : vector<8x128xf32>
    %530 = arith.addf %517, %529 : vector<8x128xf32>
    %c127_i32_75 = arith.constant 127 : i32
    %531 = tpu.dynamic_rotate %518 by %c127_i32_75 dim 1 : vector<8x128xf32>, i32 -> vector<8x128xf32>
    %c37 = arith.constant 37 : index
    %532 = memref.load %arg1[%c37] : memref<276xf32, #tpu.memory_space<smem>>
    %533 = vector.broadcast %532 : f32 to vector<8x128xf32>
    %534 = arith.mulf %533, %531 : vector<8x128xf32>
    %535 = arith.addf %522, %534 : vector<8x128xf32>
    %c85 = arith.constant 85 : index
    %536 = memref.load %arg1[%c85] : memref<276xf32, #tpu.memory_space<smem>>
    %537 = vector.broadcast %536 : f32 to vector<8x128xf32>
    %538 = arith.mulf %537, %531 : vector<8x128xf32>
    %539 = arith.addf %526, %538 : vector<8x128xf32>
    %c133 = arith.constant 133 : index
    %540 = memref.load %arg1[%c133] : memref<276xf32, #tpu.memory_space<smem>>
    %541 = vector.broadcast %540 : f32 to vector<8x128xf32>
    %542 = arith.mulf %541, %531 : vector<8x128xf32>
    %543 = arith.addf %530, %542 : vector<8x128xf32>
    %c126_i32_76 = arith.constant 126 : i32
    %544 = tpu.dynamic_rotate %518 by %c126_i32_76 dim 1 : vector<8x128xf32>, i32 -> vector<8x128xf32>
    %c38 = arith.constant 38 : index
    %545 = memref.load %arg1[%c38] : memref<276xf32, #tpu.memory_space<smem>>
    %546 = vector.broadcast %545 : f32 to vector<8x128xf32>
    %547 = arith.mulf %546, %544 : vector<8x128xf32>
    %548 = arith.addf %535, %547 : vector<8x128xf32>
    %c86 = arith.constant 86 : index
    %549 = memref.load %arg1[%c86] : memref<276xf32, #tpu.memory_space<smem>>
    %550 = vector.broadcast %549 : f32 to vector<8x128xf32>
    %551 = arith.mulf %550, %544 : vector<8x128xf32>
    %552 = arith.addf %539, %551 : vector<8x128xf32>
    %c134 = arith.constant 134 : index
    %553 = memref.load %arg1[%c134] : memref<276xf32, #tpu.memory_space<smem>>
    %554 = vector.broadcast %553 : f32 to vector<8x128xf32>
    %555 = arith.mulf %554, %544 : vector<8x128xf32>
    %556 = arith.addf %543, %555 : vector<8x128xf32>
    %c125_i32_77 = arith.constant 125 : i32
    %557 = tpu.dynamic_rotate %518 by %c125_i32_77 dim 1 : vector<8x128xf32>, i32 -> vector<8x128xf32>
    %c39 = arith.constant 39 : index
    %558 = memref.load %arg1[%c39] : memref<276xf32, #tpu.memory_space<smem>>
    %559 = vector.broadcast %558 : f32 to vector<8x128xf32>
    %560 = arith.mulf %559, %557 : vector<8x128xf32>
    %561 = arith.addf %548, %560 : vector<8x128xf32>
    %c87 = arith.constant 87 : index
    %562 = memref.load %arg1[%c87] : memref<276xf32, #tpu.memory_space<smem>>
    %563 = vector.broadcast %562 : f32 to vector<8x128xf32>
    %564 = arith.mulf %563, %557 : vector<8x128xf32>
    %565 = arith.addf %552, %564 : vector<8x128xf32>
    %c135 = arith.constant 135 : index
    %566 = memref.load %arg1[%c135] : memref<276xf32, #tpu.memory_space<smem>>
    %567 = vector.broadcast %566 : f32 to vector<8x128xf32>
    %568 = arith.mulf %567, %557 : vector<8x128xf32>
    %569 = arith.addf %556, %568 : vector<8x128xf32>
    %c6_i32_78 = arith.constant 6 : i32
    %570 = tpu.dynamic_rotate %40 by %c6_i32_78 dim 0 : vector<8x128xf32>, i32 -> vector<8x128xf32>
    %c40 = arith.constant 40 : index
    %571 = memref.load %arg1[%c40] : memref<276xf32, #tpu.memory_space<smem>>
    %572 = vector.broadcast %571 : f32 to vector<8x128xf32>
    %573 = arith.mulf %572, %570 : vector<8x128xf32>
    %574 = arith.addf %561, %573 : vector<8x128xf32>
    %c88 = arith.constant 88 : index
    %575 = memref.load %arg1[%c88] : memref<276xf32, #tpu.memory_space<smem>>
    %576 = vector.broadcast %575 : f32 to vector<8x128xf32>
    %577 = arith.mulf %576, %570 : vector<8x128xf32>
    %578 = arith.addf %565, %577 : vector<8x128xf32>
    %c136 = arith.constant 136 : index
    %579 = memref.load %arg1[%c136] : memref<276xf32, #tpu.memory_space<smem>>
    %580 = vector.broadcast %579 : f32 to vector<8x128xf32>
    %581 = arith.mulf %580, %570 : vector<8x128xf32>
    %582 = arith.addf %569, %581 : vector<8x128xf32>
    %c127_i32_79 = arith.constant 127 : i32
    %583 = tpu.dynamic_rotate %570 by %c127_i32_79 dim 1 : vector<8x128xf32>, i32 -> vector<8x128xf32>
    %c41 = arith.constant 41 : index
    %584 = memref.load %arg1[%c41] : memref<276xf32, #tpu.memory_space<smem>>
    %585 = vector.broadcast %584 : f32 to vector<8x128xf32>
    %586 = arith.mulf %585, %583 : vector<8x128xf32>
    %587 = arith.addf %574, %586 : vector<8x128xf32>
    %c89 = arith.constant 89 : index
    %588 = memref.load %arg1[%c89] : memref<276xf32, #tpu.memory_space<smem>>
    %589 = vector.broadcast %588 : f32 to vector<8x128xf32>
    %590 = arith.mulf %589, %583 : vector<8x128xf32>
    %591 = arith.addf %578, %590 : vector<8x128xf32>
    %c137 = arith.constant 137 : index
    %592 = memref.load %arg1[%c137] : memref<276xf32, #tpu.memory_space<smem>>
    %593 = vector.broadcast %592 : f32 to vector<8x128xf32>
    %594 = arith.mulf %593, %583 : vector<8x128xf32>
    %595 = arith.addf %582, %594 : vector<8x128xf32>
    %c126_i32_80 = arith.constant 126 : i32
    %596 = tpu.dynamic_rotate %570 by %c126_i32_80 dim 1 : vector<8x128xf32>, i32 -> vector<8x128xf32>
    %c42 = arith.constant 42 : index
    %597 = memref.load %arg1[%c42] : memref<276xf32, #tpu.memory_space<smem>>
    %598 = vector.broadcast %597 : f32 to vector<8x128xf32>
    %599 = arith.mulf %598, %596 : vector<8x128xf32>
    %600 = arith.addf %587, %599 : vector<8x128xf32>
    %c90 = arith.constant 90 : index
    %601 = memref.load %arg1[%c90] : memref<276xf32, #tpu.memory_space<smem>>
    %602 = vector.broadcast %601 : f32 to vector<8x128xf32>
    %603 = arith.mulf %602, %596 : vector<8x128xf32>
    %604 = arith.addf %591, %603 : vector<8x128xf32>
    %c138 = arith.constant 138 : index
    %605 = memref.load %arg1[%c138] : memref<276xf32, #tpu.memory_space<smem>>
    %606 = vector.broadcast %605 : f32 to vector<8x128xf32>
    %607 = arith.mulf %606, %596 : vector<8x128xf32>
    %608 = arith.addf %595, %607 : vector<8x128xf32>
    %c125_i32_81 = arith.constant 125 : i32
    %609 = tpu.dynamic_rotate %570 by %c125_i32_81 dim 1 : vector<8x128xf32>, i32 -> vector<8x128xf32>
    %c43 = arith.constant 43 : index
    %610 = memref.load %arg1[%c43] : memref<276xf32, #tpu.memory_space<smem>>
    %611 = vector.broadcast %610 : f32 to vector<8x128xf32>
    %612 = arith.mulf %611, %609 : vector<8x128xf32>
    %613 = arith.addf %600, %612 : vector<8x128xf32>
    %c91 = arith.constant 91 : index
    %614 = memref.load %arg1[%c91] : memref<276xf32, #tpu.memory_space<smem>>
    %615 = vector.broadcast %614 : f32 to vector<8x128xf32>
    %616 = arith.mulf %615, %609 : vector<8x128xf32>
    %617 = arith.addf %604, %616 : vector<8x128xf32>
    %c139 = arith.constant 139 : index
    %618 = memref.load %arg1[%c139] : memref<276xf32, #tpu.memory_space<smem>>
    %619 = vector.broadcast %618 : f32 to vector<8x128xf32>
    %620 = arith.mulf %619, %609 : vector<8x128xf32>
    %621 = arith.addf %608, %620 : vector<8x128xf32>
    %c5_i32_82 = arith.constant 5 : i32
    %622 = tpu.dynamic_rotate %40 by %c5_i32_82 dim 0 : vector<8x128xf32>, i32 -> vector<8x128xf32>
    %c44 = arith.constant 44 : index
    %623 = memref.load %arg1[%c44] : memref<276xf32, #tpu.memory_space<smem>>
    %624 = vector.broadcast %623 : f32 to vector<8x128xf32>
    %625 = arith.mulf %624, %622 : vector<8x128xf32>
    %626 = arith.addf %613, %625 : vector<8x128xf32>
    %c92 = arith.constant 92 : index
    %627 = memref.load %arg1[%c92] : memref<276xf32, #tpu.memory_space<smem>>
    %628 = vector.broadcast %627 : f32 to vector<8x128xf32>
    %629 = arith.mulf %628, %622 : vector<8x128xf32>
    %630 = arith.addf %617, %629 : vector<8x128xf32>
    %c140 = arith.constant 140 : index
    %631 = memref.load %arg1[%c140] : memref<276xf32, #tpu.memory_space<smem>>
    %632 = vector.broadcast %631 : f32 to vector<8x128xf32>
    %633 = arith.mulf %632, %622 : vector<8x128xf32>
    %634 = arith.addf %621, %633 : vector<8x128xf32>
    %c127_i32_83 = arith.constant 127 : i32
    %635 = tpu.dynamic_rotate %622 by %c127_i32_83 dim 1 : vector<8x128xf32>, i32 -> vector<8x128xf32>
    %c45 = arith.constant 45 : index
    %636 = memref.load %arg1[%c45] : memref<276xf32, #tpu.memory_space<smem>>
    %637 = vector.broadcast %636 : f32 to vector<8x128xf32>
    %638 = arith.mulf %637, %635 : vector<8x128xf32>
    %639 = arith.addf %626, %638 : vector<8x128xf32>
    %c93 = arith.constant 93 : index
    %640 = memref.load %arg1[%c93] : memref<276xf32, #tpu.memory_space<smem>>
    %641 = vector.broadcast %640 : f32 to vector<8x128xf32>
    %642 = arith.mulf %641, %635 : vector<8x128xf32>
    %643 = arith.addf %630, %642 : vector<8x128xf32>
    %c141 = arith.constant 141 : index
    %644 = memref.load %arg1[%c141] : memref<276xf32, #tpu.memory_space<smem>>
    %645 = vector.broadcast %644 : f32 to vector<8x128xf32>
    %646 = arith.mulf %645, %635 : vector<8x128xf32>
    %647 = arith.addf %634, %646 : vector<8x128xf32>
    %c126_i32_84 = arith.constant 126 : i32
    %648 = tpu.dynamic_rotate %622 by %c126_i32_84 dim 1 : vector<8x128xf32>, i32 -> vector<8x128xf32>
    %c46 = arith.constant 46 : index
    %649 = memref.load %arg1[%c46] : memref<276xf32, #tpu.memory_space<smem>>
    %650 = vector.broadcast %649 : f32 to vector<8x128xf32>
    %651 = arith.mulf %650, %648 : vector<8x128xf32>
    %652 = arith.addf %639, %651 : vector<8x128xf32>
    %c94 = arith.constant 94 : index
    %653 = memref.load %arg1[%c94] : memref<276xf32, #tpu.memory_space<smem>>
    %654 = vector.broadcast %653 : f32 to vector<8x128xf32>
    %655 = arith.mulf %654, %648 : vector<8x128xf32>
    %656 = arith.addf %643, %655 : vector<8x128xf32>
    %c142 = arith.constant 142 : index
    %657 = memref.load %arg1[%c142] : memref<276xf32, #tpu.memory_space<smem>>
    %658 = vector.broadcast %657 : f32 to vector<8x128xf32>
    %659 = arith.mulf %658, %648 : vector<8x128xf32>
    %660 = arith.addf %647, %659 : vector<8x128xf32>
    %c125_i32_85 = arith.constant 125 : i32
    %661 = tpu.dynamic_rotate %622 by %c125_i32_85 dim 1 : vector<8x128xf32>, i32 -> vector<8x128xf32>
    %c47 = arith.constant 47 : index
    %662 = memref.load %arg1[%c47] : memref<276xf32, #tpu.memory_space<smem>>
    %663 = vector.broadcast %662 : f32 to vector<8x128xf32>
    %664 = arith.mulf %663, %661 : vector<8x128xf32>
    %665 = arith.addf %652, %664 : vector<8x128xf32>
    %c95 = arith.constant 95 : index
    %666 = memref.load %arg1[%c95] : memref<276xf32, #tpu.memory_space<smem>>
    %667 = vector.broadcast %666 : f32 to vector<8x128xf32>
    %668 = arith.mulf %667, %661 : vector<8x128xf32>
    %669 = arith.addf %656, %668 : vector<8x128xf32>
    %c143 = arith.constant 143 : index
    %670 = memref.load %arg1[%c143] : memref<276xf32, #tpu.memory_space<smem>>
    %671 = vector.broadcast %670 : f32 to vector<8x128xf32>
    %672 = arith.mulf %671, %661 : vector<8x128xf32>
    %673 = arith.addf %660, %672 : vector<8x128xf32>
    %cst_86 = arith.constant 0.000000e+00 : f32
    %674 = vector.broadcast %cst_86 : f32 to vector<8x128xf32>
    %c228 = arith.constant 228 : index
    %675 = memref.load %arg1[%c228] : memref<276xf32, #tpu.memory_space<smem>>
    %676 = vector.broadcast %675 : f32 to vector<8x128xf32>
    %677 = arith.addf %674, %676 : vector<8x128xf32>
    %cst_87 = arith.constant 0.000000e+00 : f32
    %678 = vector.broadcast %cst_87 : f32 to vector<8x128xf32>
    %c229 = arith.constant 229 : index
    %679 = memref.load %arg1[%c229] : memref<276xf32, #tpu.memory_space<smem>>
    %680 = vector.broadcast %679 : f32 to vector<8x128xf32>
    %681 = arith.addf %678, %680 : vector<8x128xf32>
    %cst_88 = arith.constant 0.000000e+00 : f32
    %682 = vector.broadcast %cst_88 : f32 to vector<8x128xf32>
    %c230 = arith.constant 230 : index
    %683 = memref.load %arg1[%c230] : memref<276xf32, #tpu.memory_space<smem>>
    %684 = vector.broadcast %683 : f32 to vector<8x128xf32>
    %685 = arith.addf %682, %684 : vector<8x128xf32>
    %c147 = arith.constant 147 : index
    %686 = memref.load %arg1[%c147] : memref<276xf32, #tpu.memory_space<smem>>
    %687 = vector.broadcast %686 : f32 to vector<8x128xf32>
    %688 = arith.mulf %687, %665 : vector<8x128xf32>
    %689 = arith.addf %677, %688 : vector<8x128xf32>
    %c174 = arith.constant 174 : index
    %690 = memref.load %arg1[%c174] : memref<276xf32, #tpu.memory_space<smem>>
    %691 = vector.broadcast %690 : f32 to vector<8x128xf32>
    %692 = arith.mulf %691, %665 : vector<8x128xf32>
    %693 = arith.addf %681, %692 : vector<8x128xf32>
    %c201 = arith.constant 201 : index
    %694 = memref.load %arg1[%c201] : memref<276xf32, #tpu.memory_space<smem>>
    %695 = vector.broadcast %694 : f32 to vector<8x128xf32>
    %696 = arith.mulf %695, %665 : vector<8x128xf32>
    %697 = arith.addf %685, %696 : vector<8x128xf32>
    %c127_i32_89 = arith.constant 127 : i32
    %698 = tpu.dynamic_rotate %665 by %c127_i32_89 dim 1 : vector<8x128xf32>, i32 -> vector<8x128xf32>
    %c148 = arith.constant 148 : index
    %699 = memref.load %arg1[%c148] : memref<276xf32, #tpu.memory_space<smem>>
    %700 = vector.broadcast %699 : f32 to vector<8x128xf32>
    %701 = arith.mulf %700, %698 : vector<8x128xf32>
    %702 = arith.addf %689, %701 : vector<8x128xf32>
    %c175 = arith.constant 175 : index
    %703 = memref.load %arg1[%c175] : memref<276xf32, #tpu.memory_space<smem>>
    %704 = vector.broadcast %703 : f32 to vector<8x128xf32>
    %705 = arith.mulf %704, %698 : vector<8x128xf32>
    %706 = arith.addf %693, %705 : vector<8x128xf32>
    %c202 = arith.constant 202 : index
    %707 = memref.load %arg1[%c202] : memref<276xf32, #tpu.memory_space<smem>>
    %708 = vector.broadcast %707 : f32 to vector<8x128xf32>
    %709 = arith.mulf %708, %698 : vector<8x128xf32>
    %710 = arith.addf %697, %709 : vector<8x128xf32>
    %c126_i32_90 = arith.constant 126 : i32
    %711 = tpu.dynamic_rotate %665 by %c126_i32_90 dim 1 : vector<8x128xf32>, i32 -> vector<8x128xf32>
    %c149 = arith.constant 149 : index
    %712 = memref.load %arg1[%c149] : memref<276xf32, #tpu.memory_space<smem>>
    %713 = vector.broadcast %712 : f32 to vector<8x128xf32>
    %714 = arith.mulf %713, %711 : vector<8x128xf32>
    %715 = arith.addf %702, %714 : vector<8x128xf32>
    %c176 = arith.constant 176 : index
    %716 = memref.load %arg1[%c176] : memref<276xf32, #tpu.memory_space<smem>>
    %717 = vector.broadcast %716 : f32 to vector<8x128xf32>
    %718 = arith.mulf %717, %711 : vector<8x128xf32>
    %719 = arith.addf %706, %718 : vector<8x128xf32>
    %c203 = arith.constant 203 : index
    %720 = memref.load %arg1[%c203] : memref<276xf32, #tpu.memory_space<smem>>
    %721 = vector.broadcast %720 : f32 to vector<8x128xf32>
    %722 = arith.mulf %721, %711 : vector<8x128xf32>
    %723 = arith.addf %710, %722 : vector<8x128xf32>
    %c7_i32_91 = arith.constant 7 : i32
    %724 = tpu.dynamic_rotate %665 by %c7_i32_91 dim 0 : vector<8x128xf32>, i32 -> vector<8x128xf32>
    %c150 = arith.constant 150 : index
    %725 = memref.load %arg1[%c150] : memref<276xf32, #tpu.memory_space<smem>>
    %726 = vector.broadcast %725 : f32 to vector<8x128xf32>
    %727 = arith.mulf %726, %724 : vector<8x128xf32>
    %728 = arith.addf %715, %727 : vector<8x128xf32>
    %c177 = arith.constant 177 : index
    %729 = memref.load %arg1[%c177] : memref<276xf32, #tpu.memory_space<smem>>
    %730 = vector.broadcast %729 : f32 to vector<8x128xf32>
    %731 = arith.mulf %730, %724 : vector<8x128xf32>
    %732 = arith.addf %719, %731 : vector<8x128xf32>
    %c204 = arith.constant 204 : index
    %733 = memref.load %arg1[%c204] : memref<276xf32, #tpu.memory_space<smem>>
    %734 = vector.broadcast %733 : f32 to vector<8x128xf32>
    %735 = arith.mulf %734, %724 : vector<8x128xf32>
    %736 = arith.addf %723, %735 : vector<8x128xf32>
    %c127_i32_92 = arith.constant 127 : i32
    %737 = tpu.dynamic_rotate %724 by %c127_i32_92 dim 1 : vector<8x128xf32>, i32 -> vector<8x128xf32>
    %c151 = arith.constant 151 : index
    %738 = memref.load %arg1[%c151] : memref<276xf32, #tpu.memory_space<smem>>
    %739 = vector.broadcast %738 : f32 to vector<8x128xf32>
    %740 = arith.mulf %739, %737 : vector<8x128xf32>
    %741 = arith.addf %728, %740 : vector<8x128xf32>
    %c178 = arith.constant 178 : index
    %742 = memref.load %arg1[%c178] : memref<276xf32, #tpu.memory_space<smem>>
    %743 = vector.broadcast %742 : f32 to vector<8x128xf32>
    %744 = arith.mulf %743, %737 : vector<8x128xf32>
    %745 = arith.addf %732, %744 : vector<8x128xf32>
    %c205 = arith.constant 205 : index
    %746 = memref.load %arg1[%c205] : memref<276xf32, #tpu.memory_space<smem>>
    %747 = vector.broadcast %746 : f32 to vector<8x128xf32>
    %748 = arith.mulf %747, %737 : vector<8x128xf32>
    %749 = arith.addf %736, %748 : vector<8x128xf32>
    %c126_i32_93 = arith.constant 126 : i32
    %750 = tpu.dynamic_rotate %724 by %c126_i32_93 dim 1 : vector<8x128xf32>, i32 -> vector<8x128xf32>
    %c152 = arith.constant 152 : index
    %751 = memref.load %arg1[%c152] : memref<276xf32, #tpu.memory_space<smem>>
    %752 = vector.broadcast %751 : f32 to vector<8x128xf32>
    %753 = arith.mulf %752, %750 : vector<8x128xf32>
    %754 = arith.addf %741, %753 : vector<8x128xf32>
    %c179 = arith.constant 179 : index
    %755 = memref.load %arg1[%c179] : memref<276xf32, #tpu.memory_space<smem>>
    %756 = vector.broadcast %755 : f32 to vector<8x128xf32>
    %757 = arith.mulf %756, %750 : vector<8x128xf32>
    %758 = arith.addf %745, %757 : vector<8x128xf32>
    %c206 = arith.constant 206 : index
    %759 = memref.load %arg1[%c206] : memref<276xf32, #tpu.memory_space<smem>>
    %760 = vector.broadcast %759 : f32 to vector<8x128xf32>
    %761 = arith.mulf %760, %750 : vector<8x128xf32>
    %762 = arith.addf %749, %761 : vector<8x128xf32>
    %c6_i32_94 = arith.constant 6 : i32
    %763 = tpu.dynamic_rotate %665 by %c6_i32_94 dim 0 : vector<8x128xf32>, i32 -> vector<8x128xf32>
    %c153 = arith.constant 153 : index
    %764 = memref.load %arg1[%c153] : memref<276xf32, #tpu.memory_space<smem>>
    %765 = vector.broadcast %764 : f32 to vector<8x128xf32>
    %766 = arith.mulf %765, %763 : vector<8x128xf32>
    %767 = arith.addf %754, %766 : vector<8x128xf32>
    %c180 = arith.constant 180 : index
    %768 = memref.load %arg1[%c180] : memref<276xf32, #tpu.memory_space<smem>>
    %769 = vector.broadcast %768 : f32 to vector<8x128xf32>
    %770 = arith.mulf %769, %763 : vector<8x128xf32>
    %771 = arith.addf %758, %770 : vector<8x128xf32>
    %c207 = arith.constant 207 : index
    %772 = memref.load %arg1[%c207] : memref<276xf32, #tpu.memory_space<smem>>
    %773 = vector.broadcast %772 : f32 to vector<8x128xf32>
    %774 = arith.mulf %773, %763 : vector<8x128xf32>
    %775 = arith.addf %762, %774 : vector<8x128xf32>
    %c127_i32_95 = arith.constant 127 : i32
    %776 = tpu.dynamic_rotate %763 by %c127_i32_95 dim 1 : vector<8x128xf32>, i32 -> vector<8x128xf32>
    %c154 = arith.constant 154 : index
    %777 = memref.load %arg1[%c154] : memref<276xf32, #tpu.memory_space<smem>>
    %778 = vector.broadcast %777 : f32 to vector<8x128xf32>
    %779 = arith.mulf %778, %776 : vector<8x128xf32>
    %780 = arith.addf %767, %779 : vector<8x128xf32>
    %c181 = arith.constant 181 : index
    %781 = memref.load %arg1[%c181] : memref<276xf32, #tpu.memory_space<smem>>
    %782 = vector.broadcast %781 : f32 to vector<8x128xf32>
    %783 = arith.mulf %782, %776 : vector<8x128xf32>
    %784 = arith.addf %771, %783 : vector<8x128xf32>
    %c208 = arith.constant 208 : index
    %785 = memref.load %arg1[%c208] : memref<276xf32, #tpu.memory_space<smem>>
    %786 = vector.broadcast %785 : f32 to vector<8x128xf32>
    %787 = arith.mulf %786, %776 : vector<8x128xf32>
    %788 = arith.addf %775, %787 : vector<8x128xf32>
    %c126_i32_96 = arith.constant 126 : i32
    %789 = tpu.dynamic_rotate %763 by %c126_i32_96 dim 1 : vector<8x128xf32>, i32 -> vector<8x128xf32>
    %c155 = arith.constant 155 : index
    %790 = memref.load %arg1[%c155] : memref<276xf32, #tpu.memory_space<smem>>
    %791 = vector.broadcast %790 : f32 to vector<8x128xf32>
    %792 = arith.mulf %791, %789 : vector<8x128xf32>
    %793 = arith.addf %780, %792 : vector<8x128xf32>
    %c182 = arith.constant 182 : index
    %794 = memref.load %arg1[%c182] : memref<276xf32, #tpu.memory_space<smem>>
    %795 = vector.broadcast %794 : f32 to vector<8x128xf32>
    %796 = arith.mulf %795, %789 : vector<8x128xf32>
    %797 = arith.addf %784, %796 : vector<8x128xf32>
    %c209 = arith.constant 209 : index
    %798 = memref.load %arg1[%c209] : memref<276xf32, #tpu.memory_space<smem>>
    %799 = vector.broadcast %798 : f32 to vector<8x128xf32>
    %800 = arith.mulf %799, %789 : vector<8x128xf32>
    %801 = arith.addf %788, %800 : vector<8x128xf32>
    %c156 = arith.constant 156 : index
    %802 = memref.load %arg1[%c156] : memref<276xf32, #tpu.memory_space<smem>>
    %803 = vector.broadcast %802 : f32 to vector<8x128xf32>
    %804 = arith.mulf %803, %669 : vector<8x128xf32>
    %805 = arith.addf %793, %804 : vector<8x128xf32>
    %c183 = arith.constant 183 : index
    %806 = memref.load %arg1[%c183] : memref<276xf32, #tpu.memory_space<smem>>
    %807 = vector.broadcast %806 : f32 to vector<8x128xf32>
    %808 = arith.mulf %807, %669 : vector<8x128xf32>
    %809 = arith.addf %797, %808 : vector<8x128xf32>
    %c210 = arith.constant 210 : index
    %810 = memref.load %arg1[%c210] : memref<276xf32, #tpu.memory_space<smem>>
    %811 = vector.broadcast %810 : f32 to vector<8x128xf32>
    %812 = arith.mulf %811, %669 : vector<8x128xf32>
    %813 = arith.addf %801, %812 : vector<8x128xf32>
    %c127_i32_97 = arith.constant 127 : i32
    %814 = tpu.dynamic_rotate %669 by %c127_i32_97 dim 1 : vector<8x128xf32>, i32 -> vector<8x128xf32>
    %c157 = arith.constant 157 : index
    %815 = memref.load %arg1[%c157] : memref<276xf32, #tpu.memory_space<smem>>
    %816 = vector.broadcast %815 : f32 to vector<8x128xf32>
    %817 = arith.mulf %816, %814 : vector<8x128xf32>
    %818 = arith.addf %805, %817 : vector<8x128xf32>
    %c184 = arith.constant 184 : index
    %819 = memref.load %arg1[%c184] : memref<276xf32, #tpu.memory_space<smem>>
    %820 = vector.broadcast %819 : f32 to vector<8x128xf32>
    %821 = arith.mulf %820, %814 : vector<8x128xf32>
    %822 = arith.addf %809, %821 : vector<8x128xf32>
    %c211 = arith.constant 211 : index
    %823 = memref.load %arg1[%c211] : memref<276xf32, #tpu.memory_space<smem>>
    %824 = vector.broadcast %823 : f32 to vector<8x128xf32>
    %825 = arith.mulf %824, %814 : vector<8x128xf32>
    %826 = arith.addf %813, %825 : vector<8x128xf32>
    %c126_i32_98 = arith.constant 126 : i32
    %827 = tpu.dynamic_rotate %669 by %c126_i32_98 dim 1 : vector<8x128xf32>, i32 -> vector<8x128xf32>
    %c158 = arith.constant 158 : index
    %828 = memref.load %arg1[%c158] : memref<276xf32, #tpu.memory_space<smem>>
    %829 = vector.broadcast %828 : f32 to vector<8x128xf32>
    %830 = arith.mulf %829, %827 : vector<8x128xf32>
    %831 = arith.addf %818, %830 : vector<8x128xf32>
    %c185 = arith.constant 185 : index
    %832 = memref.load %arg1[%c185] : memref<276xf32, #tpu.memory_space<smem>>
    %833 = vector.broadcast %832 : f32 to vector<8x128xf32>
    %834 = arith.mulf %833, %827 : vector<8x128xf32>
    %835 = arith.addf %822, %834 : vector<8x128xf32>
    %c212 = arith.constant 212 : index
    %836 = memref.load %arg1[%c212] : memref<276xf32, #tpu.memory_space<smem>>
    %837 = vector.broadcast %836 : f32 to vector<8x128xf32>
    %838 = arith.mulf %837, %827 : vector<8x128xf32>
    %839 = arith.addf %826, %838 : vector<8x128xf32>
    %c7_i32_99 = arith.constant 7 : i32
    %840 = tpu.dynamic_rotate %669 by %c7_i32_99 dim 0 : vector<8x128xf32>, i32 -> vector<8x128xf32>
    %c159 = arith.constant 159 : index
    %841 = memref.load %arg1[%c159] : memref<276xf32, #tpu.memory_space<smem>>
    %842 = vector.broadcast %841 : f32 to vector<8x128xf32>
    %843 = arith.mulf %842, %840 : vector<8x128xf32>
    %844 = arith.addf %831, %843 : vector<8x128xf32>
    %c186 = arith.constant 186 : index
    %845 = memref.load %arg1[%c186] : memref<276xf32, #tpu.memory_space<smem>>
    %846 = vector.broadcast %845 : f32 to vector<8x128xf32>
    %847 = arith.mulf %846, %840 : vector<8x128xf32>
    %848 = arith.addf %835, %847 : vector<8x128xf32>
    %c213 = arith.constant 213 : index
    %849 = memref.load %arg1[%c213] : memref<276xf32, #tpu.memory_space<smem>>
    %850 = vector.broadcast %849 : f32 to vector<8x128xf32>
    %851 = arith.mulf %850, %840 : vector<8x128xf32>
    %852 = arith.addf %839, %851 : vector<8x128xf32>
    %c127_i32_100 = arith.constant 127 : i32
    %853 = tpu.dynamic_rotate %840 by %c127_i32_100 dim 1 : vector<8x128xf32>, i32 -> vector<8x128xf32>
    %c160 = arith.constant 160 : index
    %854 = memref.load %arg1[%c160] : memref<276xf32, #tpu.memory_space<smem>>
    %855 = vector.broadcast %854 : f32 to vector<8x128xf32>
    %856 = arith.mulf %855, %853 : vector<8x128xf32>
    %857 = arith.addf %844, %856 : vector<8x128xf32>
    %c187 = arith.constant 187 : index
    %858 = memref.load %arg1[%c187] : memref<276xf32, #tpu.memory_space<smem>>
    %859 = vector.broadcast %858 : f32 to vector<8x128xf32>
    %860 = arith.mulf %859, %853 : vector<8x128xf32>
    %861 = arith.addf %848, %860 : vector<8x128xf32>
    %c214 = arith.constant 214 : index
    %862 = memref.load %arg1[%c214] : memref<276xf32, #tpu.memory_space<smem>>
    %863 = vector.broadcast %862 : f32 to vector<8x128xf32>
    %864 = arith.mulf %863, %853 : vector<8x128xf32>
    %865 = arith.addf %852, %864 : vector<8x128xf32>
    %c126_i32_101 = arith.constant 126 : i32
    %866 = tpu.dynamic_rotate %840 by %c126_i32_101 dim 1 : vector<8x128xf32>, i32 -> vector<8x128xf32>
    %c161 = arith.constant 161 : index
    %867 = memref.load %arg1[%c161] : memref<276xf32, #tpu.memory_space<smem>>
    %868 = vector.broadcast %867 : f32 to vector<8x128xf32>
    %869 = arith.mulf %868, %866 : vector<8x128xf32>
    %870 = arith.addf %857, %869 : vector<8x128xf32>
    %c188 = arith.constant 188 : index
    %871 = memref.load %arg1[%c188] : memref<276xf32, #tpu.memory_space<smem>>
    %872 = vector.broadcast %871 : f32 to vector<8x128xf32>
    %873 = arith.mulf %872, %866 : vector<8x128xf32>
    %874 = arith.addf %861, %873 : vector<8x128xf32>
    %c215 = arith.constant 215 : index
    %875 = memref.load %arg1[%c215] : memref<276xf32, #tpu.memory_space<smem>>
    %876 = vector.broadcast %875 : f32 to vector<8x128xf32>
    %877 = arith.mulf %876, %866 : vector<8x128xf32>
    %878 = arith.addf %865, %877 : vector<8x128xf32>
    %c6_i32_102 = arith.constant 6 : i32
    %879 = tpu.dynamic_rotate %669 by %c6_i32_102 dim 0 : vector<8x128xf32>, i32 -> vector<8x128xf32>
    %c162 = arith.constant 162 : index
    %880 = memref.load %arg1[%c162] : memref<276xf32, #tpu.memory_space<smem>>
    %881 = vector.broadcast %880 : f32 to vector<8x128xf32>
    %882 = arith.mulf %881, %879 : vector<8x128xf32>
    %883 = arith.addf %870, %882 : vector<8x128xf32>
    %c189 = arith.constant 189 : index
    %884 = memref.load %arg1[%c189] : memref<276xf32, #tpu.memory_space<smem>>
    %885 = vector.broadcast %884 : f32 to vector<8x128xf32>
    %886 = arith.mulf %885, %879 : vector<8x128xf32>
    %887 = arith.addf %874, %886 : vector<8x128xf32>
    %c216 = arith.constant 216 : index
    %888 = memref.load %arg1[%c216] : memref<276xf32, #tpu.memory_space<smem>>
    %889 = vector.broadcast %888 : f32 to vector<8x128xf32>
    %890 = arith.mulf %889, %879 : vector<8x128xf32>
    %891 = arith.addf %878, %890 : vector<8x128xf32>
    %c127_i32_103 = arith.constant 127 : i32
    %892 = tpu.dynamic_rotate %879 by %c127_i32_103 dim 1 : vector<8x128xf32>, i32 -> vector<8x128xf32>
    %c163 = arith.constant 163 : index
    %893 = memref.load %arg1[%c163] : memref<276xf32, #tpu.memory_space<smem>>
    %894 = vector.broadcast %893 : f32 to vector<8x128xf32>
    %895 = arith.mulf %894, %892 : vector<8x128xf32>
    %896 = arith.addf %883, %895 : vector<8x128xf32>
    %c190 = arith.constant 190 : index
    %897 = memref.load %arg1[%c190] : memref<276xf32, #tpu.memory_space<smem>>
    %898 = vector.broadcast %897 : f32 to vector<8x128xf32>
    %899 = arith.mulf %898, %892 : vector<8x128xf32>
    %900 = arith.addf %887, %899 : vector<8x128xf32>
    %c217 = arith.constant 217 : index
    %901 = memref.load %arg1[%c217] : memref<276xf32, #tpu.memory_space<smem>>
    %902 = vector.broadcast %901 : f32 to vector<8x128xf32>
    %903 = arith.mulf %902, %892 : vector<8x128xf32>
    %904 = arith.addf %891, %903 : vector<8x128xf32>
    %c126_i32_104 = arith.constant 126 : i32
    %905 = tpu.dynamic_rotate %879 by %c126_i32_104 dim 1 : vector<8x128xf32>, i32 -> vector<8x128xf32>
    %c164 = arith.constant 164 : index
    %906 = memref.load %arg1[%c164] : memref<276xf32, #tpu.memory_space<smem>>
    %907 = vector.broadcast %906 : f32 to vector<8x128xf32>
    %908 = arith.mulf %907, %905 : vector<8x128xf32>
    %909 = arith.addf %896, %908 : vector<8x128xf32>
    %c191 = arith.constant 191 : index
    %910 = memref.load %arg1[%c191] : memref<276xf32, #tpu.memory_space<smem>>
    %911 = vector.broadcast %910 : f32 to vector<8x128xf32>
    %912 = arith.mulf %911, %905 : vector<8x128xf32>
    %913 = arith.addf %900, %912 : vector<8x128xf32>
    %c218 = arith.constant 218 : index
    %914 = memref.load %arg1[%c218] : memref<276xf32, #tpu.memory_space<smem>>
    %915 = vector.broadcast %914 : f32 to vector<8x128xf32>
    %916 = arith.mulf %915, %905 : vector<8x128xf32>
    %917 = arith.addf %904, %916 : vector<8x128xf32>
    %c165 = arith.constant 165 : index
    %918 = memref.load %arg1[%c165] : memref<276xf32, #tpu.memory_space<smem>>
    %919 = vector.broadcast %918 : f32 to vector<8x128xf32>
    %920 = arith.mulf %919, %673 : vector<8x128xf32>
    %921 = arith.addf %909, %920 : vector<8x128xf32>
    %c192 = arith.constant 192 : index
    %922 = memref.load %arg1[%c192] : memref<276xf32, #tpu.memory_space<smem>>
    %923 = vector.broadcast %922 : f32 to vector<8x128xf32>
    %924 = arith.mulf %923, %673 : vector<8x128xf32>
    %925 = arith.addf %913, %924 : vector<8x128xf32>
    %c219 = arith.constant 219 : index
    %926 = memref.load %arg1[%c219] : memref<276xf32, #tpu.memory_space<smem>>
    %927 = vector.broadcast %926 : f32 to vector<8x128xf32>
    %928 = arith.mulf %927, %673 : vector<8x128xf32>
    %929 = arith.addf %917, %928 : vector<8x128xf32>
    %c127_i32_105 = arith.constant 127 : i32
    %930 = tpu.dynamic_rotate %673 by %c127_i32_105 dim 1 : vector<8x128xf32>, i32 -> vector<8x128xf32>
    %c166 = arith.constant 166 : index
    %931 = memref.load %arg1[%c166] : memref<276xf32, #tpu.memory_space<smem>>
    %932 = vector.broadcast %931 : f32 to vector<8x128xf32>
    %933 = arith.mulf %932, %930 : vector<8x128xf32>
    %934 = arith.addf %921, %933 : vector<8x128xf32>
    %c193 = arith.constant 193 : index
    %935 = memref.load %arg1[%c193] : memref<276xf32, #tpu.memory_space<smem>>
    %936 = vector.broadcast %935 : f32 to vector<8x128xf32>
    %937 = arith.mulf %936, %930 : vector<8x128xf32>
    %938 = arith.addf %925, %937 : vector<8x128xf32>
    %c220 = arith.constant 220 : index
    %939 = memref.load %arg1[%c220] : memref<276xf32, #tpu.memory_space<smem>>
    %940 = vector.broadcast %939 : f32 to vector<8x128xf32>
    %941 = arith.mulf %940, %930 : vector<8x128xf32>
    %942 = arith.addf %929, %941 : vector<8x128xf32>
    %c126_i32_106 = arith.constant 126 : i32
    %943 = tpu.dynamic_rotate %673 by %c126_i32_106 dim 1 : vector<8x128xf32>, i32 -> vector<8x128xf32>
    %c167 = arith.constant 167 : index
    %944 = memref.load %arg1[%c167] : memref<276xf32, #tpu.memory_space<smem>>
    %945 = vector.broadcast %944 : f32 to vector<8x128xf32>
    %946 = arith.mulf %945, %943 : vector<8x128xf32>
    %947 = arith.addf %934, %946 : vector<8x128xf32>
    %c194 = arith.constant 194 : index
    %948 = memref.load %arg1[%c194] : memref<276xf32, #tpu.memory_space<smem>>
    %949 = vector.broadcast %948 : f32 to vector<8x128xf32>
    %950 = arith.mulf %949, %943 : vector<8x128xf32>
    %951 = arith.addf %938, %950 : vector<8x128xf32>
    %c221 = arith.constant 221 : index
    %952 = memref.load %arg1[%c221] : memref<276xf32, #tpu.memory_space<smem>>
    %953 = vector.broadcast %952 : f32 to vector<8x128xf32>
    %954 = arith.mulf %953, %943 : vector<8x128xf32>
    %955 = arith.addf %942, %954 : vector<8x128xf32>
    %c7_i32_107 = arith.constant 7 : i32
    %956 = tpu.dynamic_rotate %673 by %c7_i32_107 dim 0 : vector<8x128xf32>, i32 -> vector<8x128xf32>
    %c168 = arith.constant 168 : index
    %957 = memref.load %arg1[%c168] : memref<276xf32, #tpu.memory_space<smem>>
    %958 = vector.broadcast %957 : f32 to vector<8x128xf32>
    %959 = arith.mulf %958, %956 : vector<8x128xf32>
    %960 = arith.addf %947, %959 : vector<8x128xf32>
    %c195 = arith.constant 195 : index
    %961 = memref.load %arg1[%c195] : memref<276xf32, #tpu.memory_space<smem>>
    %962 = vector.broadcast %961 : f32 to vector<8x128xf32>
    %963 = arith.mulf %962, %956 : vector<8x128xf32>
    %964 = arith.addf %951, %963 : vector<8x128xf32>
    %c222 = arith.constant 222 : index
    %965 = memref.load %arg1[%c222] : memref<276xf32, #tpu.memory_space<smem>>
    %966 = vector.broadcast %965 : f32 to vector<8x128xf32>
    %967 = arith.mulf %966, %956 : vector<8x128xf32>
    %968 = arith.addf %955, %967 : vector<8x128xf32>
    %c127_i32_108 = arith.constant 127 : i32
    %969 = tpu.dynamic_rotate %956 by %c127_i32_108 dim 1 : vector<8x128xf32>, i32 -> vector<8x128xf32>
    %c169 = arith.constant 169 : index
    %970 = memref.load %arg1[%c169] : memref<276xf32, #tpu.memory_space<smem>>
    %971 = vector.broadcast %970 : f32 to vector<8x128xf32>
    %972 = arith.mulf %971, %969 : vector<8x128xf32>
    %973 = arith.addf %960, %972 : vector<8x128xf32>
    %c196 = arith.constant 196 : index
    %974 = memref.load %arg1[%c196] : memref<276xf32, #tpu.memory_space<smem>>
    %975 = vector.broadcast %974 : f32 to vector<8x128xf32>
    %976 = arith.mulf %975, %969 : vector<8x128xf32>
    %977 = arith.addf %964, %976 : vector<8x128xf32>
    %c223 = arith.constant 223 : index
    %978 = memref.load %arg1[%c223] : memref<276xf32, #tpu.memory_space<smem>>
    %979 = vector.broadcast %978 : f32 to vector<8x128xf32>
    %980 = arith.mulf %979, %969 : vector<8x128xf32>
    %981 = arith.addf %968, %980 : vector<8x128xf32>
    %c126_i32_109 = arith.constant 126 : i32
    %982 = tpu.dynamic_rotate %956 by %c126_i32_109 dim 1 : vector<8x128xf32>, i32 -> vector<8x128xf32>
    %c170 = arith.constant 170 : index
    %983 = memref.load %arg1[%c170] : memref<276xf32, #tpu.memory_space<smem>>
    %984 = vector.broadcast %983 : f32 to vector<8x128xf32>
    %985 = arith.mulf %984, %982 : vector<8x128xf32>
    %986 = arith.addf %973, %985 : vector<8x128xf32>
    %c197 = arith.constant 197 : index
    %987 = memref.load %arg1[%c197] : memref<276xf32, #tpu.memory_space<smem>>
    %988 = vector.broadcast %987 : f32 to vector<8x128xf32>
    %989 = arith.mulf %988, %982 : vector<8x128xf32>
    %990 = arith.addf %977, %989 : vector<8x128xf32>
    %c224 = arith.constant 224 : index
    %991 = memref.load %arg1[%c224] : memref<276xf32, #tpu.memory_space<smem>>
    %992 = vector.broadcast %991 : f32 to vector<8x128xf32>
    %993 = arith.mulf %992, %982 : vector<8x128xf32>
    %994 = arith.addf %981, %993 : vector<8x128xf32>
    %c6_i32_110 = arith.constant 6 : i32
    %995 = tpu.dynamic_rotate %673 by %c6_i32_110 dim 0 : vector<8x128xf32>, i32 -> vector<8x128xf32>
    %c171 = arith.constant 171 : index
    %996 = memref.load %arg1[%c171] : memref<276xf32, #tpu.memory_space<smem>>
    %997 = vector.broadcast %996 : f32 to vector<8x128xf32>
    %998 = arith.mulf %997, %995 : vector<8x128xf32>
    %999 = arith.addf %986, %998 : vector<8x128xf32>
    %c198 = arith.constant 198 : index
    %1000 = memref.load %arg1[%c198] : memref<276xf32, #tpu.memory_space<smem>>
    %1001 = vector.broadcast %1000 : f32 to vector<8x128xf32>
    %1002 = arith.mulf %1001, %995 : vector<8x128xf32>
    %1003 = arith.addf %990, %1002 : vector<8x128xf32>
    %c225 = arith.constant 225 : index
    %1004 = memref.load %arg1[%c225] : memref<276xf32, #tpu.memory_space<smem>>
    %1005 = vector.broadcast %1004 : f32 to vector<8x128xf32>
    %1006 = arith.mulf %1005, %995 : vector<8x128xf32>
    %1007 = arith.addf %994, %1006 : vector<8x128xf32>
    %c127_i32_111 = arith.constant 127 : i32
    %1008 = tpu.dynamic_rotate %995 by %c127_i32_111 dim 1 : vector<8x128xf32>, i32 -> vector<8x128xf32>
    %c172 = arith.constant 172 : index
    %1009 = memref.load %arg1[%c172] : memref<276xf32, #tpu.memory_space<smem>>
    %1010 = vector.broadcast %1009 : f32 to vector<8x128xf32>
    %1011 = arith.mulf %1010, %1008 : vector<8x128xf32>
    %1012 = arith.addf %999, %1011 : vector<8x128xf32>
    %c199 = arith.constant 199 : index
    %1013 = memref.load %arg1[%c199] : memref<276xf32, #tpu.memory_space<smem>>
    %1014 = vector.broadcast %1013 : f32 to vector<8x128xf32>
    %1015 = arith.mulf %1014, %1008 : vector<8x128xf32>
    %1016 = arith.addf %1003, %1015 : vector<8x128xf32>
    %c226 = arith.constant 226 : index
    %1017 = memref.load %arg1[%c226] : memref<276xf32, #tpu.memory_space<smem>>
    %1018 = vector.broadcast %1017 : f32 to vector<8x128xf32>
    %1019 = arith.mulf %1018, %1008 : vector<8x128xf32>
    %1020 = arith.addf %1007, %1019 : vector<8x128xf32>
    %c126_i32_112 = arith.constant 126 : i32
    %1021 = tpu.dynamic_rotate %995 by %c126_i32_112 dim 1 : vector<8x128xf32>, i32 -> vector<8x128xf32>
    %c173 = arith.constant 173 : index
    %1022 = memref.load %arg1[%c173] : memref<276xf32, #tpu.memory_space<smem>>
    %1023 = vector.broadcast %1022 : f32 to vector<8x128xf32>
    %1024 = arith.mulf %1023, %1021 : vector<8x128xf32>
    %1025 = arith.addf %1012, %1024 : vector<8x128xf32>
    %c200 = arith.constant 200 : index
    %1026 = memref.load %arg1[%c200] : memref<276xf32, #tpu.memory_space<smem>>
    %1027 = vector.broadcast %1026 : f32 to vector<8x128xf32>
    %1028 = arith.mulf %1027, %1021 : vector<8x128xf32>
    %1029 = arith.addf %1016, %1028 : vector<8x128xf32>
    %c227 = arith.constant 227 : index
    %1030 = memref.load %arg1[%c227] : memref<276xf32, #tpu.memory_space<smem>>
    %1031 = vector.broadcast %1030 : f32 to vector<8x128xf32>
    %1032 = arith.mulf %1031, %1021 : vector<8x128xf32>
    %1033 = arith.addf %1020, %1032 : vector<8x128xf32>
    %c1_i32_113 = arith.constant 1 : i32
    %1034 = tpu.dynamic_rotate %1025 by %c1_i32_113 dim 0 : vector<8x128xf32>, i32 -> vector<8x128xf32>
    %c1_i32_114 = arith.constant 1 : i32
    %1035 = tpu.dynamic_rotate %1034 by %c1_i32_114 dim 1 : vector<8x128xf32>, i32 -> vector<8x128xf32>
    %cst_115 = arith.constant 0.000000e+00 : f32
    %1036 = vector.broadcast %cst_115 : f32 to vector<8x128xf32>
    %1037 = arith.select %12, %1035, %1036 : vector<8x128xi1>, vector<8x128xf32>
    %c1_i32_116 = arith.constant 1 : i32
    %1038 = tpu.dynamic_rotate %1029 by %c1_i32_116 dim 0 : vector<8x128xf32>, i32 -> vector<8x128xf32>
    %c1_i32_117 = arith.constant 1 : i32
    %1039 = tpu.dynamic_rotate %1038 by %c1_i32_117 dim 1 : vector<8x128xf32>, i32 -> vector<8x128xf32>
    %cst_118 = arith.constant 0.000000e+00 : f32
    %1040 = vector.broadcast %cst_118 : f32 to vector<8x128xf32>
    %1041 = arith.select %12, %1039, %1040 : vector<8x128xi1>, vector<8x128xf32>
    %c1_i32_119 = arith.constant 1 : i32
    %1042 = tpu.dynamic_rotate %1033 by %c1_i32_119 dim 0 : vector<8x128xf32>, i32 -> vector<8x128xf32>
    %c1_i32_120 = arith.constant 1 : i32
    %1043 = tpu.dynamic_rotate %1042 by %c1_i32_120 dim 1 : vector<8x128xf32>, i32 -> vector<8x128xf32>
    %cst_121 = arith.constant 0.000000e+00 : f32
    %1044 = vector.broadcast %cst_121 : f32 to vector<8x128xf32>
    %1045 = arith.select %12, %1043, %1044 : vector<8x128xi1>, vector<8x128xf32>
    %cst_122 = arith.constant 0.000000e+00 : f32
    %1046 = vector.broadcast %cst_122 : f32 to vector<8x128xf32>
    %c267 = arith.constant 267 : index
    %1047 = memref.load %arg1[%c267] : memref<276xf32, #tpu.memory_space<smem>>
    %1048 = vector.broadcast %1047 : f32 to vector<8x128xf32>
    %1049 = arith.addf %1046, %1048 : vector<8x128xf32>
    %cst_123 = arith.constant 0.000000e+00 : f32
    %1050 = vector.broadcast %cst_123 : f32 to vector<8x128xf32>
    %c268 = arith.constant 268 : index
    %1051 = memref.load %arg1[%c268] : memref<276xf32, #tpu.memory_space<smem>>
    %1052 = vector.broadcast %1051 : f32 to vector<8x128xf32>
    %1053 = arith.addf %1050, %1052 : vector<8x128xf32>
    %cst_124 = arith.constant 0.000000e+00 : f32
    %1054 = vector.broadcast %cst_124 : f32 to vector<8x128xf32>
    %c269 = arith.constant 269 : index
    %1055 = memref.load %arg1[%c269] : memref<276xf32, #tpu.memory_space<smem>>
    %1056 = vector.broadcast %1055 : f32 to vector<8x128xf32>
    %1057 = arith.addf %1054, %1056 : vector<8x128xf32>
    %c231 = arith.constant 231 : index
    %1058 = memref.load %arg1[%c231] : memref<276xf32, #tpu.memory_space<smem>>
    %1059 = vector.broadcast %1058 : f32 to vector<8x128xf32>
    %1060 = arith.mulf %1059, %1037 : vector<8x128xf32>
    %1061 = arith.addf %1049, %1060 : vector<8x128xf32>
    %c243 = arith.constant 243 : index
    %1062 = memref.load %arg1[%c243] : memref<276xf32, #tpu.memory_space<smem>>
    %1063 = vector.broadcast %1062 : f32 to vector<8x128xf32>
    %1064 = arith.mulf %1063, %1037 : vector<8x128xf32>
    %1065 = arith.addf %1053, %1064 : vector<8x128xf32>
    %c255 = arith.constant 255 : index
    %1066 = memref.load %arg1[%c255] : memref<276xf32, #tpu.memory_space<smem>>
    %1067 = vector.broadcast %1066 : f32 to vector<8x128xf32>
    %1068 = arith.mulf %1067, %1037 : vector<8x128xf32>
    %1069 = arith.addf %1057, %1068 : vector<8x128xf32>
    %c127_i32_125 = arith.constant 127 : i32
    %1070 = tpu.dynamic_rotate %1037 by %c127_i32_125 dim 1 : vector<8x128xf32>, i32 -> vector<8x128xf32>
    %c232 = arith.constant 232 : index
    %1071 = memref.load %arg1[%c232] : memref<276xf32, #tpu.memory_space<smem>>
    %1072 = vector.broadcast %1071 : f32 to vector<8x128xf32>
    %1073 = arith.mulf %1072, %1070 : vector<8x128xf32>
    %1074 = arith.addf %1061, %1073 : vector<8x128xf32>
    %c244 = arith.constant 244 : index
    %1075 = memref.load %arg1[%c244] : memref<276xf32, #tpu.memory_space<smem>>
    %1076 = vector.broadcast %1075 : f32 to vector<8x128xf32>
    %1077 = arith.mulf %1076, %1070 : vector<8x128xf32>
    %1078 = arith.addf %1065, %1077 : vector<8x128xf32>
    %c256 = arith.constant 256 : index
    %1079 = memref.load %arg1[%c256] : memref<276xf32, #tpu.memory_space<smem>>
    %1080 = vector.broadcast %1079 : f32 to vector<8x128xf32>
    %1081 = arith.mulf %1080, %1070 : vector<8x128xf32>
    %1082 = arith.addf %1069, %1081 : vector<8x128xf32>
    %c7_i32_126 = arith.constant 7 : i32
    %1083 = tpu.dynamic_rotate %1037 by %c7_i32_126 dim 0 : vector<8x128xf32>, i32 -> vector<8x128xf32>
    %c233 = arith.constant 233 : index
    %1084 = memref.load %arg1[%c233] : memref<276xf32, #tpu.memory_space<smem>>
    %1085 = vector.broadcast %1084 : f32 to vector<8x128xf32>
    %1086 = arith.mulf %1085, %1083 : vector<8x128xf32>
    %1087 = arith.addf %1074, %1086 : vector<8x128xf32>
    %c245 = arith.constant 245 : index
    %1088 = memref.load %arg1[%c245] : memref<276xf32, #tpu.memory_space<smem>>
    %1089 = vector.broadcast %1088 : f32 to vector<8x128xf32>
    %1090 = arith.mulf %1089, %1083 : vector<8x128xf32>
    %1091 = arith.addf %1078, %1090 : vector<8x128xf32>
    %c257 = arith.constant 257 : index
    %1092 = memref.load %arg1[%c257] : memref<276xf32, #tpu.memory_space<smem>>
    %1093 = vector.broadcast %1092 : f32 to vector<8x128xf32>
    %1094 = arith.mulf %1093, %1083 : vector<8x128xf32>
    %1095 = arith.addf %1082, %1094 : vector<8x128xf32>
    %c127_i32_127 = arith.constant 127 : i32
    %1096 = tpu.dynamic_rotate %1083 by %c127_i32_127 dim 1 : vector<8x128xf32>, i32 -> vector<8x128xf32>
    %c234 = arith.constant 234 : index
    %1097 = memref.load %arg1[%c234] : memref<276xf32, #tpu.memory_space<smem>>
    %1098 = vector.broadcast %1097 : f32 to vector<8x128xf32>
    %1099 = arith.mulf %1098, %1096 : vector<8x128xf32>
    %1100 = arith.addf %1087, %1099 : vector<8x128xf32>
    %c246 = arith.constant 246 : index
    %1101 = memref.load %arg1[%c246] : memref<276xf32, #tpu.memory_space<smem>>
    %1102 = vector.broadcast %1101 : f32 to vector<8x128xf32>
    %1103 = arith.mulf %1102, %1096 : vector<8x128xf32>
    %1104 = arith.addf %1091, %1103 : vector<8x128xf32>
    %c258 = arith.constant 258 : index
    %1105 = memref.load %arg1[%c258] : memref<276xf32, #tpu.memory_space<smem>>
    %1106 = vector.broadcast %1105 : f32 to vector<8x128xf32>
    %1107 = arith.mulf %1106, %1096 : vector<8x128xf32>
    %1108 = arith.addf %1095, %1107 : vector<8x128xf32>
    %c235 = arith.constant 235 : index
    %1109 = memref.load %arg1[%c235] : memref<276xf32, #tpu.memory_space<smem>>
    %1110 = vector.broadcast %1109 : f32 to vector<8x128xf32>
    %1111 = arith.mulf %1110, %1041 : vector<8x128xf32>
    %1112 = arith.addf %1100, %1111 : vector<8x128xf32>
    %c247 = arith.constant 247 : index
    %1113 = memref.load %arg1[%c247] : memref<276xf32, #tpu.memory_space<smem>>
    %1114 = vector.broadcast %1113 : f32 to vector<8x128xf32>
    %1115 = arith.mulf %1114, %1041 : vector<8x128xf32>
    %1116 = arith.addf %1104, %1115 : vector<8x128xf32>
    %c259 = arith.constant 259 : index
    %1117 = memref.load %arg1[%c259] : memref<276xf32, #tpu.memory_space<smem>>
    %1118 = vector.broadcast %1117 : f32 to vector<8x128xf32>
    %1119 = arith.mulf %1118, %1041 : vector<8x128xf32>
    %1120 = arith.addf %1108, %1119 : vector<8x128xf32>
    %c127_i32_128 = arith.constant 127 : i32
    %1121 = tpu.dynamic_rotate %1041 by %c127_i32_128 dim 1 : vector<8x128xf32>, i32 -> vector<8x128xf32>
    %c236 = arith.constant 236 : index
    %1122 = memref.load %arg1[%c236] : memref<276xf32, #tpu.memory_space<smem>>
    %1123 = vector.broadcast %1122 : f32 to vector<8x128xf32>
    %1124 = arith.mulf %1123, %1121 : vector<8x128xf32>
    %1125 = arith.addf %1112, %1124 : vector<8x128xf32>
    %c248 = arith.constant 248 : index
    %1126 = memref.load %arg1[%c248] : memref<276xf32, #tpu.memory_space<smem>>
    %1127 = vector.broadcast %1126 : f32 to vector<8x128xf32>
    %1128 = arith.mulf %1127, %1121 : vector<8x128xf32>
    %1129 = arith.addf %1116, %1128 : vector<8x128xf32>
    %c260 = arith.constant 260 : index
    %1130 = memref.load %arg1[%c260] : memref<276xf32, #tpu.memory_space<smem>>
    %1131 = vector.broadcast %1130 : f32 to vector<8x128xf32>
    %1132 = arith.mulf %1131, %1121 : vector<8x128xf32>
    %1133 = arith.addf %1120, %1132 : vector<8x128xf32>
    %c7_i32_129 = arith.constant 7 : i32
    %1134 = tpu.dynamic_rotate %1041 by %c7_i32_129 dim 0 : vector<8x128xf32>, i32 -> vector<8x128xf32>
    %c237 = arith.constant 237 : index
    %1135 = memref.load %arg1[%c237] : memref<276xf32, #tpu.memory_space<smem>>
    %1136 = vector.broadcast %1135 : f32 to vector<8x128xf32>
    %1137 = arith.mulf %1136, %1134 : vector<8x128xf32>
    %1138 = arith.addf %1125, %1137 : vector<8x128xf32>
    %c249 = arith.constant 249 : index
    %1139 = memref.load %arg1[%c249] : memref<276xf32, #tpu.memory_space<smem>>
    %1140 = vector.broadcast %1139 : f32 to vector<8x128xf32>
    %1141 = arith.mulf %1140, %1134 : vector<8x128xf32>
    %1142 = arith.addf %1129, %1141 : vector<8x128xf32>
    %c261 = arith.constant 261 : index
    %1143 = memref.load %arg1[%c261] : memref<276xf32, #tpu.memory_space<smem>>
    %1144 = vector.broadcast %1143 : f32 to vector<8x128xf32>
    %1145 = arith.mulf %1144, %1134 : vector<8x128xf32>
    %1146 = arith.addf %1133, %1145 : vector<8x128xf32>
    %c127_i32_130 = arith.constant 127 : i32
    %1147 = tpu.dynamic_rotate %1134 by %c127_i32_130 dim 1 : vector<8x128xf32>, i32 -> vector<8x128xf32>
    %c238 = arith.constant 238 : index
    %1148 = memref.load %arg1[%c238] : memref<276xf32, #tpu.memory_space<smem>>
    %1149 = vector.broadcast %1148 : f32 to vector<8x128xf32>
    %1150 = arith.mulf %1149, %1147 : vector<8x128xf32>
    %1151 = arith.addf %1138, %1150 : vector<8x128xf32>
    %c250 = arith.constant 250 : index
    %1152 = memref.load %arg1[%c250] : memref<276xf32, #tpu.memory_space<smem>>
    %1153 = vector.broadcast %1152 : f32 to vector<8x128xf32>
    %1154 = arith.mulf %1153, %1147 : vector<8x128xf32>
    %1155 = arith.addf %1142, %1154 : vector<8x128xf32>
    %c262 = arith.constant 262 : index
    %1156 = memref.load %arg1[%c262] : memref<276xf32, #tpu.memory_space<smem>>
    %1157 = vector.broadcast %1156 : f32 to vector<8x128xf32>
    %1158 = arith.mulf %1157, %1147 : vector<8x128xf32>
    %1159 = arith.addf %1146, %1158 : vector<8x128xf32>
    %c239 = arith.constant 239 : index
    %1160 = memref.load %arg1[%c239] : memref<276xf32, #tpu.memory_space<smem>>
    %1161 = vector.broadcast %1160 : f32 to vector<8x128xf32>
    %1162 = arith.mulf %1161, %1045 : vector<8x128xf32>
    %1163 = arith.addf %1151, %1162 : vector<8x128xf32>
    %c251 = arith.constant 251 : index
    %1164 = memref.load %arg1[%c251] : memref<276xf32, #tpu.memory_space<smem>>
    %1165 = vector.broadcast %1164 : f32 to vector<8x128xf32>
    %1166 = arith.mulf %1165, %1045 : vector<8x128xf32>
    %1167 = arith.addf %1155, %1166 : vector<8x128xf32>
    %c263 = arith.constant 263 : index
    %1168 = memref.load %arg1[%c263] : memref<276xf32, #tpu.memory_space<smem>>
    %1169 = vector.broadcast %1168 : f32 to vector<8x128xf32>
    %1170 = arith.mulf %1169, %1045 : vector<8x128xf32>
    %1171 = arith.addf %1159, %1170 : vector<8x128xf32>
    %c127_i32_131 = arith.constant 127 : i32
    %1172 = tpu.dynamic_rotate %1045 by %c127_i32_131 dim 1 : vector<8x128xf32>, i32 -> vector<8x128xf32>
    %c240 = arith.constant 240 : index
    %1173 = memref.load %arg1[%c240] : memref<276xf32, #tpu.memory_space<smem>>
    %1174 = vector.broadcast %1173 : f32 to vector<8x128xf32>
    %1175 = arith.mulf %1174, %1172 : vector<8x128xf32>
    %1176 = arith.addf %1163, %1175 : vector<8x128xf32>
    %c252 = arith.constant 252 : index
    %1177 = memref.load %arg1[%c252] : memref<276xf32, #tpu.memory_space<smem>>
    %1178 = vector.broadcast %1177 : f32 to vector<8x128xf32>
    %1179 = arith.mulf %1178, %1172 : vector<8x128xf32>
    %1180 = arith.addf %1167, %1179 : vector<8x128xf32>
    %c264 = arith.constant 264 : index
    %1181 = memref.load %arg1[%c264] : memref<276xf32, #tpu.memory_space<smem>>
    %1182 = vector.broadcast %1181 : f32 to vector<8x128xf32>
    %1183 = arith.mulf %1182, %1172 : vector<8x128xf32>
    %1184 = arith.addf %1171, %1183 : vector<8x128xf32>
    %c7_i32_132 = arith.constant 7 : i32
    %1185 = tpu.dynamic_rotate %1045 by %c7_i32_132 dim 0 : vector<8x128xf32>, i32 -> vector<8x128xf32>
    %c241 = arith.constant 241 : index
    %1186 = memref.load %arg1[%c241] : memref<276xf32, #tpu.memory_space<smem>>
    %1187 = vector.broadcast %1186 : f32 to vector<8x128xf32>
    %1188 = arith.mulf %1187, %1185 : vector<8x128xf32>
    %1189 = arith.addf %1176, %1188 : vector<8x128xf32>
    %c253 = arith.constant 253 : index
    %1190 = memref.load %arg1[%c253] : memref<276xf32, #tpu.memory_space<smem>>
    %1191 = vector.broadcast %1190 : f32 to vector<8x128xf32>
    %1192 = arith.mulf %1191, %1185 : vector<8x128xf32>
    %1193 = arith.addf %1180, %1192 : vector<8x128xf32>
    %c265 = arith.constant 265 : index
    %1194 = memref.load %arg1[%c265] : memref<276xf32, #tpu.memory_space<smem>>
    %1195 = vector.broadcast %1194 : f32 to vector<8x128xf32>
    %1196 = arith.mulf %1195, %1185 : vector<8x128xf32>
    %1197 = arith.addf %1184, %1196 : vector<8x128xf32>
    %c127_i32_133 = arith.constant 127 : i32
    %1198 = tpu.dynamic_rotate %1185 by %c127_i32_133 dim 1 : vector<8x128xf32>, i32 -> vector<8x128xf32>
    %c242 = arith.constant 242 : index
    %1199 = memref.load %arg1[%c242] : memref<276xf32, #tpu.memory_space<smem>>
    %1200 = vector.broadcast %1199 : f32 to vector<8x128xf32>
    %1201 = arith.mulf %1200, %1198 : vector<8x128xf32>
    %1202 = arith.addf %1189, %1201 : vector<8x128xf32>
    %c254 = arith.constant 254 : index
    %1203 = memref.load %arg1[%c254] : memref<276xf32, #tpu.memory_space<smem>>
    %1204 = vector.broadcast %1203 : f32 to vector<8x128xf32>
    %1205 = arith.mulf %1204, %1198 : vector<8x128xf32>
    %1206 = arith.addf %1193, %1205 : vector<8x128xf32>
    %c266 = arith.constant 266 : index
    %1207 = memref.load %arg1[%c266] : memref<276xf32, #tpu.memory_space<smem>>
    %1208 = vector.broadcast %1207 : f32 to vector<8x128xf32>
    %1209 = arith.mulf %1208, %1198 : vector<8x128xf32>
    %1210 = arith.addf %1197, %1209 : vector<8x128xf32>
    %cst_134 = arith.constant 0.000000e+00 : f32
    %1211 = vector.broadcast %cst_134 : f32 to vector<8x128xf32>
    %1212 = arith.select %17, %1202, %1211 : vector<8x128xi1>, vector<8x128xf32>
    %1213 = vector.shape_cast %1212 : vector<8x128xf32> to vector<1x8x128xf32>
    %cst_135 = arith.constant dense<0.000000e+00> : vector<1xf32>
    %1214 = vector.multi_reduction <add>, %1213, %cst_135 [1, 2] : vector<1x8x128xf32> to vector<1xf32>
    %1215 = vector.shape_cast %1214 : vector<1xf32> to vector<1x1x1xf32>
    %1216 = vector.extract %1215[0, 0, 0] : f32 from vector<1x1x1xf32>
    %cst_136 = arith.constant 0.000000e+00 : f32
    %1217 = arith.addf %cst_136, %1216 : f32
    %1218 = arith.mulf %1212, %1212 : vector<8x128xf32>
    %1219 = vector.shape_cast %1218 : vector<8x128xf32> to vector<1x8x128xf32>
    %cst_137 = arith.constant dense<0.000000e+00> : vector<1xf32>
    %1220 = vector.multi_reduction <add>, %1219, %cst_137 [1, 2] : vector<1x8x128xf32> to vector<1xf32>
    %1221 = vector.shape_cast %1220 : vector<1xf32> to vector<1x1x1xf32>
    %1222 = vector.extract %1221[0, 0, 0] : f32 from vector<1x1x1xf32>
    %cst_138 = arith.constant 0.000000e+00 : f32
    %1223 = arith.addf %cst_138, %1222 : f32
    %cst_139 = arith.constant 6.250000e-02 : f32
    %1224 = arith.mulf %1217, %cst_139 : f32
    %cst_140 = arith.constant 6.250000e-02 : f32
    %1225 = arith.mulf %1223, %cst_140 : f32
    %1226 = arith.mulf %1224, %1224 : f32
    %1227 = arith.subf %1225, %1226 : f32
    %c270 = arith.constant 270 : index
    %1228 = memref.load %arg1[%c270] : memref<276xf32, #tpu.memory_space<smem>>
    %cst_141 = arith.constant 9.99999974E-6 : f32
    %1229 = arith.addf %1227, %cst_141 : f32
    %1230 = math.rsqrt %1229 : f32
    %1231 = arith.mulf %1228, %1230 : f32
    %c273 = arith.constant 273 : index
    %1232 = memref.load %arg1[%c273] : memref<276xf32, #tpu.memory_space<smem>>
    %1233 = arith.mulf %1224, %1231 : f32
    %1234 = arith.subf %1232, %1233 : f32
    %1235 = vector.broadcast %1231 : f32 to vector<8x128xf32>
    %1236 = arith.mulf %1202, %1235 : vector<8x128xf32>
    %1237 = vector.broadcast %1234 : f32 to vector<8x128xf32>
    %1238 = arith.addf %1236, %1237 : vector<8x128xf32>
    %1239 = vector.extract_strided_slice %1238 {offsets = [0, 0], sizes = [4, 4], strides = [1, 1]} : vector<8x128xf32> to vector<4x4xf32>
    %c0_142 = arith.constant 0 : index
    %c0_143 = arith.constant 0 : index
    %c0_144 = arith.constant 0 : index
    %c0_145 = arith.constant 0 : index
    %1240 = vector.load %arg2[%c0_142, %c0_143, %c0_144, %c0_145] : memref<1x3x4x4xf32, #tpu.memory_space<vmem>>, vector<1x1x4x4xf32>
    %1241 = vector.shape_cast %1240 : vector<1x1x4x4xf32> to vector<4x4xf32>
    %1242 = vector.shape_cast %1239 : vector<4x4xf32> to vector<1x1x4x4xf32>
    tpu.vector_store %arg2[%c0_142, %c0_143, %c0_144, %c0_145], %1242 {strides = array<i32>} : memref<1x3x4x4xf32, #tpu.memory_space<vmem>>, vector<1x1x4x4xf32>,
    %cst_146 = arith.constant 0.000000e+00 : f32
    %1243 = vector.broadcast %cst_146 : f32 to vector<8x128xf32>
    %1244 = arith.select %17, %1206, %1243 : vector<8x128xi1>, vector<8x128xf32>
    %1245 = vector.shape_cast %1244 : vector<8x128xf32> to vector<1x8x128xf32>
    %cst_147 = arith.constant dense<0.000000e+00> : vector<1xf32>
    %1246 = vector.multi_reduction <add>, %1245, %cst_147 [1, 2] : vector<1x8x128xf32> to vector<1xf32>
    %1247 = vector.shape_cast %1246 : vector<1xf32> to vector<1x1x1xf32>
    %1248 = vector.extract %1247[0, 0, 0] : f32 from vector<1x1x1xf32>
    %cst_148 = arith.constant 0.000000e+00 : f32
    %1249 = arith.addf %cst_148, %1248 : f32
    %1250 = arith.mulf %1244, %1244 : vector<8x128xf32>
    %1251 = vector.shape_cast %1250 : vector<8x128xf32> to vector<1x8x128xf32>
    %cst_149 = arith.constant dense<0.000000e+00> : vector<1xf32>
    %1252 = vector.multi_reduction <add>, %1251, %cst_149 [1, 2] : vector<1x8x128xf32> to vector<1xf32>
    %1253 = vector.shape_cast %1252 : vector<1xf32> to vector<1x1x1xf32>
    %1254 = vector.extract %1253[0, 0, 0] : f32 from vector<1x1x1xf32>
    %cst_150 = arith.constant 0.000000e+00 : f32
    %1255 = arith.addf %cst_150, %1254 : f32
    %cst_151 = arith.constant 6.250000e-02 : f32
    %1256 = arith.mulf %1249, %cst_151 : f32
    %cst_152 = arith.constant 6.250000e-02 : f32
    %1257 = arith.mulf %1255, %cst_152 : f32
    %1258 = arith.mulf %1256, %1256 : f32
    %1259 = arith.subf %1257, %1258 : f32
    %c271 = arith.constant 271 : index
    %1260 = memref.load %arg1[%c271] : memref<276xf32, #tpu.memory_space<smem>>
    %cst_153 = arith.constant 9.99999974E-6 : f32
    %1261 = arith.addf %1259, %cst_153 : f32
    %1262 = math.rsqrt %1261 : f32
    %1263 = arith.mulf %1260, %1262 : f32
    %c274 = arith.constant 274 : index
    %1264 = memref.load %arg1[%c274] : memref<276xf32, #tpu.memory_space<smem>>
    %1265 = arith.mulf %1256, %1263 : f32
    %1266 = arith.subf %1264, %1265 : f32
    %1267 = vector.broadcast %1263 : f32 to vector<8x128xf32>
    %1268 = arith.mulf %1206, %1267 : vector<8x128xf32>
    %1269 = vector.broadcast %1266 : f32 to vector<8x128xf32>
    %1270 = arith.addf %1268, %1269 : vector<8x128xf32>
    %1271 = vector.extract_strided_slice %1270 {offsets = [0, 0], sizes = [4, 4], strides = [1, 1]} : vector<8x128xf32> to vector<4x4xf32>
    %c0_154 = arith.constant 0 : index
    %c1_155 = arith.constant 1 : index
    %c0_156 = arith.constant 0 : index
    %c0_157 = arith.constant 0 : index
    %1272 = vector.load %arg2[%c0_154, %c1_155, %c0_156, %c0_157] : memref<1x3x4x4xf32, #tpu.memory_space<vmem>>, vector<1x1x4x4xf32>
    %1273 = vector.shape_cast %1272 : vector<1x1x4x4xf32> to vector<4x4xf32>
    %1274 = vector.shape_cast %1271 : vector<4x4xf32> to vector<1x1x4x4xf32>
    tpu.vector_store %arg2[%c0_154, %c1_155, %c0_156, %c0_157], %1274 {strides = array<i32>} : memref<1x3x4x4xf32, #tpu.memory_space<vmem>>, vector<1x1x4x4xf32>,
    %cst_158 = arith.constant 0.000000e+00 : f32
    %1275 = vector.broadcast %cst_158 : f32 to vector<8x128xf32>
    %1276 = arith.select %17, %1210, %1275 : vector<8x128xi1>, vector<8x128xf32>
    %1277 = vector.shape_cast %1276 : vector<8x128xf32> to vector<1x8x128xf32>
    %cst_159 = arith.constant dense<0.000000e+00> : vector<1xf32>
    %1278 = vector.multi_reduction <add>, %1277, %cst_159 [1, 2] : vector<1x8x128xf32> to vector<1xf32>
    %1279 = vector.shape_cast %1278 : vector<1xf32> to vector<1x1x1xf32>
    %1280 = vector.extract %1279[0, 0, 0] : f32 from vector<1x1x1xf32>
    %cst_160 = arith.constant 0.000000e+00 : f32
    %1281 = arith.addf %cst_160, %1280 : f32
    %1282 = arith.mulf %1276, %1276 : vector<8x128xf32>
    %1283 = vector.shape_cast %1282 : vector<8x128xf32> to vector<1x8x128xf32>
    %cst_161 = arith.constant dense<0.000000e+00> : vector<1xf32>
    %1284 = vector.multi_reduction <add>, %1283, %cst_161 [1, 2] : vector<1x8x128xf32> to vector<1xf32>
    %1285 = vector.shape_cast %1284 : vector<1xf32> to vector<1x1x1xf32>
    %1286 = vector.extract %1285[0, 0, 0] : f32 from vector<1x1x1xf32>
    %cst_162 = arith.constant 0.000000e+00 : f32
    %1287 = arith.addf %cst_162, %1286 : f32
    %cst_163 = arith.constant 6.250000e-02 : f32
    %1288 = arith.mulf %1281, %cst_163 : f32
    %cst_164 = arith.constant 6.250000e-02 : f32
    %1289 = arith.mulf %1287, %cst_164 : f32
    %1290 = arith.mulf %1288, %1288 : f32
    %1291 = arith.subf %1289, %1290 : f32
    %c272 = arith.constant 272 : index
    %1292 = memref.load %arg1[%c272] : memref<276xf32, #tpu.memory_space<smem>>
    %cst_165 = arith.constant 9.99999974E-6 : f32
    %1293 = arith.addf %1291, %cst_165 : f32
    %1294 = math.rsqrt %1293 : f32
    %1295 = arith.mulf %1292, %1294 : f32
    %c275 = arith.constant 275 : index
    %1296 = memref.load %arg1[%c275] : memref<276xf32, #tpu.memory_space<smem>>
    %1297 = arith.mulf %1288, %1295 : f32
    %1298 = arith.subf %1296, %1297 : f32
    %1299 = vector.broadcast %1295 : f32 to vector<8x128xf32>
    %1300 = arith.mulf %1210, %1299 : vector<8x128xf32>
    %1301 = vector.broadcast %1298 : f32 to vector<8x128xf32>
    %1302 = arith.addf %1300, %1301 : vector<8x128xf32>
    %1303 = vector.extract_strided_slice %1302 {offsets = [0, 0], sizes = [4, 4], strides = [1, 1]} : vector<8x128xf32> to vector<4x4xf32>
    %c0_166 = arith.constant 0 : index
    %c2_167 = arith.constant 2 : index
    %c0_168 = arith.constant 0 : index
    %c0_169 = arith.constant 0 : index
    %1304 = vector.load %arg2[%c0_166, %c2_167, %c0_168, %c0_169] : memref<1x3x4x4xf32, #tpu.memory_space<vmem>>, vector<1x1x4x4xf32>
    %1305 = vector.shape_cast %1304 : vector<1x1x4x4xf32> to vector<4x4xf32>
    %1306 = vector.shape_cast %1303 : vector<4x4xf32> to vector<1x1x4x4xf32>
    tpu.vector_store %arg2[%c0_166, %c2_167, %c0_168, %c0_169], %1306 {strides = array<i32>} : memref<1x3x4x4xf32, #tpu.memory_space<vmem>>, vector<1x1x4x4xf32>,
    return
  }
}

</mosaic_0001>

<bundles_post_ra>
// kernel: model_forward.1
= control target key start
LH: loop header
LB: loop body
LE: loop exit
PB: predicated region body
PF: predicated region fallthrough
CT: control target
= control target key end

     0   :  { %s3233_s0 = inlined_call_operand.hbm [shape: f32[1,3,8,8], index: 0, kind: input, shape index: {}]   ;;  %s3234_s1 = inlined_call_operand.hbm [shape: f32[276], index: 1, kind: input, shape index: {}]   ;;  %s3235_s2 = inlined_call_operand.hbm [shape: f32[1,3,4,4], index: 2, kind: output, shape index: {}]  }
   0x1   :  { %3273 = sst [smem:[#allocation30_spill]] %s3235_s2 }
   0x2   :  { %7 = vsyncpa [#allocation4], 0 }
   0x3   :  { %8 = vsyncpa [#allocation6], 0 }
   0x4   :  { %9 = vsyncpa [#allocation5], 0  ;;  %s1799_s9 = smov [#allocation3]   ;;  %s1739_s13 = scalar_lea.hbm %s3233_s0, 384 }
   0x5   :  { %s15_s10 = sshll.u32 %s1799_s9, 4  ;;  %p1740_p0 = scmp.ne.s32.totalorder %s3233_s0, %s1739_s13  ;;  %s16_s10 = int_to_ptr.vmem [resolvable:$true] %s15_s10 }
   0x6   :  { %p1743_p1 = scmp.lt.u32.totalorder %s1739_s13, %s3233_s0 }
   0x8   :  { %p1745_p2 = pnand %p1743_p1, %p1740_p0 }
   0xa   :  { %1748 = shalt.err (!%p1745_p2)
}
   0xb   :  { %s1749_s18 = scalar_lea.vmem %s16_s10, 384  ;;  %p1754_p4 = scmp.lt.s32.totalorder %s16_s10, %s16_s10 }
   0xc   :  { %p1750_p3 = scmp.ne.s32.totalorder %s16_s10, %s1749_s18  ;;  %p1755_p5 = scmp.lt.s32.totalorder %s1749_s18, %s1749_s18 }
   0xe   :  { %p1756_p6 = por %p1755_p5, %p1754_p4 }
  0x10   :  { %p1757_p7 = pnand %p1756_p6, %p1750_p3 }
  0x12   :  { %1760 = shalt.err (!%p1757_p7)
}
  0x13   :  { %s1800_s19 = smov 128   ;;  %s1801_s20 = smov 8  }
  0x14   :  { %21 = dma.hbm_to_vmem [thread:$0]  %s3233_s0, 384, %s16_s10, [#allocation4], %s1800_s19, %s1800_s19, %s1801_s20  }
  0x15   :  { %s1761_s25 = scalar_lea.hbm %s3234_s1, 48  ;;  %s1763_s30 = scalar_lea.hbm %s3234_s1, 64 }
  0x16   :  { %p1762_p8 = scmp.ne.s32.totalorder %s3234_s1, %s1761_s25  ;;  %p1764_p9 = scmp.lt.u32.totalorder %s1763_s30, %s1761_s25 }
  0x17   :  { %p1765_p10 = scmp.lt.u32.totalorder %s1761_s25, %s3234_s1 }
  0x19   :  { %p1766_p11 = por %p1765_p10, %p1764_p9 }
  0x1b   :  { %p1767_p12 = pnand %p1766_p11, %p1762_p8 }
  0x1d   :  { %1770 = shalt.err (!%p1767_p12)
}
  0x1e   :  { %s1802_s0 = smov [#allocation7]  }
  0x1f   :  { %29 = dma.hbm_to_smem %s3234_s1, 48, %s1802_s0, [#allocation6]  }
  0x20   :  { %1793 = dma.done.wait [#allocation4], 384  }
  0x21   :  { %1794 = vsyncadd [#allocation4], 4294966912 }
  0x22   :  { %1795 = dma.done.wait [#allocation6], 48  }
  0x23   :  { %1796 = vsyncadd [#allocation6], 4294967248 }
  0x24   :  { %36 = sfence }
  0x25   :  { %v52_v0 = vld [vmem:[#allocation3] sm:$0xff]  ;;  %vm53_vm0 = vcmask 64512   ;;  %v56_v1 = vld [vmem:[#allocation3 + $0x8] sm:$0xff]  ;;  %v1803_v2 = vmov 0.0   ;;  %v60_v3 = vld [vmem:[#allocation3 + $0x10] sm:$0xff]  ;;  %s3236_s7 = smov 127  }
  0x26   :  { %49 = vst [vmem:[#allocation2] sm:$0xff] %v1803_v2  ;;  %50 = vst [vmem:[#allocation2 + $0x8] sm:$0xff] %v1803_v2  ;;  %s1805_s1 = smov 125   ;;  %s3238_s8 = smov 126   ;;  %vm1326_vm9 = vcmask 27648  }
  0x27   :  { %51 = vst [vmem:[#allocation2 + $0x10] sm:$0xff] %v1803_v2  ;;  %54 = vst.msk [vmem:[#allocation2] sm:$0xff] %vm53_vm0, %v52_v0  ;;  %s1958_s9 = sld [smem:[#allocation7 + $0x90]]  ;;  %s1960_s10 = sld [smem:[#allocation7 + $0x91]] }
  0x28   :  { %58 = vst.msk [vmem:[#allocation2 + $0x8] sm:$0xff] %vm53_vm0, %v56_v1  ;;  %62 = vst.msk [vmem:[#allocation2 + $0x10] sm:$0xff] %vm53_vm0, %v60_v3  ;;  %s1962_s11 = sld [smem:[#allocation7 + $0x92]]  ;;  %s1964_s12 = sld [smem:[#allocation7]] }
  0x29   :  { %s1966_s13 = sld [smem:[#allocation7 + $0x30]]  ;;  %s1970_s15 = sld [smem:[#allocation7 + $0x1]] }
  0x2a   :  { %s1968_s14 = sld [smem:[#allocation7 + $0x60]]  ;;  %s1972_s16 = sld [smem:[#allocation7 + $0x31]] }
  0x2b   :  { %s1974_s17 = sld [smem:[#allocation7 + $0x61]]  ;;  %s1976_s18 = sld [smem:[#allocation7 + $0x2]] }
  0x2c   :  { %s1978_s19 = sld [smem:[#allocation7 + $0x32]]  ;;  %s1982_s21 = sld [smem:[#allocation7 + $0x3]] }
  0x2d   :  { %s1980_s20 = sld [smem:[#allocation7 + $0x62]]  ;;  %s1984_s22 = sld [smem:[#allocation7 + $0x33]]  ;;  %v67_v22 = vstv %s1958_s9  ;;  %v70_v23 = vstv %s1960_s10 }
  0x2e   :  { %v1853_v4 = vld [vmem:[#allocation2] sm:$0xff]  ;;  %s1986_s23 = sld [smem:[#allocation7 + $0x63]]  ;;  %s1988_s24 = sld [smem:[#allocation7 + $0x4]]  ;;  %v76_v16 = vstv %s1964_s12  ;;  %v73_v24 = vstv %s1962_s11 }
  0x2f   :  { %87 = vrot.lane.b32.xlu0 %v1853_v4, %s3236_s7  ;;  %115 = vrot.lane.b32.xlu1 %v1853_v4, %s1805_s1  ;;  %v1860_v5 = vrot.slane %v1853_v4, 1  ;;  %v1871_v6 = vrot.slane %v1853_v4, 2  ;;  %v1878_v7 = vrot.slane %v1853_v4, 3  ;;  %v1888_v8 = vld [vmem:[#allocation2 + $0x8] sm:$0xff]  ;;  %v1923_v12 = vld [vmem:[#allocation2 + $0x10] sm:$0xff]  ;;  %s1990_s25 = sld [smem:[#allocation7 + $0x34]]  ;;  %v80_v17 = vstv %s1966_s13 }
  0x30   :  { %v1895_v9 = vrot.slane %v1888_v8, 1  ;;  %v1906_v10 = vrot.slane %v1888_v8, 2  ;;  %v1913_v11 = vrot.slane %v1888_v8, 3  ;;  %v1930_v13 = vrot.slane %v1923_v12, 1  ;;  %s1992_s26 = sld [smem:[#allocation7 + $0x64]]  ;;  %s1994_s27 = sld [smem:[#allocation7 + $0x5]] }
  0x31   :  { %v1941_v14 = vrot.slane %v1923_v12, 2  ;;  %v1948_v15 = vrot.slane %v1923_v12, 3  ;;  %3274 = sst [smem:[#allocation12_spill]] %s1976_s18  ;;  %s1996_s28 = sld [smem:[#allocation7 + $0x35]]  ;;  %v84_v18 = vstv %s1968_s14  ;;  %v77_v19 = vmul.f32 %v76_v16, %v1853_v4 }
  0x32   :  { %3275 = sst [smem:[#allocation13_spill]] %s1978_s19  ;;  %s1998_s29 = sld [smem:[#allocation7 + $0x65]]  ;;  %v81_v20 = vmul.f32 %v80_v17, %v1853_v4  ;;  %v85_v21 = vmul.f32 %v84_v18, %v1853_v4  ;;  %v90_v25 = vstv %s1970_s15  ;;  %v94_v26 = vstv %s1972_s16 }
  0x33   :  { %101 = vrot.lane.b32.xlu0 %v1853_v4, %s3238_s8  ;;  %142 = vrot.lane.b32.xlu1 %v1860_v5, %s3236_s7  ;;  %3276 = sst [smem:[#allocation14_spill]] %s1980_s20  ;;  %s2000_s30 = sld [smem:[#allocation7 + $0x6]]  ;;  %v98_v27 = vstv %s1974_s17  ;;  %v104_v29 = vstv %s1976_s18  ;;  %v2055_v33 = vadd.f32 %v77_v19, %v67_v22 }
  0x34   :  { %3277 = sst [smem:[#allocation15_spill]] %s1984_s22  ;;  %s2002_s3 = sld [smem:[#allocation7 + $0x36]]  ;;  %v131_v28 = vstv %s1988_s24  ;;  %v108_v30 = vstv %s1978_s19  ;;  %v2057_v34 = vadd.f32 %v81_v20, %v70_v23  ;;  %v2059_v35 = vadd.f32 %v85_v21, %v73_v24 }
  0x35   :  { %3278 = sst [smem:[#allocation16_spill]] %s1986_s23  ;;  %s2004_s4 = sld [smem:[#allocation7 + $0x66]]  ;;  %v135_v31 = vstv %s1990_s25  ;;  %v112_v36 = vstv %s1980_s20  ;;  %v118_v37 = vstv %s1982_s21  ;;  %v122_v38 = vstv %s1984_s22 }
  0x36   :  { %s2006_s0 = sld [smem:[#allocation7 + $0x7]]  ;;  %s2021_s2 = sld [smem:[#allocation7 + $0x9]]  ;;  %v139_v32 = vstv %s1992_s26  ;;  %v126_v39 = vstv %s1986_s23  ;;  %v2070_v40 = vmul.f32 %v131_v28, %v1860_v5  ;;  %v2077_v41 = vmul.f32 %v135_v31, %v1860_v5 }
  0x37   :  { %156 = vrot.lane.b32.xlu0 %v1860_v5, %s3238_s8  ;;  %170 = vrot.lane.b32.xlu1 %v1860_v5, %s1805_s1  ;;  %3279 = sst [smem:[#allocation17_spill]] %s1996_s28  ;;  %s2008_s5 = sld [smem:[#allocation7 + $0x37]]  ;;  %v2080_v42 = vmul.f32 %v139_v32, %v1860_v5  ;;  %v145_v45 = vstv %s1994_s27  ;;  %v149_v46 = vstv %s1996_s28 }
  0x38   :  { %s2013_s6 = sld [smem:[#allocation7 + $0x67]]  ;;  %s2028_s12 = sld [smem:[#allocation7 + $0x69]]  ;;  %v153_v47 = vstv %s1998_s29 }
  0x39   :  { %s2030_s13 = sld [smem:[#allocation7 + $0xa]]  ;;  %s2053_s10 = sld [smem:[#allocation7 + $0xb]]  ;;  %v159_v49 = vstv %s2000_s30 }
  0x3a   :  { %s2035_s14 = sld [smem:[#allocation7 + $0x3a]]  ;;  %s2062_s11 = sld [smem:[#allocation7 + $0x3b]]  ;;  %v163_v50 = vstv %s2002_s3 }
  0x3b   :  { %197 = vrot.lane.b32.xlu0 %v1871_v6, %s3236_s7  ;;  %211 = vrot.lane.b32.xlu1 %v1871_v6, %s3238_s8  ;;  %s2051_s9 = sld [smem:[#allocation7 + $0x6a]]  ;;  %s2064_s24 = sld [smem:[#allocation7 + $0x6b]]  ;;  %v167_v51 = vstv %s2004_s4 }
  0x3c   :  { %3280 = sst [smem:[#allocation18_spill]] %s2006_s0  ;;  %s2072_s25 = sld [smem:[#allocation7 + $0xd]]  ;;  %v173_v52 = vstv %s2006_s0 }
  0x3d   :  { %3281 = sst [smem:[#allocation19_spill]] %s2008_s5  ;;  %s2023_s5 = sld [smem:[#allocation7 + $0x39]] }
  0x3e   :  { %3282 = sst [smem:[#allocation20_spill]] %s2013_s6  ;;  %s2074_s26 = sld [smem:[#allocation7 + $0x3d]]  ;;  %v181_v54 = vstv %s2013_s6 }
  0x3f   :  { %225 = vrot.lane.b32.xlu0 %v1871_v6, %s1805_s1  ;;  %252 = vrot.lane.b32.xlu1 %v1878_v7, %s3236_s7  ;;  %3283 = sst [smem:[#allocation21_spill]] %s2021_s2  ;;  %s2043_s2 = sld [smem:[#allocation7 + $0x3c]]  ;;  %v214_v0 = vstv %s2030_s13  ;;  %v228_v3 = vstv %s2053_s10 }
  0x40   :  { %3285 = sst [smem:[#allocation23_spill]] %s2028_s12  ;;  %s2045_s12 = sld [smem:[#allocation7 + $0x6c]]  ;;  %v218_v1 = vstv %s2035_s14  ;;  %v232_v4 = vstv %s2062_s11 }
  0x41   :  { %3286 = sst [smem:[#allocation24_spill]] %s2035_s14  ;;  %s3291_s21 = sld [smem:[#allocation19_spill]]  ;;  %v222_v2 = vstv %s2051_s9  ;;  %v236_v16 = vstv %s2064_s24 }
  0x42   :  { %3287 = sst [smem:[#allocation25_spill]] %s2051_s9  ;;  %s2086_s19 = sld [smem:[#allocation7 + $0xe]]  ;;  %v255_v23 = vstv %s2072_s25 }
  0x43   :  { %266 = vrot.lane.b32.xlu0 %v1878_v7, %s3238_s8  ;;  %280 = vrot.lane.b32.xlu1 %v1878_v7, %s1805_s1  ;;  %3284 = sst [smem:[#allocation22_spill]] %s2023_s5  ;;  %s2037_s5 = sld [smem:[#allocation7 + $0xc]] }
  0x44   :  { %3288 = sst [smem:[#allocation26_spill]] %s2053_s10  ;;  %s2084_s20 = sld [smem:[#allocation7 + $0x6d]]  ;;  %v259_v24 = vstv %s2074_s26 }
  0x45   :  { %3289 = sst [smem:[#allocation27_spill]] %s2062_s11  ;;  %s2092_s18 = sld [smem:[#allocation7 + $0x3e]]  ;;  %v245_v59 = vstv %s2043_s2 }
  0x46   :  { %3290 = sst [smem:[#allocation28_spill]] %s2064_s24  ;;  %s3295_s22 = sld [smem:[#allocation23_spill]]  ;;  %v249_v60 = vstv %s2045_s12  ;;  %v2139_v18 = vmul.f32 %v245_v59, %v1878_v7 }
  0x47   :  { %306 = vrot.lane.b32.xlu0 %v1888_v8, %s3236_s7  ;;  %320 = vrot.lane.b32.xlu1 %v1888_v8, %s3238_s8  ;;  %s2094_s23 = sld [smem:[#allocation7 + $0x10]]  ;;  %v177_v53 = vstv %s3291_s21  ;;  %s2120_s21 = sld [smem:[#allocation7 + $0xf]]  ;;  %v2142_v19 = vmul.f32 %v249_v60, %v1878_v7 }
  0x48   :  { %3292 = sst [smem:[#allocation29_spill]] %s2086_s19  ;;  %s2100_s19 = sld [smem:[#allocation7 + $0x40]] }
  0x49   :  { %s2102_s28 = sld [smem:[#allocation7 + $0x70]]  ;;  %v241_v58 = vstv %s2037_s5  ;;  %s2126_s6 = sld [smem:[#allocation7 + $0x3f]] }
  0x4a   :  { %s2128_s0 = sld [smem:[#allocation7 + $0x6f]]  ;;  %s3297_s2 = sld [smem:[#allocation29_spill]]  ;;  %v2136_v17 = vmul.f32 %v241_v58, %v1878_v7  ;;  %v263_v28 = vstv %s2084_s20 }
  0x4b   :  { %334 = vrot.lane.b32.xlu0 %v1888_v8, %s1805_s1  ;;  %361 = vrot.lane.b32.xlu1 %v1895_v9, %s3236_s7  ;;  %v273_v32 = vstv %s2092_s18  ;;  %s2155_s11 = sld [smem:[#allocation7 + $0x11]]  ;;  %s2170_s16 = sld [smem:[#allocation7 + $0x12]] }
  0x4c   :  { %v208_v63 = vstv %s3295_s22  ;;  %s2157_s9 = sld [smem:[#allocation7 + $0x41]]  ;;  %s2189_s5 = sld [smem:[#allocation7 + $0x43]] }
  0x4d   :  { %s2168_s15 = sld [smem:[#allocation7 + $0x71]]  ;;  %s2194_s14 = sld [smem:[#allocation7 + $0x14]] }
  0x4e   :  { %s2206_s10 = sld [smem:[#allocation7 + $0x44]]  ;;  %s2218_s17 = sld [smem:[#allocation7 + $0x73]] }
  0x4f   :  { %375 = vrot.lane.b32.xlu0 %v1895_v9, %s3238_s8  ;;  %389 = vrot.lane.b32.xlu1 %v1895_v9, %s1805_s1  ;;  %s2208_s12 = sld [smem:[#allocation7 + $0x74]]  ;;  %s2233_s29 = sld [smem:[#allocation7 + $0x15]] }
  0x50   :  { %v269_v31 = vstv %s3297_s2  ;;  %s2235_s30 = sld [smem:[#allocation7 + $0x45]]  ;;  %s2243_s4 = sld [smem:[#allocation7 + $0x16]] }
  0x51   :  { %s2241_s3 = sld [smem:[#allocation7 + $0x75]]  ;;  %s2246_s24 = sld [smem:[#allocation7 + $0x46]] }
  0x52   :  { %3307 = sst [smem:[#allocation15_spill]] %s2189_s5  ;;  %s2254_s27 = sld [smem:[#allocation7 + $0x76]] }
  0x53   :  { %416 = vrot.lane.b32.xlu0 %v1906_v10, %s3236_s7  ;;  %430 = vrot.lane.b32.xlu1 %v1906_v10, %s3238_s8  ;;  %s2287_s22 = sld [smem:[#allocation7 + $0x17]]  ;;  %s2320_s25 = sld [smem:[#allocation7 + $0x1a]] }
  0x54   :  { %s2289_s13 = sld [smem:[#allocation7 + $0x47]]  ;;  %s2335_s18 = sld [smem:[#allocation7 + $0x1c]] }
  0x55   :  { %s2337_s20 = sld [smem:[#allocation7 + $0x4c]]  ;;  %s2357_s2 = sld [smem:[#allocation7 + $0x7b]] }
  0x57   :  { %444 = vrot.lane.b32.xlu0 %v1906_v10, %s1805_s1  ;;  %471 = vrot.lane.b32.xlu1 %v1913_v11, %s3236_s7 }
  0x5b   :  { %485 = vrot.lane.b32.xlu0 %v1913_v11, %s3238_s8  ;;  %499 = vrot.lane.b32.xlu1 %v1913_v11, %s1805_s1 }
  0x5f   :  { %525 = vrot.lane.b32.xlu0 %v1923_v12, %s3236_s7  ;;  %539 = vrot.lane.b32.xlu1 %v1923_v12, %s3238_s8 }
  0x63   :  { %553 = vrot.lane.b32.xlu0 %v1923_v12, %s1805_s1  ;;  %580 = vrot.lane.b32.xlu1 %v1930_v13, %s3236_s7 }
  0x67   :  { %594 = vrot.lane.b32.xlu0 %v1930_v13, %s3238_s8  ;;  %608 = vrot.lane.b32.xlu1 %v1930_v13, %s1805_s1 }
  0x6b   :  { %635 = vrot.lane.b32.xlu0 %v1941_v14, %s3236_s7  ;;  %649 = vrot.lane.b32.xlu1 %v1941_v14, %s3238_s8 }
  0x6f   :  { %663 = vrot.lane.b32.xlu0 %v1941_v14, %s1805_s1  ;;  %690 = vrot.lane.b32.xlu1 %v1948_v15, %s3236_s7  ;;  %s2017_s7 = sld [smem:[#allocation7 + $0x68]] }
  0x73   :  { %704 = vrot.lane.b32.xlu0 %v1948_v15, %s3238_s8  ;;  %718 = vrot.lane.b32.xlu1 %v1948_v15, %s1805_s1  ;;  %s2015_s1 = sld [smem:[#allocation7 + $0x38]] }
  0x74   :  { %s2019_s8 = sld [smem:[#allocation7 + $0x8]] }
  0x75   :  { %v194_v44 = vstv %s2017_s7  ;;  %s3294_s7 = sld [smem:[#allocation22_spill]] }
  0x76   :  { %v2110_v56 = vmul.f32 %v194_v44, %v1871_v6 }
  0x79   :  { %v190_v43 = vstv %s2015_s1  ;;  %s3293_s1 = sld [smem:[#allocation21_spill]] }
  0x7a   :  { %v186_v48 = vstv %s2019_s8  ;;  %v2107_v55 = vmul.f32 %v190_v43, %v1871_v6  ;;  %s2118_s8 = sld [smem:[#allocation7 + $0x6e]]  ;;  %3296 = sst [smem:[#allocation21_spill]] %s2128_s0  ;;  %v299_v43 = vstv %s2100_s19 }
  0x7b   :  { %v2113_v57 = vmul.f32 %v186_v48, %v1871_v6  ;;  %v204_v62 = vstv %s3294_s7  ;;  %s2179_s19 = sld [smem:[#allocation7 + $0x42]]  ;;  %s3316_s26 = sld [smem:[#allocation21_spill]] }
  0x7c   :  { %s2360_s0 = sld [smem:[#allocation7 + $0x7c]]  ;;  %s2553_s7 = sld [smem:[#allocation7 + $0x28]] }
  0x7f   :  { %v200_v61 = vstv %s3293_s1  ;;  %s2268_s1 = sld [smem:[#allocation7 + $0x48]] }
  0x81   :  { %3304 = sst [smem:[#allocation22_spill]] %s2179_s19 }
  0xa1   :  { %v88_v5 = vpop.permute.xlu0 %87  ;;  %v116_v6 = vpop.permute.xlu1 %115 }
  0xa2   :  { %v91_v20 = vmul.f32 %v90_v25, %v88_v5  ;;  %v95_v21 = vmul.f32 %v94_v26, %v88_v5  ;;  %v99_v22 = vmul.f32 %v98_v27, %v88_v5  ;;  %v119_v7 = vmul.f32 %v118_v37, %v116_v6 }
  0xa3   :  { %v295_v25 = vstv %s2094_s23  ;;  %v303_v26 = vstv %s2102_s28  ;;  %v123_v58 = vmul.f32 %v122_v38, %v116_v6  ;;  %v127_v59 = vmul.f32 %v126_v39, %v116_v6  ;;  %s2181_s23 = sld [smem:[#allocation7 + $0x72]]  ;;  %s2187_s28 = sld [smem:[#allocation7 + $0x13]] }
  0xa4   :  { %v92_v27 = vadd.f32 %v91_v20, %v2055_v33  ;;  %v96_v44 = vadd.f32 %v95_v21, %v2057_v34  ;;  %v100_v37 = vadd.f32 %v99_v22, %v2059_v35  ;;  %v277_v38 = vstv %s2118_s8  ;;  %s2341_s8 = sld [smem:[#allocation7 + $0x7a]] }
  0xa5   :  { %v102_v48 = vpop.permute.xlu0 %101  ;;  %v143_v60 = vpop.permute.xlu1 %142  ;;  %v283_v39 = vstv %s2120_s21  ;;  %v287_v6 = vstv %s2126_s6  ;;  %v2201_v20 = vmul.f32 %v299_v43, %v1888_v8  ;;  %s2343_s21 = sld [smem:[#allocation7 + $0x1b]] }
  0xa6   :  { %v105_v5 = vmul.f32 %v104_v29, %v102_v48  ;;  %v109_v33 = vmul.f32 %v108_v30, %v102_v48  ;;  %v113_v34 = vmul.f32 %v112_v36, %v102_v48  ;;  %v2192_v36 = vmul.f32 %v295_v25, %v1888_v8  ;;  %s2355_s6 = sld [smem:[#allocation7 + $0x4b]] }
  0xa7   :  { %v146_v21 = vmul.f32 %v145_v45, %v143_v60  ;;  %v150_v22 = vmul.f32 %v149_v46, %v143_v60  ;;  %v154_v46 = vmul.f32 %v153_v47, %v143_v60  ;;  %v317_v60 = vstv %s2168_s15  ;;  %s2391_s15 = sld [smem:[#allocation7 + $0x7d]] }
  0xa8   :  { %v106_v29 = vadd.f32 %v105_v5, %v92_v27  ;;  %v110_v35 = vadd.f32 %v109_v33, %v96_v44  ;;  %v114_v30 = vadd.f32 %v113_v34, %v100_v37  ;;  %v2204_v27 = vmul.f32 %v303_v26, %v1888_v8 }
  0xa9   :  { %3305 = sst [smem:[#allocation23_spill]] %s2181_s23  ;;  %v157_v48 = vpop.permute.xlu0 %156  ;;  %v171_v37 = vpop.permute.xlu1 %170  ;;  %v309_v26 = vstv %s2155_s11  ;;  %v313_v5 = vstv %s2157_s9  ;;  %v323_v34 = vstv %s2170_s16  ;;  %s2376_s9 = sld [smem:[#allocation7 + $0x1d]] }
  0xaa   :  { %3306 = sst [smem:[#allocation29_spill]] %s2187_s28  ;;  %v120_v25 = vadd.f32 %v119_v7, %v106_v29  ;;  %v124_v44 = vadd.f32 %v123_v58, %v110_v35  ;;  %v128_v45 = vadd.f32 %v127_v59, %v114_v30  ;;  %v160_v43 = vmul.f32 %v159_v49, %v157_v48  ;;  %s2389_s11 = sld [smem:[#allocation7 + $0x4d]] }
  0xab   :  { %v164_v8 = vmul.f32 %v163_v50, %v157_v48  ;;  %v168_v47 = vmul.f32 %v167_v51, %v157_v48  ;;  %v174_v49 = vmul.f32 %v173_v52, %v171_v37  ;;  %v178_v50 = vmul.f32 %v177_v53, %v171_v37  ;;  %s2395_s16 = sld [smem:[#allocation7 + $0x1e]] }
  0xac   :  { %v133_v33 = vadd.f32 %v2070_v40, %v120_v25  ;;  %v137_v7 = vadd.f32 %v2077_v41, %v124_v44  ;;  %v141_v58 = vadd.f32 %v2080_v42, %v128_v45  ;;  %v182_v41 = vmul.f32 %v181_v54, %v171_v37 }
  0xad   :  { %v198_v59 = vpop.permute.xlu0 %197  ;;  %v327_v42 = vstv %s2179_s19  ;;  %v331_v51 = vstv %s2181_s23  ;;  %v337_v52 = vstv %s2187_s28  ;;  %v341_v53 = vstv %s2189_s5  ;;  %s2256_s28 = sld [smem:[#allocation7 + $0x18]]  ;;  %s2297_s19 = sld [smem:[#allocation7 + $0x77]] }
  0xae   :  { %v147_v29 = vadd.f32 %v146_v21, %v133_v33  ;;  %v151_v35 = vadd.f32 %v150_v22, %v137_v7  ;;  %v155_v40 = vadd.f32 %v154_v46, %v141_v58  ;;  %v212_v22 = vpop.permute.xlu1 %211  ;;  %v350_v48 = vstv %s2194_s14  ;;  %s2270_s14 = sld [smem:[#allocation7 + $0x78]]  ;;  %s2300_s23 = sld [smem:[#allocation7 + $0x19]] }
  0xaf   :  { %v201_v25 = vmul.f32 %v200_v61, %v198_v59  ;;  %v205_v44 = vmul.f32 %v204_v62, %v198_v59  ;;  %v354_v45 = vstv %s2206_s10  ;;  %v358_v46 = vstv %s2208_s12  ;;  %s2308_s5 = sld [smem:[#allocation7 + $0x49]]  ;;  %s2420_s12 = sld [smem:[#allocation7 + $0x20]] }
  0xb0   :  { %v161_v30 = vadd.f32 %v160_v43, %v147_v29  ;;  %v165_v21 = vadd.f32 %v164_v8, %v151_v35  ;;  %v169_v54 = vadd.f32 %v168_v47, %v155_v40  ;;  %v209_v33 = vmul.f32 %v208_v63, %v198_v59  ;;  %s2310_s10 = sld [smem:[#allocation7 + $0x79]] }
  0xb1   :  { %v226_v7 = vpop.permute.xlu0 %225  ;;  %v215_v58 = vmul.f32 %v214_v0, %v212_v22  ;;  %v219_v61 = vmul.f32 %v218_v1, %v212_v22  ;;  %v345_v62 = vstv %s2218_s17  ;;  %v2266_v47 = vmul.f32 %v350_v48, %v1895_v9  ;;  %s2408_s17 = sld [smem:[#allocation7 + $0x4f]] }
  0xb2   :  { %v175_v37 = vadd.f32 %v174_v49, %v161_v30  ;;  %v179_v43 = vadd.f32 %v178_v50, %v165_v21  ;;  %v183_v8 = vadd.f32 %v182_v41, %v169_v54  ;;  %v223_v1 = vmul.f32 %v222_v2, %v212_v22  ;;  %v253_v50 = vpop.permute.xlu1 %252 }
  0xb3   :  { %v229_v59 = vmul.f32 %v228_v3, %v226_v7  ;;  %v233_v29 = vmul.f32 %v232_v4, %v226_v7  ;;  %v2282_v35 = vmul.f32 %v354_v45, %v1895_v9  ;;  %v2285_v40 = vmul.f32 %v358_v46, %v1895_v9 }
  0xb4   :  { %v192_v49 = vadd.f32 %v2107_v55, %v179_v43  ;;  %v196_v63 = vadd.f32 %v2110_v56, %v183_v8  ;;  %v188_v0 = vadd.f32 %v2113_v57, %v175_v37  ;;  %v237_v2 = vmul.f32 %v236_v16, %v226_v7 }
  0xb5   :  { %v364_v3 = vstv %s2233_s29  ;;  %v368_v4 = vstv %s2235_s30  ;;  %v372_v41 = vstv %s2241_s3  ;;  %v378_v30 = vstv %s2243_s4  ;;  %v267_v22 = vpop.permute.xlu0 %266  ;;  %s2434_s29 = sld [smem:[#allocation7 + $0x7f]]  ;;  %s2436_s30 = sld [smem:[#allocation7 + $0x80]] }
  0xb6   :  { %v202_v55 = vadd.f32 %v201_v25, %v188_v0  ;;  %v206_v56 = vadd.f32 %v205_v44, %v192_v49  ;;  %v210_v57 = vadd.f32 %v209_v33, %v196_v63  ;;  %v382_v48 = vstv %s2246_s24  ;;  %v281_v33 = vpop.permute.xlu1 %280  ;;  %s2451_s3 = sld [smem:[#allocation7 + $0x21]] }
  0xb7   :  { %v256_v16 = vmul.f32 %v255_v23, %v253_v50  ;;  %v260_v25 = vmul.f32 %v259_v24, %v253_v50  ;;  %v386_v44 = vstv %s2254_s27  ;;  %v405_v45 = vstv %s2256_s28  ;;  %s2322_s28 = sld [smem:[#allocation7 + $0x4a]]  ;;  %s2457_s4 = sld [smem:[#allocation7 + $0x51]] }
  0xb8   :  { %v216_v9 = vadd.f32 %v215_v58, %v202_v55  ;;  %v220_v21 = vadd.f32 %v219_v61, %v206_v56  ;;  %v224_v54 = vadd.f32 %v223_v1, %v210_v57  ;;  %v264_v8 = vmul.f32 %v263_v28, %v253_v50  ;;  %s2459_s24 = sld [smem:[#allocation7 + $0x81]]  ;;  %s2462_s27 = sld [smem:[#allocation7 + $0x22]] }
  0xb9   :  { %v270_v23 = vmul.f32 %v269_v31, %v267_v22  ;;  %v274_v24 = vmul.f32 %v273_v32, %v267_v22  ;;  %v409_v7 = vstv %s2268_s1  ;;  %v413_v58 = vstv %s2270_s14  ;;  %v307_v0 = vpop.permute.xlu0 %306  ;;  %s2422_s1 = sld [smem:[#allocation7 + $0x50]]  ;;  %s2555_s14 = sld [smem:[#allocation7 + $0x86]] }
  0xba   :  { %v230_v46 = vadd.f32 %v229_v59, %v216_v9  ;;  %v234_v37 = vadd.f32 %v233_v29, %v220_v21  ;;  %v238_v43 = vadd.f32 %v237_v2, %v224_v54  ;;  %v278_v63 = vmul.f32 %v277_v38, %v267_v22  ;;  %v321_v9 = vpop.permute.xlu1 %320 }
  0xbb   :  { %v284_v31 = vmul.f32 %v283_v39, %v281_v33  ;;  %v288_v32 = vmul.f32 %v287_v6, %v281_v33  ;;  %v392_v1 = vstv %s2287_s22  ;;  %v396_v50 = vstv %s2289_s13  ;;  %s2470_s22 = sld [smem:[#allocation7 + $0x52]] }
  0xbc   :  { %v243_v61 = vadd.f32 %v2136_v17, %v230_v46  ;;  %v247_v49 = vadd.f32 %v2139_v18, %v234_v37  ;;  %v251_v28 = vadd.f32 %v2142_v19, %v238_v43  ;;  %v3317_v29 = vstv %s3316_s26  ;;  %s2397_s26 = sld [smem:[#allocation7 + $0x4e]]  ;;  %s2472_s13 = sld [smem:[#allocation7 + $0x82]] }
  0xbd   :  { %v292_v19 = vmul.f32 %v3317_v29, %v281_v33  ;;  %v400_v38 = vstv %s2297_s19  ;;  %v2347_v39 = vmul.f32 %v405_v45, %v1906_v10  ;;  %v2350_v6 = vmul.f32 %v409_v7, %v1906_v10  ;;  %v335_v43 = vpop.permute.xlu0 %334  ;;  %s2482_s19 = sld [smem:[#allocation7 + $0x24]] }
  0xbe   :  { %v257_v59 = vadd.f32 %v256_v16, %v243_v61  ;;  %v261_v17 = vadd.f32 %v260_v25, %v247_v49  ;;  %v265_v18 = vadd.f32 %v264_v8, %v251_v28  ;;  %v2353_v55 = vmul.f32 %v413_v58, %v1906_v10  ;;  %v362_v58 = vpop.permute.xlu1 %361 }
  0xbf   :  { %v419_v21 = vstv %s2300_s23  ;;  %v310_v54 = vmul.f32 %v309_v26, %v307_v0  ;;  %v314_v10 = vmul.f32 %v313_v5, %v307_v0  ;;  %v423_v22 = vstv %s2308_s5  ;;  %s2484_s23 = sld [smem:[#allocation7 + $0x54]]  ;;  %s2501_s5 = sld [smem:[#allocation7 + $0x23]] }
  0xc0   :  { %v271_v56 = vadd.f32 %v270_v23, %v257_v59  ;;  %v275_v57 = vadd.f32 %v274_v24, %v261_v17  ;;  %v279_v2 = vadd.f32 %v278_v63, %v265_v18  ;;  %v427_v16 = vstv %s2310_s10  ;;  %s2503_s10 = sld [smem:[#allocation7 + $0x84]] }
  0xc1   :  { %v318_v37 = vmul.f32 %v317_v60, %v307_v0  ;;  %v324_v8 = vmul.f32 %v323_v34, %v321_v9  ;;  %v328_v33 = vmul.f32 %v327_v42, %v321_v9  ;;  %v433_v26 = vstv %s2320_s25  ;;  %s2513_s25 = sld [smem:[#allocation7 + $0x53]] }
  0xc2   :  { %v285_v25 = vadd.f32 %v284_v31, %v271_v56  ;;  %v289_v45 = vadd.f32 %v288_v32, %v275_v57  ;;  %v293_v46 = vadd.f32 %v292_v19, %v279_v2  ;;  %v437_v23 = vstv %s2322_s28  ;;  %s2515_s28 = sld [smem:[#allocation7 + $0x83]] }
  0xc3   :  { %v332_v60 = vmul.f32 %v331_v51, %v321_v9  ;;  %v338_v34 = vmul.f32 %v337_v52, %v335_v43  ;;  %v342_v42 = vmul.f32 %v341_v53, %v335_v43  ;;  %v460_v61 = vstv %s2335_s18  ;;  %s2403_s18 = sld [smem:[#allocation7 + $0x7e]] }
  0xc4   :  { %v297_v5 = vadd.f32 %v2192_v36, %v285_v25  ;;  %v301_v24 = vadd.f32 %v2201_v20, %v289_v45  ;;  %v305_v7 = vadd.f32 %v2204_v27, %v293_v46  ;;  %v464_v49 = vstv %s2337_s20  ;;  %s2405_s20 = sld [smem:[#allocation7 + $0x1f]] }
  0xc5   :  { %v346_v51 = vmul.f32 %v345_v62, %v335_v43  ;;  %v441_v52 = vstv %s2341_s8  ;;  %v447_v53 = vstv %s2343_s21  ;;  %v451_v28 = vstv %s2355_s6  ;;  %v376_v62 = vpop.permute.xlu0 %375  ;;  %s2524_s8 = sld [smem:[#allocation7 + $0x25]] }
  0xc6   :  { %v311_v20 = vadd.f32 %v310_v54, %v297_v5  ;;  %v315_v36 = vadd.f32 %v314_v10, %v301_v24  ;;  %v319_v27 = vadd.f32 %v318_v37, %v305_v7  ;;  %v455_v63 = vstv %s2357_s2  ;;  %s2526_s21 = sld [smem:[#allocation7 + $0x55]]  ;;  %s2538_s2 = sld [smem:[#allocation7 + $0x26]] }
  0xc7   :  { %v468_v59 = vstv %s2360_s0  ;;  %v365_v17 = vmul.f32 %v364_v3, %v362_v58  ;;  %v369_v18 = vmul.f32 %v368_v4, %v362_v58  ;;  %v2415_v29 = vmul.f32 %v460_v61, %v1913_v11  ;;  %v390_v4 = vpop.permute.xlu1 %389  ;;  %s2536_s6 = sld [smem:[#allocation7 + $0x85]]  ;;  %s2551_s0 = sld [smem:[#allocation7 + $0x56]] }
  0xc8   :  { %v325_v0 = vadd.f32 %v324_v8, %v311_v20  ;;  %v329_v31 = vadd.f32 %v328_v33, %v315_v36  ;;  %v333_v32 = vadd.f32 %v332_v60, %v319_v27  ;;  %v2418_v19 = vmul.f32 %v464_v49, %v1913_v11 }
  0xc9   :  { %v373_v3 = vmul.f32 %v372_v41, %v362_v58  ;;  %v379_v9 = vmul.f32 %v378_v30, %v376_v62  ;;  %v383_v54 = vmul.f32 %v382_v48, %v376_v62  ;;  %v2431_v10 = vmul.f32 %v468_v59, %v1913_v11  ;;  %v417_v11 = vpop.permute.xlu0 %416 }
  0xca   :  { %v339_v56 = vadd.f32 %v338_v34, %v325_v0  ;;  %v343_v57 = vadd.f32 %v342_v42, %v329_v31  ;;  %v347_v2 = vadd.f32 %v346_v51, %v333_v32  ;;  %v474_v25 = vstv %s2376_s9  ;;  %s2557_s9 = sld [smem:[#allocation7 + $0x27]] }
  0xcb   :  { %v387_v48 = vmul.f32 %v386_v44, %v376_v62  ;;  %v393_v46 = vmul.f32 %v392_v1, %v390_v4  ;;  %v397_v37 = vmul.f32 %v396_v50, %v390_v4  ;;  %v478_v43 = vstv %s2389_s11  ;;  %v431_v58 = vpop.permute.xlu1 %430  ;;  %s2567_s11 = sld [smem:[#allocation7 + $0x57]] }
  0xcc   :  { %v352_v45 = vadd.f32 %v2266_v47, %v339_v56  ;;  %v356_v41 = vadd.f32 %v2282_v35, %v343_v57  ;;  %v360_v30 = vadd.f32 %v2285_v40, %v347_v2  ;;  %v482_v8 = vstv %s2391_s15  ;;  %s2569_s15 = sld [smem:[#allocation7 + $0x58]] }
  0xcd   :  { %v401_v35 = vmul.f32 %v400_v38, %v390_v4  ;;  %v488_v40 = vstv %s2395_s16  ;;  %v492_v44 = vstv %s2397_s26  ;;  %v496_v24 = vstv %s2403_s18  ;;  %v445_v0 = vpop.permute.xlu0 %444  ;;  %s2574_s16 = sld [smem:[#allocation7 + $0x88]]  ;;  %s2578_s26 = sld [smem:[#allocation7 + $0x87]] }
  0xce   :  { %v366_v33 = vadd.f32 %v365_v17, %v352_v45  ;;  %v370_v5 = vadd.f32 %v369_v18, %v356_v41  ;;  %v374_v47 = vadd.f32 %v373_v3, %v360_v30  ;;  %v502_v1 = vstv %s2405_s20  ;;  %s2587_s18 = sld [smem:[#allocation7 + $0x29]] }
  0xcf   :  { %v506_v38 = vstv %s2408_s17  ;;  %v420_v34 = vmul.f32 %v419_v21, %v417_v11  ;;  %v424_v42 = vmul.f32 %v423_v22, %v417_v11  ;;  %v514_v61 = vstv %s2420_s12  ;;  %v472_v17 = vpop.permute.xlu1 %471  ;;  %s2589_s20 = sld [smem:[#allocation7 + $0x59]]  ;;  %s2593_s12 = sld [smem:[#allocation7 + $0x2a]] }
  0xd0   :  { %v380_v50 = vadd.f32 %v379_v9, %v366_v33  ;;  %v384_v7 = vadd.f32 %v383_v54, %v370_v5  ;;  %v388_v60 = vadd.f32 %v387_v48, %v374_v47  ;;  %v518_v49 = vstv %s2422_s1  ;;  %s2591_s17 = sld [smem:[#allocation7 + $0x89]]  ;;  %s2599_s1 = sld [smem:[#allocation7 + $0x5a]] }
  0xd1   :  { %v428_v51 = vmul.f32 %v427_v16, %v417_v11  ;;  %v434_v31 = vmul.f32 %v433_v26, %v431_v58  ;;  %v438_v21 = vmul.f32 %v437_v23, %v431_v58  ;;  %v510_v22 = vstv %s2434_s29  ;;  %v486_v45 = vpop.permute.xlu0 %485  ;;  %s2601_s29 = sld [smem:[#allocation7 + $0x8a]] }
  0xd2   :  { %v394_v20 = vadd.f32 %v393_v46, %v380_v50  ;;  %v398_v36 = vadd.f32 %v397_v37, %v384_v7  ;;  %v402_v27 = vadd.f32 %v401_v35, %v388_v60  ;;  %v522_v32 = vstv %s2436_s30  ;;  %s2604_s30 = sld [smem:[#allocation7 + $0x2b]] }
  0xd3   :  { %v442_v26 = vmul.f32 %v441_v52, %v431_v58  ;;  %v448_v23 = vmul.f32 %v447_v53, %v445_v0  ;;  %v452_v18 = vmul.f32 %v451_v28, %v445_v0  ;;  %v2496_v56 = vmul.f32 %v514_v61, %v1923_v12  ;;  %v500_v5 = vpop.permute.xlu1 %499 }
  0xd4   :  { %v407_v62 = vadd.f32 %v2347_v39, %v394_v20  ;;  %v411_v59 = vadd.f32 %v2350_v6, %v398_v36  ;;  %v415_v16 = vadd.f32 %v2353_v55, %v402_v27  ;;  %v2499_v57 = vmul.f32 %v518_v49, %v1923_v12 }
  0xd5   :  { %v456_v52 = vmul.f32 %v455_v63, %v445_v0  ;;  %v2508_v53 = vmul.f32 %v522_v32, %v1923_v12  ;;  %v528_v28 = vstv %s2451_s3  ;;  %v532_v2 = vstv %s2457_s4  ;;  %v526_v58 = vpop.permute.xlu0 %525  ;;  %s2608_s3 = sld [smem:[#allocation7 + $0x5b]] }
  0xd6   :  { %v421_v39 = vadd.f32 %v420_v34, %v407_v62  ;;  %v425_v6 = vadd.f32 %v424_v42, %v411_v59  ;;  %v429_v55 = vadd.f32 %v428_v51, %v415_v16  ;;  %v536_v3 = vstv %s2459_s24  ;;  %s2610_s4 = sld [smem:[#allocation7 + $0x8b]]  ;;  %s2614_s24 = sld [smem:[#allocation7 + $0x2c]] }
  0xd7   :  { %v542_v63 = vstv %s2462_s27  ;;  %v475_v12 = vmul.f32 %v474_v25, %v472_v17  ;;  %v479_v41 = vmul.f32 %v478_v43, %v472_v17  ;;  %v546_v30 = vstv %s2470_s22  ;;  %v540_v51 = vpop.permute.xlu1 %539  ;;  %s2616_s27 = sld [smem:[#allocation7 + $0x5c]] }
  0xd8   :  { %v435_v4 = vadd.f32 %v434_v31, %v421_v39  ;;  %v439_v9 = vadd.f32 %v438_v21, %v425_v6  ;;  %v443_v54 = vadd.f32 %v442_v26, %v429_v55  ;;  %v550_v48 = vstv %s2472_s13  ;;  %s2623_s22 = sld [smem:[#allocation7 + $0x8c]]  ;;  %s2629_s13 = sld [smem:[#allocation7 + $0x2d]] }
  0xd9   :  { %v483_v33 = vmul.f32 %v482_v8, %v472_v17  ;;  %v489_v25 = vmul.f32 %v488_v40, %v486_v45  ;;  %v493_v43 = vmul.f32 %v492_v44, %v486_v45  ;;  %v569_v47 = vstv %s2482_s19  ;;  %v554_v17 = vpop.permute.xlu0 %553  ;;  %s2634_s19 = sld [smem:[#allocation7 + $0x2e]] }
  0xda   :  { %v449_v11 = vadd.f32 %v448_v23, %v435_v4  ;;  %v453_v46 = vadd.f32 %v452_v18, %v439_v9  ;;  %v457_v37 = vadd.f32 %v456_v52, %v443_v54  ;;  %v573_v35 = vstv %s2484_s23  ;;  %s2638_s23 = sld [smem:[#allocation7 + $0x2f]] }
  0xdb   :  { %v497_v8 = vmul.f32 %v496_v24, %v486_v45  ;;  %v503_v40 = vmul.f32 %v502_v1, %v500_v5  ;;  %v507_v44 = vmul.f32 %v506_v38, %v500_v5  ;;  %v556_v34 = vstv %s2501_s5  ;;  %s1566_s5 = sld [smem:[#allocation7 + $0x5d]] }
  0xdc   :  { %v462_v50 = vadd.f32 %v2415_v29, %v449_v11  ;;  %v466_v7 = vadd.f32 %v2418_v19, %v453_v46  ;;  %v470_v60 = vadd.f32 %v2431_v10, %v457_v37  ;;  %v577_v42 = vstv %s2503_s10  ;;  %s1569_s10 = sld [smem:[#allocation7 + $0x5e]] }
  0xdd   :  { %v511_v49 = vmul.f32 %v510_v22, %v500_v5  ;;  %v560_v10 = vstv %s2513_s25  ;;  %v564_v24 = vstv %s2515_s28  ;;  %v2562_v1 = vmul.f32 %v569_v47, %v1930_v13  ;;  %v595_v37 = vpop.permute.xlu0 %594  ;;  %s1572_s25 = sld [smem:[#allocation7 + $0x5f]]  ;;  %s1567_s28 = sld [smem:[#allocation7 + $0x8d]] }
  0xde   :  { %v476_v29 = vadd.f32 %v475_v12, %v462_v50  ;;  %v480_v61 = vadd.f32 %v479_v41, %v466_v7  ;;  %v484_v19 = vadd.f32 %v483_v33, %v470_v60  ;;  %v2565_v38 = vmul.f32 %v573_v35, %v1930_v13 }
  0xdf   :  { %v2572_v0 = vmul.f32 %v577_v42, %v1930_v13  ;;  %v529_v31 = vmul.f32 %v528_v28, %v526_v58  ;;  %v533_v21 = vmul.f32 %v532_v2, %v526_v58  ;;  %v583_v22 = vstv %s2524_s8  ;;  %v581_v2 = vpop.permute.xlu1 %580  ;;  %s3322_s8 = smov 126  }
  0xe0   :  { %v490_v20 = vadd.f32 %v489_v25, %v476_v29  ;;  %v494_v36 = vadd.f32 %v493_v43, %v480_v61  ;;  %v498_v27 = vadd.f32 %v497_v8, %v484_v19  ;;  %v587_v32 = vstv %s2526_s21  ;;  %s3323_s21 = smov 127  }
  0xe1   :  { %v537_v26 = vmul.f32 %v536_v3, %v526_v58  ;;  %v543_v23 = vmul.f32 %v542_v63, %v540_v51  ;;  %v547_v18 = vmul.f32 %v546_v30, %v540_v51  ;;  %v591_v39 = vstv %s2536_s6  ;;  %s1570_s6 = sld [smem:[#allocation7 + $0x8e]] }
  0xe2   :  { %v504_v62 = vadd.f32 %v503_v40, %v490_v20  ;;  %v508_v59 = vadd.f32 %v507_v44, %v494_v36  ;;  %v512_v16 = vadd.f32 %v511_v49, %v498_v27  ;;  %v597_v13 = vstv %s2538_s2  ;;  %v636_v49 = vpop.permute.xlu0 %635  ;;  %s1573_s2 = sld [smem:[#allocation7 + $0x8f]] }
  0xe3   :  { %v551_v28 = vmul.f32 %v550_v48, %v540_v51  ;;  %v557_v4 = vmul.f32 %v556_v34, %v554_v17  ;;  %v561_v9 = vmul.f32 %v560_v10, %v554_v17  ;;  %v601_v3 = vstv %s2551_s0  ;;  %v609_v8 = vpop.permute.xlu1 %608  ;;  %s2707_s0 = sld [smem:[#allocation7 + $0x93]] }
  0xe4   :  { %v516_v6 = vadd.f32 %v2496_v56, %v504_v62  ;;  %v520_v55 = vadd.f32 %v2499_v57, %v508_v59  ;;  %v524_v52 = vadd.f32 %v2508_v53, %v512_v16  ;;  %v624_v54 = vstv %s2553_s7  ;;  %s2709_s7 = sld [smem:[#allocation7 + $0xae]] }
  0xe5   :  { %v565_v63 = vmul.f32 %v564_v24, %v554_v17  ;;  %v605_v53 = vstv %s2555_s14  ;;  %v611_v12 = vstv %s2557_s9  ;;  %v615_v41 = vstv %s2567_s11  ;;  %s2711_s14 = sld [smem:[#allocation7 + $0xc9]]  ;;  %s2713_s9 = sld [smem:[#allocation7 + $0x9c]] }
  0xe6   :  { %v530_v45 = vadd.f32 %v529_v31, %v516_v6  ;;  %v534_v56 = vadd.f32 %v533_v21, %v520_v55  ;;  %v538_v57 = vadd.f32 %v537_v26, %v524_v52  ;;  %v628_v30 = vstv %s2569_s15  ;;  %v664_v52 = vpop.permute.xlu0 %663  ;;  %s2715_s11 = sld [smem:[#allocation7 + $0xe4]]  ;;  %s2717_s15 = sld [smem:[#allocation7 + $0xe5]] }
  0xe7   :  { %v632_v33 = vstv %s2574_s16  ;;  %v584_v5 = vmul.f32 %v583_v22, %v581_v2  ;;  %v588_v25 = vmul.f32 %v587_v32, %v581_v2  ;;  %v619_v43 = vstv %s2578_s26  ;;  %v650_v59 = vpop.permute.xlu1 %649  ;;  %s2719_s16 = sld [smem:[#allocation7 + $0xe6]] }
  0xe8   :  { %v544_v48 = vadd.f32 %v543_v23, %v530_v45  ;;  %v548_v11 = vadd.f32 %v547_v18, %v534_v56  ;;  %v552_v46 = vadd.f32 %v551_v28, %v538_v57  ;;  %v625_v47 = vmul.f32 %v624_v54, %v1941_v14  ;;  %s2721_s26 = sld [smem:[#allocation7 + $0x96]] }
  0xe9   :  { %v592_v60 = vmul.f32 %v591_v39, %v581_v2  ;;  %v598_v58 = vmul.f32 %v597_v13, %v595_v37  ;;  %v602_v40 = vmul.f32 %v601_v3, %v595_v37  ;;  %v629_v44 = vmul.f32 %v628_v30, %v1941_v14 }
  0xea   :  { %v558_v35 = vadd.f32 %v557_v4, %v544_v48  ;;  %v562_v50 = vadd.f32 %v561_v9, %v548_v11  ;;  %v566_v7 = vadd.f32 %v565_v63, %v552_v46  ;;  %v633_v34 = vmul.f32 %v632_v33, %v1941_v14 }
  0xeb   :  { %v606_v19 = vmul.f32 %v605_v53, %v595_v37  ;;  %v612_v10 = vmul.f32 %v611_v12, %v609_v8  ;;  %v616_v24 = vmul.f32 %v615_v41, %v609_v8  ;;  %v638_v20 = vstv %s2587_s18  ;;  %v691_v12 = vpop.permute.xlu1 %690  ;;  %s2723_s18 = sld [smem:[#allocation7 + $0xb1]] }
  0xec   :  { %v571_v42 = vadd.f32 %v2562_v1, %v558_v35  ;;  %v575_v29 = vadd.f32 %v2565_v38, %v562_v50  ;;  %v579_v61 = vadd.f32 %v2572_v0, %v566_v7  ;;  %v642_v14 = vstv %s2589_s20  ;;  %v705_v50 = vpop.permute.xlu0 %704  ;;  %s2725_s20 = sld [smem:[#allocation7 + $0xcc]] }
  0xed   :  { %v620_v51 = vmul.f32 %v619_v43, %v609_v8  ;;  %v646_v31 = vstv %s2591_s17  ;;  %v652_v38 = vstv %s2593_s12  ;;  %v656_v21 = vstv %s2599_s1  ;;  %s2727_s17 = sld [smem:[#allocation7 + $0x99]]  ;;  %s2729_s12 = sld [smem:[#allocation7 + $0xb4]] }
  0xee   :  { %v585_v36 = vadd.f32 %v584_v5, %v571_v42  ;;  %v589_v27 = vadd.f32 %v588_v25, %v575_v29  ;;  %v593_v1 = vadd.f32 %v592_v60, %v579_v61  ;;  %v660_v22 = vstv %s2601_s29  ;;  %s2731_s1 = sld [smem:[#allocation7 + $0xcf]] }
  0xef   :  { %v666_v16 = vstv %s2604_s30  ;;  %v639_v26 = vmul.f32 %v638_v20, %v636_v49  ;;  %v643_v17 = vmul.f32 %v642_v14, %v636_v49  ;;  %v670_v23 = vstv %s2608_s3  ;;  %s2733_s29 = sld [smem:[#allocation7 + $0xb7]]  ;;  %s2735_s30 = sld [smem:[#allocation7 + $0xd2]] }
  0xf0   :  { %v599_v0 = vadd.f32 %v598_v58, %v585_v36  ;;  %v603_v32 = vadd.f32 %v602_v40, %v589_v27  ;;  %v607_v62 = vadd.f32 %v606_v19, %v593_v1  ;;  %v674_v18 = vstv %s2610_s4  ;;  %s2737_s3 = sld [smem:[#allocation7 + $0x9f]]  ;;  %s2739_s4 = sld [smem:[#allocation7 + $0xba]] }
  0xf1   :  { %v647_v55 = vmul.f32 %v646_v31, %v636_v49  ;;  %v653_v28 = vmul.f32 %v652_v38, %v650_v59  ;;  %v657_v2 = vmul.f32 %v656_v21, %v650_v59  ;;  %v679_v4 = vstv %s2614_s24  ;;  %s2741_s24 = sld [smem:[#allocation7 + $0xd5]] }
  0xf2   :  { %v613_v39 = vadd.f32 %v612_v10, %v599_v0  ;;  %v617_v13 = vadd.f32 %v616_v24, %v603_v32  ;;  %v621_v6 = vadd.f32 %v620_v51, %v607_v62  ;;  %v683_v9 = vstv %s2616_s27  ;;  %s2743_s27 = sld [smem:[#allocation7 + $0xa2]] }
  0xf3   :  { %v661_v56 = vmul.f32 %v660_v22, %v650_v59  ;;  %v667_v57 = vmul.f32 %v666_v16, %v664_v52  ;;  %v671_v63 = vmul.f32 %v670_v23, %v664_v52  ;;  %v687_v53 = vstv %s2623_s22  ;;  %s2745_s22 = sld [smem:[#allocation7 + $0xbd]] }
  0xf4   :  { %v626_v3 = vadd.f32 %v625_v47, %v613_v39  ;;  %v630_v54 = vadd.f32 %v629_v44, %v617_v13  ;;  %v634_v45 = vadd.f32 %v633_v34, %v621_v6  ;;  %v675_v11 = vmul.f32 %v674_v18, %v664_v52  ;;  %v719_v44 = vpop.permute.xlu1 %718 }
  0xf5   :  { %v680_v46 = vmul.f32 %v679_v4, %v1948_v15  ;;  %v684_v37 = vmul.f32 %v683_v9, %v1948_v15  ;;  %v693_v33 = vstv %s2629_s13  ;;  %v688_v47 = vmul.f32 %v687_v53, %v1948_v15  ;;  %3324 = sst [smem:[#allocation16_spill]] %s2735_s30  ;;  %s2747_s13 = sld [smem:[#allocation7 + $0xd8]] }
  0xf6   :  { %v640_v41 = vadd.f32 %v639_v26, %v626_v3  ;;  %v644_v30 = vadd.f32 %v643_v17, %v630_v54  ;;  %v648_v48 = vadd.f32 %v647_v55, %v634_v45  ;;  %v707_v35 = vstv %s2634_s19  ;;  %3325 = sst [smem:[#allocation12_spill]] %s2737_s3  ;;  %s2749_s19 = sld [smem:[#allocation7 + $0xa5]] }
  0xf7   :  { %v694_v58 = vmul.f32 %v693_v33, %v691_v12  ;;  %v721_v40 = vstv %s2638_s23  ;;  %v708_v61 = vmul.f32 %v707_v35, %v705_v50  ;;  %v697_v10 = vstv %s1566_s5  ;;  %s2751_s23 = sld [smem:[#allocation7 + $0xc0]]  ;;  %s2753_s5 = sld [smem:[#allocation7 + $0xdb]] }
  0xf8   :  { %v654_v5 = vadd.f32 %v653_v28, %v640_v41  ;;  %v658_v25 = vadd.f32 %v657_v2, %v644_v30  ;;  %v662_v43 = vadd.f32 %v661_v56, %v648_v48  ;;  %v722_v49 = vmul.f32 %v721_v40, %v719_v44 }
  0xf9   :  { %v698_v20 = vmul.f32 %v697_v10, %v691_v12  ;;  %v711_v14 = vstv %s1569_s10  ;;  %v725_v51 = vstv %s1572_s25  ;;  %v701_v22 = vstv %s1567_s28  ;;  %3326 = sst [smem:[#allocation13_spill]] %s2745_s22  ;;  %s2755_s10 = sld [smem:[#allocation7 + $0xa8]] }
  0xfa   :  { %v668_v7 = vadd.f32 %v667_v57, %v654_v5  ;;  %v672_v60 = vadd.f32 %v671_v63, %v658_v25  ;;  %v676_v8 = vadd.f32 %v675_v11, %v662_v43  ;;  %v712_v27 = vmul.f32 %v711_v14, %v705_v50  ;;  %s2757_s25 = sld [smem:[#allocation7 + $0xc3]]  ;;  %s2759_s28 = sld [smem:[#allocation7 + $0xde]] }
  0xfb   :  { %v726_v38 = vmul.f32 %v725_v51, %v719_v44  ;;  %v702_v0 = vmul.f32 %v701_v22, %v691_v12  ;;  %v715_v62 = vstv %s1570_s6  ;;  %v729_v17 = vstv %s1573_s2  ;;  %3327 = sst [smem:[#allocation14_spill]] %s2747_s13  ;;  %s2763_s6 = sld [smem:[#allocation7 + $0x94]] }
  0xfc   :  { %v681_v34 = vadd.f32 %v680_v46, %v668_v7  ;;  %v685_v42 = vadd.f32 %v684_v37, %v672_v60  ;;  %v689_v29 = vadd.f32 %v688_v47, %v676_v8  ;;  %v716_v16 = vmul.f32 %v715_v62, %v705_v50  ;;  %s2765_s2 = sld [smem:[#allocation7 + $0xc6]] }
  0xfd   :  { %v730_v18 = vmul.f32 %v729_v17, %v719_v44  ;;  %v742_v52 = vstv %s2707_s0  ;;  %v733_v28 = vstv %s2715_s11  ;;  %v746_v2 = vstv %s2709_s7  ;;  %s2780_s0 = sld [smem:[#allocation7 + $0xb0]] }
  0xfe   :  { %v695_v19 = vadd.f32 %v694_v58, %v681_v34  ;;  %v699_v36 = vadd.f32 %v698_v20, %v685_v42  ;;  %v703_v59 = vadd.f32 %v702_v0, %v689_v29  ;;  %v750_v4 = vstv %s2711_s14  ;;  %s2792_s7 = sld [smem:[#allocation7 + $0x98]]  ;;  %s2794_s14 = sld [smem:[#allocation7 + $0x97]] }
  0xff   :  { %3328 = sst [smem:[#allocation17_spill]] %s2755_s10  ;;  %s2770_s10 = sld [smem:[#allocation7 + $0xca]]  ;;  %v864_v9 = vstv %s2713_s9  ;;  %v736_v3 = vstv %s2717_s15  ;;  %v739_v54 = vstv %s2719_s16  ;;  %v783_v45 = vstv %s2721_s26 }
 0x100   :  { %v709_v24 = vadd.f32 %v708_v61, %v695_v19  ;;  %v713_v31 = vadd.f32 %v712_v27, %v699_v36  ;;  %v717_v23 = vadd.f32 %v716_v16, %v703_v59  ;;  %3329 = sst [smem:[#allocation18_spill]] %s2757_s25  ;;  %s2772_s25 = sld [smem:[#allocation7 + $0x95]]  ;;  %v787_v56 = vstv %s2723_s18 }
 0x101   :  { %v791_v57 = vstv %s2725_s20  ;;  %v824_v63 = vstv %s2727_s17  ;;  %v828_v53 = vstv %s2729_s12  ;;  %v832_v12 = vstv %s2731_s1  ;;  %s3332_s11 = sld [smem:[#allocation17_spill]]  ;;  %s3333_s15 = sld [smem:[#allocation18_spill]] }
 0x102   :  { %v2647_v15 = vadd.f32 %v722_v49, %v709_v24  ;;  %v2667_v32 = vadd.f32 %v726_v38, %v713_v31  ;;  %v2687_v13 = vadd.f32 %v730_v18, %v717_v23  ;;  %3331 = sst [smem:[#allocation20_spill]] %s2765_s2  ;;  %s2782_s2 = sld [smem:[#allocation7 + $0xcb]]  ;;  %v868_v41 = vstv %s2733_s29 }
 0x103   :  { %v872_v30 = vstv %s2735_s30  ;;  %v905_v48 = vstv %s2737_s3  ;;  %v909_v11 = vstv %s2739_s4  ;;  %v913_v46 = vstv %s2741_s24  ;;  %s2805_s16 = sld [smem:[#allocation7 + $0xb2]]  ;;  %s2807_s26 = sld [smem:[#allocation7 + $0xcd]] }
 0x104   :  { %767 = vrot.lane.b32.xlu1 %v2647_v15, %s3322_s8  ;;  %753 = vrot.lane.b32.xlu0 %v2647_v15, %s3323_s21  ;;  %v2654_v1 = vrot.slane %v2647_v15, 1  ;;  %v2661_v21 = vrot.slane %v2647_v15, 2  ;;  %v2674_v26 = vrot.slane %v2667_v32, 1  ;;  %v2681_v39 = vrot.slane %v2667_v32, 2  ;;  %s3335_s3 = sld [smem:[#allocation20_spill]]  ;;  %s2863_s20 = sld [smem:[#allocation7 + $0xd3]] }
 0x105   :  { %v2694_v6 = vrot.slane %v2687_v13, 1  ;;  %v2701_v55 = vrot.slane %v2687_v13, 2  ;;  %v946_v37 = vstv %s2743_s27  ;;  %v950_v33 = vstv %s2745_s22  ;;  %s2820_s22 = sld [smem:[#allocation7 + $0xce]]  ;;  %s2861_s18 = sld [smem:[#allocation7 + $0xb8]] }
 0x106   :  { %v954_v5 = vstv %s2747_s13  ;;  %v743_v25 = vmul.f32 %v742_v52, %v2647_v15  ;;  %v986_v43 = vstv %s2749_s19  ;;  %v990_v47 = vstv %s2751_s23  ;;  %s2818_s13 = sld [smem:[#allocation7 + $0xb3]]  ;;  %s2882_s17 = sld [smem:[#allocation7 + $0xa0]] }
 0x107   :  { %v994_v35 = vstv %s2753_s5  ;;  %v756_v50 = vstv %s2763_s6  ;;  %v747_v7 = vmul.f32 %v746_v2, %v2647_v15  ;;  %v751_v60 = vmul.f32 %v750_v4, %v2647_v15  ;;  %s2838_s6 = sld [smem:[#allocation7 + $0xd0]]  ;;  %s2888_s12 = sld [smem:[#allocation7 + $0xbb]] }
 0x108   :  { %808 = vrot.lane.b32.xlu1 %v2654_v1, %s3322_s8  ;;  %794 = vrot.lane.b32.xlu0 %v2654_v1, %s3323_s21  ;;  %v1027_v8 = vstv %s3332_s11  ;;  %v764_v40 = vstv %s2770_s10  ;;  %v744_v15 = vadd.f32 %v743_v25, %v733_v28  ;;  %s2832_s10 = sld [smem:[#allocation7 + $0x9a]]  ;;  %v784_v4 = vmul.f32 %v783_v45, %v2654_v1  ;;  %s2890_s1 = sld [smem:[#allocation7 + $0xd6]] }
 0x109   :  { %v1031_v44 = vstv %s3333_s15  ;;  %v1035_v34 = vstv %s2759_s28  ;;  %v770_v42 = vstv %s2772_s25  ;;  %v774_v24 = vstv %s2780_s0  ;;  %s2836_s25 = sld [smem:[#allocation7 + $0xb5]]  ;;  %s2845_s0 = sld [smem:[#allocation7 + $0xd1]] }
 0x10a   :  { %v1072_v49 = vstv %s3335_s3  ;;  %v778_v20 = vstv %s2782_s2  ;;  %v748_v36 = vadd.f32 %v747_v7, %v736_v3  ;;  %v752_v27 = vadd.f32 %v751_v60, %v739_v54  ;;  %s2843_s2 = sld [smem:[#allocation7 + $0xb6]]  ;;  %s2909_s9 = sld [smem:[#allocation7 + $0xa3]] }
 0x10b   :  { %v811_v0 = vstv %s2792_s7  ;;  %v797_v62 = vstv %s2794_s14  ;;  %v801_v28 = vstv %s2805_s16  ;;  %v805_v2 = vstv %s2807_s26  ;;  %s2855_s7 = sld [smem:[#allocation7 + $0x9e]]  ;;  %s2857_s14 = sld [smem:[#allocation7 + $0x9d]] }
 0x10c   :  { %849 = vrot.lane.b32.xlu1 %v2661_v21, %s3322_s8  ;;  %835 = vrot.lane.b32.xlu0 %v2661_v21, %s3323_s21  ;;  %v792_v7 = vmul.f32 %v791_v57, %v2654_v1  ;;  %v815_v60 = vstv %s2818_s13  ;;  %s2872_s13 = sld [smem:[#allocation7 + $0xd4]]  ;;  %s2884_s16 = sld [smem:[#allocation7 + $0xa1]] }
 0x10d   :  { %s2915_s29 = sld [smem:[#allocation7 + $0xbe]]  ;;  %s2942_s4 = sld [smem:[#allocation7 + $0xc1]] }
 0x10e   :  { %s2944_s24 = sld [smem:[#allocation7 + $0xdc]]  ;;  %s2953_s27 = sld [smem:[#allocation7 + $0xc2]] }
 0x10f   :  { %s2980_s19 = sld [smem:[#allocation7 + $0xc5]]  ;;  %s2982_s26 = sld [smem:[#allocation7 + $0xe0]] }
 0x110   :  { %889 = vrot.lane.b32.xlu1 %v2667_v32, %s3322_s8  ;;  %875 = vrot.lane.b32.xlu0 %v2667_v32, %s3323_s21  ;;  %s2990_s23 = sld [smem:[#allocation7 + $0xac]]  ;;  %s2996_s5 = sld [smem:[#allocation7 + $0xc7]] }
 0x111   :  { %s3007_s11 = sld [smem:[#allocation7 + $0xc8]]  ;;  %s3340_s3 = smov 127  }
 0x112   :  { %s3067_s28 = sld [smem:[#allocation7 + $0xeb]] }
 0x113   :  { %s1662_s15 = sld [smem:[#allocation7 + $0xf3]] }
 0x114   :  { %930 = vrot.lane.b32.xlu1 %v2674_v26, %s3322_s8  ;;  %916 = vrot.lane.b32.xlu0 %v2674_v26, %s3323_s21 }
 0x118   :  { %971 = vrot.lane.b32.xlu1 %v2681_v39, %s3322_s8  ;;  %957 = vrot.lane.b32.xlu0 %v2681_v39, %s3323_s21 }
 0x11c   :  { %1011 = vrot.lane.b32.xlu1 %v2687_v13, %s3322_s8  ;;  %997 = vrot.lane.b32.xlu0 %v2687_v13, %s3323_s21 }
 0x120   :  { %1052 = vrot.lane.b32.xlu1 %v2694_v6, %s3322_s8  ;;  %1038 = vrot.lane.b32.xlu0 %v2694_v6, %s3323_s21 }
 0x124   :  { %1093 = vrot.lane.b32.xlu1 %v2701_v55, %s3322_s8  ;;  %1079 = vrot.lane.b32.xlu0 %v2701_v55, %s3323_s21  ;;  %s2761_s8 = sld [smem:[#allocation7 + $0xab]]  ;;  %s2768_s21 = sld [smem:[#allocation7 + $0xaf]] }
 0x12a   :  { %3330 = sst [smem:[#allocation19_spill]] %s2761_s8  ;;  %s2778_s8 = sld [smem:[#allocation7 + $0xe1]]  ;;  %v760_v58 = vstv %s2768_s21 }
 0x12b   :  { %s3334_s30 = sld [smem:[#allocation19_spill]]  ;;  %s2830_s21 = sld [smem:[#allocation7 + $0x9b]] }
 0x130   :  { %v1076_v10 = vstv %s2778_s8  ;;  %s1661_s8 = sld [smem:[#allocation7 + $0xe7]] }
 0x131   :  { %v1068_v19 = vstv %s3334_s30  ;;  %s1807_s30 = smov 1  }
 0x176   :  { %v768_v29 = vpop.permute.xlu1 %767  ;;  %v754_v61 = vpop.permute.xlu0 %753 }
 0x177   :  { %v757_v14 = vmul.f32 %v756_v50, %v754_v61  ;;  %v761_v51 = vmul.f32 %v760_v58, %v754_v61  ;;  %v765_v31 = vmul.f32 %v764_v40, %v754_v61  ;;  %v771_v38 = vmul.f32 %v770_v42, %v768_v29 }
 0x178   :  { %v775_v59 = vmul.f32 %v774_v24, %v768_v29  ;;  %v779_v16 = vmul.f32 %v778_v20, %v768_v29  ;;  %v788_v50 = vmul.f32 %v787_v56, %v2654_v1  ;;  %v819_v58 = vstv %s2820_s22  ;;  %s2870_s22 = sld [smem:[#allocation7 + $0xb9]] }
 0x179   :  { %v758_v22 = vadd.f32 %v757_v14, %v744_v15  ;;  %v762_v17 = vadd.f32 %v761_v51, %v748_v36  ;;  %v766_v23 = vadd.f32 %v765_v31, %v752_v27  ;;  %v852_v15 = vstv %s2830_s21  ;;  %s2897_s21 = sld [smem:[#allocation7 + $0xbc]] }
 0x17a   :  { %v795_v18 = vpop.permute.xlu0 %794  ;;  %v809_v25 = vpop.permute.xlu1 %808  ;;  %v838_v14 = vstv %s2832_s10  ;;  %s2899_s10 = sld [smem:[#allocation7 + $0xd7]] }
 0x17b   :  { %v772_v52 = vadd.f32 %v771_v38, %v758_v22  ;;  %v776_v3 = vadd.f32 %v775_v59, %v762_v17  ;;  %v780_v54 = vadd.f32 %v779_v16, %v766_v23  ;;  %v798_v42 = vmul.f32 %v797_v62, %v795_v18 }
 0x17c   :  { %v802_v61 = vmul.f32 %v801_v28, %v795_v18  ;;  %v806_v24 = vmul.f32 %v805_v2, %v795_v18  ;;  %v812_v20 = vmul.f32 %v811_v0, %v809_v25  ;;  %v816_v1 = vmul.f32 %v815_v60, %v809_v25 }
 0x17d   :  { %v785_v40 = vadd.f32 %v784_v4, %v772_v52  ;;  %v789_v45 = vadd.f32 %v788_v50, %v776_v3  ;;  %v793_v29 = vadd.f32 %v792_v7, %v780_v54  ;;  %v820_v57 = vmul.f32 %v819_v58, %v809_v25 }
 0x17e   :  { %v836_v51 = vpop.permute.xlu0 %835  ;;  %v825_v38 = vmul.f32 %v824_v63, %v2661_v21  ;;  %v842_v22 = vstv %s2836_s25  ;;  %v846_v0 = vstv %s2838_s6  ;;  %v850_v16 = vpop.permute.xlu1 %849  ;;  %v829_v17 = vmul.f32 %v828_v53, %v2661_v21  ;;  %s2917_s6 = sld [smem:[#allocation7 + $0xd9]]  ;;  %s3009_s25 = sld [smem:[#allocation7 + $0xe3]] }
 0x17f   :  { %v799_v56 = vadd.f32 %v798_v42, %v785_v40  ;;  %v803_v36 = vadd.f32 %v802_v61, %v789_v45  ;;  %v807_v27 = vadd.f32 %v806_v24, %v793_v29  ;;  %v833_v23 = vmul.f32 %v832_v12, %v2661_v21 }
 0x180   :  { %v856_v18 = vstv %s2843_s2  ;;  %v860_v52 = vstv %s2845_s0  ;;  %v839_v28 = vmul.f32 %v838_v14, %v836_v51  ;;  %v843_v3 = vmul.f32 %v842_v22, %v836_v51  ;;  %s2919_s2 = sld [smem:[#allocation7 + $0xa4]]  ;;  %s2924_s0 = sld [smem:[#allocation7 + $0xbf]] }
 0x181   :  { %v813_v31 = vadd.f32 %v812_v20, %v799_v56  ;;  %v817_v62 = vadd.f32 %v816_v1, %v803_v36  ;;  %v821_v59 = vadd.f32 %v820_v57, %v807_v27  ;;  %v847_v54 = vmul.f32 %v846_v0, %v836_v51 }
 0x182   :  { %v853_v25 = vmul.f32 %v852_v15, %v850_v16  ;;  %v892_v50 = vstv %s2855_s7  ;;  %v878_v7 = vstv %s2857_s14  ;;  %v857_v21 = vmul.f32 %v856_v18, %v850_v16  ;;  %v876_v40 = vpop.permute.xlu0 %875  ;;  %v890_v56 = vpop.permute.xlu1 %889  ;;  %s2926_s7 = sld [smem:[#allocation7 + $0xda]]  ;;  %s2936_s14 = sld [smem:[#allocation7 + $0xa6]] }
 0x183   :  { %v826_v63 = vadd.f32 %v825_v38, %v813_v31  ;;  %v830_v2 = vadd.f32 %v829_v17, %v817_v62  ;;  %v834_v4 = vadd.f32 %v833_v23, %v821_v59  ;;  %v861_v12 = vmul.f32 %v860_v52, %v850_v16 }
 0x184   :  { %v865_v45 = vmul.f32 %v864_v9, %v2667_v32  ;;  %v882_v29 = vstv %s2861_s18  ;;  %v886_v61 = vstv %s2863_s20  ;;  %v869_v15 = vmul.f32 %v868_v41, %v2667_v32  ;;  %s3081_s18 = sld [smem:[#allocation7 + $0xe8]]  ;;  %s3087_s20 = sld [smem:[#allocation7 + $0xe9]] }
 0x185   :  { %v840_v53 = vadd.f32 %v839_v28, %v826_v63  ;;  %v844_v60 = vadd.f32 %v843_v3, %v830_v2  ;;  %v848_v58 = vadd.f32 %v847_v54, %v834_v4  ;;  %v873_v14 = vmul.f32 %v872_v30, %v2667_v32 }
 0x186   :  { %v896_v1 = vstv %s2870_s22  ;;  %v900_v57 = vstv %s2872_s13  ;;  %v879_v36 = vmul.f32 %v878_v7, %v876_v40  ;;  %v883_v31 = vmul.f32 %v882_v29, %v876_v40  ;;  %v917_v17 = vpop.permute.xlu0 %916  ;;  %v931_v2 = vpop.permute.xlu1 %930  ;;  %s2946_s22 = sld [smem:[#allocation7 + $0xa7]]  ;;  %s2955_s13 = sld [smem:[#allocation7 + $0xdd]] }
 0x187   :  { %v854_v42 = vadd.f32 %v853_v25, %v840_v53  ;;  %v858_v24 = vadd.f32 %v857_v21, %v844_v60  ;;  %v862_v20 = vadd.f32 %v861_v12, %v848_v58  ;;  %v887_v38 = vmul.f32 %v886_v61, %v876_v40 }
 0x188   :  { %v893_v22 = vmul.f32 %v892_v50, %v890_v56  ;;  %v906_v41 = vmul.f32 %v905_v48, %v2674_v26  ;;  %v919_v62 = vstv %s2882_s17  ;;  %v897_v32 = vmul.f32 %v896_v1, %v890_v56  ;;  %s2963_s17 = sld [smem:[#allocation7 + $0xa9]] }
 0x189   :  { %v866_v9 = vadd.f32 %v865_v45, %v854_v42  ;;  %v870_v27 = vadd.f32 %v869_v15, %v858_v24  ;;  %v874_v51 = vadd.f32 %v873_v14, %v862_v20  ;;  %v901_v30 = vmul.f32 %v900_v57, %v890_v56 }
 0x18a   :  { %v933_v18 = vstv %s2884_s16  ;;  %v923_v52 = vstv %s2888_s12  ;;  %v927_v48 = vstv %s2890_s1  ;;  %v910_v4 = vmul.f32 %v909_v11, %v2674_v26  ;;  %v958_v61 = vpop.permute.xlu0 %957  ;;  %v972_v57 = vpop.permute.xlu1 %971  ;;  %s2969_s16 = sld [smem:[#allocation7 + $0xc4]]  ;;  %s2971_s12 = sld [smem:[#allocation7 + $0xdf]] }
 0x18b   :  { %v880_v0 = vadd.f32 %v879_v36, %v866_v9  ;;  %v884_v59 = vadd.f32 %v883_v31, %v870_v27  ;;  %v888_v16 = vadd.f32 %v887_v38, %v874_v51  ;;  %v914_v3 = vmul.f32 %v913_v46, %v2674_v26  ;;  %s2973_s1 = sld [smem:[#allocation7 + $0xaa]] }
 0x18c   :  { %v937_v54 = vstv %s2897_s21  ;;  %v941_v25 = vstv %s2899_s10  ;;  %v920_v50 = vmul.f32 %v919_v62, %v917_v17  ;;  %v924_v12 = vmul.f32 %v923_v52, %v917_v17  ;;  %s2998_s21 = sld [smem:[#allocation7 + $0xe2]]  ;;  %s3000_s10 = sld [smem:[#allocation7 + $0xad]] }
 0x18d   :  { %v894_v23 = vadd.f32 %v893_v22, %v880_v0  ;;  %v898_v63 = vadd.f32 %v897_v32, %v884_v59  ;;  %v902_v28 = vadd.f32 %v901_v30, %v888_v16  ;;  %v928_v60 = vmul.f32 %v927_v48, %v917_v17 }
 0x18e   :  { %v934_v58 = vmul.f32 %v933_v18, %v931_v2  ;;  %v947_v11 = vmul.f32 %v946_v37, %v2681_v39  ;;  %v960_v42 = vstv %s2909_s9  ;;  %v938_v26 = vmul.f32 %v937_v54, %v931_v2  ;;  %v998_v17 = vpop.permute.xlu0 %997  ;;  %s3069_s9 = sld [smem:[#allocation7 + $0xf7]] }
 0x18f   :  { %v907_v53 = vadd.f32 %v906_v41, %v894_v23  ;;  %v911_v7 = vadd.f32 %v910_v4, %v898_v63  ;;  %v915_v21 = vadd.f32 %v914_v3, %v902_v28  ;;  %v942_v46 = vmul.f32 %v941_v25, %v931_v2  ;;  %v1012_v2 = vpop.permute.xlu1 %1011 }
 0x190   :  { %v951_v37 = vmul.f32 %v950_v33, %v2681_v39  ;;  %v964_v20 = vstv %s2915_s29  ;;  %v968_v56 = vstv %s2917_s6  ;;  %v974_v1 = vstv %s2919_s2  ;;  %s1663_s29 = sld [smem:[#allocation7 + $0xff]]  ;;  %s3071_s6 = sld [smem:[#allocation7 + $0x103]] }
 0x191   :  { %v921_v40 = vadd.f32 %v920_v50, %v907_v53  ;;  %v925_v45 = vadd.f32 %v924_v12, %v911_v7  ;;  %v929_v29 = vadd.f32 %v928_v60, %v915_v21  ;;  %v955_v9 = vmul.f32 %v954_v5, %v2681_v39  ;;  %s3073_s2 = sld [smem:[#allocation7 + $0xef]] }
 0x192   :  { %v978_v36 = vstv %s2924_s0  ;;  %v982_v27 = vstv %s2926_s7  ;;  %v961_v31 = vmul.f32 %v960_v42, %v958_v61  ;;  %v965_v22 = vmul.f32 %v964_v20, %v958_v61  ;;  %s3075_s0 = sld [smem:[#allocation7 + $0x10b]]  ;;  %s3077_s7 = sld [smem:[#allocation7 + $0x10c]] }
 0x193   :  { %v935_v24 = vadd.f32 %v934_v58, %v921_v40  ;;  %v939_v15 = vadd.f32 %v938_v26, %v925_v45  ;;  %v943_v14 = vadd.f32 %v942_v46, %v929_v29  ;;  %v969_v0 = vmul.f32 %v968_v56, %v958_v61  ;;  %v1039_v26 = vpop.permute.xlu0 %1038  ;;  %v1053_v20 = vpop.permute.xlu1 %1052 }
 0x194   :  { %v975_v41 = vmul.f32 %v974_v1, %v972_v57  ;;  %v987_v32 = vmul.f32 %v986_v43, %v2687_v13  ;;  %v1000_v30 = vstv %s2936_s14  ;;  %v979_v39 = vmul.f32 %v978_v36, %v972_v57  ;;  %s3079_s14 = sld [smem:[#allocation7 + $0x10d]] }
 0x195   :  { %v948_v51 = vadd.f32 %v947_v11, %v935_v24  ;;  %v952_v33 = vadd.f32 %v951_v37, %v939_v15  ;;  %v956_v38 = vadd.f32 %v955_v9, %v943_v14  ;;  %v983_v5 = vmul.f32 %v982_v27, %v972_v57 }
 0x196   :  { %v991_v43 = vmul.f32 %v990_v47, %v2687_v13  ;;  %v1004_v18 = vstv %s2942_s4  ;;  %v1008_v52 = vstv %s2944_s24  ;;  %v1014_v28 = vstv %s2946_s22  ;;  %s3083_s4 = sld [smem:[#allocation7 + $0xf4]]  ;;  %s3085_s24 = sld [smem:[#allocation7 + $0x100]] }
 0x197   :  { %v962_v62 = vadd.f32 %v961_v31, %v948_v51  ;;  %v966_v59 = vadd.f32 %v965_v22, %v952_v33  ;;  %v970_v16 = vadd.f32 %v969_v0, %v956_v38  ;;  %v995_v4 = vmul.f32 %v994_v35, %v2687_v13  ;;  %s3089_s22 = sld [smem:[#allocation7 + $0xf5]] }
 0x198   :  { %v1018_v3 = vstv %s2953_s27  ;;  %v1022_v54 = vstv %s2955_s13  ;;  %v1001_v53 = vmul.f32 %v1000_v30, %v998_v17  ;;  %v1005_v7 = vmul.f32 %v1004_v18, %v998_v17  ;;  %s3091_s27 = sld [smem:[#allocation7 + $0x101]]  ;;  %s3093_s13 = sld [smem:[#allocation7 + $0xea]] }
 0x199   :  { %v976_v23 = vadd.f32 %v975_v41, %v962_v62  ;;  %v980_v48 = vadd.f32 %v979_v39, %v966_v59  ;;  %v984_v63 = vadd.f32 %v983_v5, %v970_v16  ;;  %v1009_v21 = vmul.f32 %v1008_v52, %v998_v17  ;;  %v1080_v41 = vpop.permute.xlu0 %1079  ;;  %v1094_v17 = vpop.permute.xlu1 %1093 }
 0x19a   :  { %v1015_v12 = vmul.f32 %v1014_v28, %v1012_v2  ;;  %v1028_v58 = vmul.f32 %v1027_v8, %v2694_v6  ;;  %v1041_v40 = vstv %s2963_s17  ;;  %v1019_v13 = vmul.f32 %v1018_v3, %v1012_v2  ;;  %s3095_s17 = sld [smem:[#allocation7 + $0xf6]] }
 0x19b   :  { %v988_v25 = vadd.f32 %v987_v32, %v976_v23  ;;  %v992_v47 = vadd.f32 %v991_v43, %v980_v48  ;;  %v996_v50 = vadd.f32 %v995_v4, %v984_v63  ;;  %v1023_v35 = vmul.f32 %v1022_v54, %v1012_v2 }
 0x19c   :  { %v1032_v8 = vmul.f32 %v1031_v44, %v2694_v6  ;;  %v1045_v45 = vstv %s2969_s16  ;;  %v1049_v29 = vstv %s2971_s12  ;;  %v1055_v37 = vstv %s2973_s1  ;;  %s3097_s16 = sld [smem:[#allocation7 + $0x102]]  ;;  %s3099_s12 = sld [smem:[#allocation7 + $0xfb]] }
 0x19d   :  { %v1002_v60 = vadd.f32 %v1001_v53, %v988_v25  ;;  %v1006_v11 = vadd.f32 %v1005_v7, %v992_v47  ;;  %v1010_v42 = vadd.f32 %v1009_v21, %v996_v50  ;;  %v1036_v56 = vmul.f32 %v1035_v34, %v2694_v6  ;;  %s3101_s1 = sld [smem:[#allocation7 + $0x107]] }
 0x19e   :  { %v1059_v15 = vstv %s2980_s19  ;;  %v1063_v14 = vstv %s2982_s26  ;;  %v1042_v44 = vmul.f32 %v1041_v40, %v1039_v26  ;;  %v1046_v36 = vmul.f32 %v1045_v45, %v1039_v26  ;;  %s3104_s19 = sld [smem:[#allocation7 + $0xed]]  ;;  %s3106_s26 = sld [smem:[#allocation7 + $0xf9]] }
 0x19f   :  { %v1016_v46 = vadd.f32 %v1015_v12, %v1002_v60  ;;  %v1020_v61 = vadd.f32 %v1019_v13, %v1006_v11  ;;  %v1024_v24 = vadd.f32 %v1023_v35, %v1010_v42  ;;  %v1050_v27 = vmul.f32 %v1049_v29, %v1039_v26 }
 0x1a0   :  { %v1056_v51 = vmul.f32 %v1055_v37, %v1053_v20  ;;  %v1069_v33 = vmul.f32 %v1068_v19, %v2701_v55  ;;  %v1082_v6 = vstv %s2990_s23  ;;  %v1060_v34 = vmul.f32 %v1059_v15, %v1053_v20  ;;  %s3115_s23 = sld [smem:[#allocation7 + $0xec]] }
 0x1a1   :  { %v1029_v1 = vadd.f32 %v1028_v58, %v1016_v46  ;;  %v1033_v57 = vadd.f32 %v1032_v8, %v1020_v61  ;;  %v1037_v9 = vadd.f32 %v1036_v56, %v1024_v24  ;;  %v1064_v38 = vmul.f32 %v1063_v14, %v1053_v20 }
 0x1a2   :  { %v1073_v32 = vmul.f32 %v1072_v49, %v2701_v55  ;;  %v1086_v30 = vstv %s2996_s5  ;;  %v1090_v39 = vstv %s2998_s21  ;;  %v1096_v16 = vstv %s3000_s10  ;;  %s3117_s5 = sld [smem:[#allocation7 + $0x105]]  ;;  %s3123_s21 = sld [smem:[#allocation7 + $0xf8]] }
 0x1a3   :  { %v1043_v31 = vadd.f32 %v1042_v44, %v1029_v1  ;;  %v1047_v22 = vadd.f32 %v1046_v36, %v1033_v57  ;;  %v1051_v0 = vadd.f32 %v1050_v27, %v1037_v9  ;;  %v1077_v19 = vmul.f32 %v1076_v10, %v2701_v55  ;;  %s3125_s10 = sld [smem:[#allocation7 + $0x104]] }
 0x1a4   :  { %v1100_v23 = vstv %s3007_s11  ;;  %v1104_v43 = vstv %s3009_s25  ;;  %v1083_v52 = vmul.f32 %v1082_v6, %v1080_v41  ;;  %v1087_v28 = vmul.f32 %v1086_v30, %v1080_v41  ;;  %s3129_s11 = sld [smem:[#allocation7 + $0xee]]  ;;  %s3131_s25 = sld [smem:[#allocation7 + $0xf1]] }
 0x1a5   :  { %v1057_v62 = vadd.f32 %v1056_v51, %v1043_v31  ;;  %v1061_v5 = vadd.f32 %v1060_v34, %v1047_v22  ;;  %v1065_v59 = vadd.f32 %v1064_v38, %v1051_v0  ;;  %v1091_v2 = vmul.f32 %v1090_v39, %v1080_v41 }
 0x1a6   :  { %v1097_v4 = vmul.f32 %v1096_v16, %v1094_v17  ;;  %v1101_v49 = vmul.f32 %v1100_v23, %v1094_v17  ;;  %v1105_v53 = vmul.f32 %v1104_v43, %v1094_v17  ;;  %v37_v10 = vlaneseq }
 0x1a7   :  { %v1070_v18 = vadd.f32 %v1069_v33, %v1057_v62  ;;  %v1074_v48 = vadd.f32 %v1073_v32, %v1061_v5  ;;  %v1078_v63 = vadd.f32 %v1077_v19, %v1065_v59  ;;  %v1129_v29 = vstv %s1661_s8  ;;  %s3148_s8 = sld [smem:[#allocation7 + $0xfd]] }
 0x1a8   :  { %v3032_v60 = vshrl.u32 %v37_v10, 7  ;;  %v3034_v58 = vand.u32 127, %v37_v10  ;;  %v1133_v61 = vstv %s1662_s15  ;;  %v1137_v24 = vstv %s1663_s29  ;;  %s3155_s15 = sld [smem:[#allocation7 + $0xfc]]  ;;  %s3162_s29 = sld [smem:[#allocation7 + $0xf2]] }
 0x1a9   :  { %v1084_v3 = vadd.f32 %v1083_v52, %v1070_v18  ;;  %v1088_v54 = vadd.f32 %v1087_v28, %v1074_v48  ;;  %v1092_v25 = vadd.f32 %v1091_v2, %v1078_v63  ;;  %v1182_v37 = vstv %s3067_s28  ;;  %s3146_s28 = sld [smem:[#allocation7 + $0xf0]] }
 0x1aa   :  { %vm41_vm1 = vcmp.ge.s32.totalorder %v3032_v60, 1  ;;  %vm42_vm2 = vcmp.lt.s32.totalorder %v3032_v60, 4  ;;  %vm44_vm4 = vcmp.ge.s32.totalorder %v3034_v58, 1  ;;  %vm46_vm6 = vcmp.lt.s32.totalorder %v3034_v58, 4 }
 0x1ab   :  { %v1098_v47 = vadd.f32 %v1097_v4, %v1084_v3  ;;  %v1102_v50 = vadd.f32 %v1101_v49, %v1088_v54  ;;  %v1106_v21 = vadd.f32 %v1105_v53, %v1092_v25  ;;  %vm43_vm3 = vmand %vm41_vm1, %vm42_vm2  ;;  %v1186_v15 = vstv %s3069_s9  ;;  %s3157_s9 = sld [smem:[#allocation7 + $0x108]] }
 0x1ac   :  { %vm45_vm5 = vmand %vm43_vm3, %vm44_vm4  ;;  %v1120_v1 = vstv %s3075_s0  ;;  %v1123_v44 = vstv %s3077_s7  ;;  %v1126_v57 = vstv %s3079_s14  ;;  %v1143_v9 = vstv %s3081_s18  ;;  %s3170_s0 = sld [smem:[#allocation7 + $0xfe]]  ;;  %s3174_s7 = sld [smem:[#allocation7 + $0x10a]] }
 0x1ad   :  { %v1107_v7 = vrot.slane %v1098_v47, 7  ;;  %v1111_v12 = vrot.slane %v1102_v50, 7  ;;  %v1115_v55 = vrot.slane %v1106_v21, 7  ;;  %vm47_vm7 = vmand %vm45_vm5, %vm46_vm6  ;;  %v1147_v36 = vstv %s3083_s4 }
 0x1ae   :  { %v1151_v27 = vstv %s3085_s24  ;;  %v1190_v51 = vstv %s3071_s6  ;;  %v1235_v31 = vstv %s3073_s2  ;;  %v1156_v33 = vstv %s3087_s20  ;;  %s3165_s6 = sld [smem:[#allocation7 + $0x109]]  ;;  %vm48_vm8 = vmand %vm42_vm2, %vm46_vm6 }
 0x1af   :  { %1108 = vrot.lane.b32.xlu0 %v1107_v7, %s1807_s30  ;;  %1112 = vrot.lane.b32.xlu1 %v1111_v12, %s1807_s30  ;;  %v1160_v6 = vstv %s3089_s22  ;;  %v1164_v0 = vstv %s3091_s27  ;;  %s1697_s27 = sld [smem:[#allocation7 + $0x10e]] }
 0x1b0   :  { %v1170_v41 = vstv %s3093_s13  ;;  %v1174_v5 = vstv %s3095_s17  ;;  %v1178_v59 = vstv %s3097_s16  ;;  %v1239_v52 = vstv %s3099_s12  ;;  %s1698_s13 = sld [smem:[#allocation7 + $0x111]] }
 0x1b1   :  { %v1243_v48 = vstv %s3101_s1  ;;  %v1209_v28 = vstv %s3104_s19  ;;  %v1213_v2 = vstv %s3106_s26  ;;  %v1196_v47 = vstv %s3115_s23 }
 0x1b2   :  { %v1217_v7 = vstv %s3117_s5  ;;  %v1204_v10 = vstv %s3125_s10 }
 0x1b3   :  { %1116 = vrot.lane.b32.xlu0 %v1115_v55, %s1807_s30  ;;  %s3138_s30 = sld [smem:[#allocation7 + $0xfa]]  ;;  %v1200_v55 = vstv %s3123_s21 }
 0x221   :  { %v1109_v40 = vpop.permute.xlu0 %1108  ;;  %v1113_v35 = vpop.permute.xlu1 %1112 }
 0x222   :  { %v1110_v13 = vsel %vm47_vm7, %v1109_v40, 0.0  ;;  %v3047_v42 = vsel %vm47_vm7, %v1113_v35, 0.0 }
 0x223   :  { %1140 = vrot.lane.b32.xlu1 %v1110_v13, %s3340_s3  ;;  %v3045_v11 = vrot.slane %v1110_v13, 1  ;;  %v3054_v46 = vrot.slane %v3047_v42, 1  ;;  %v1130_v20 = vmul.f32 %v1129_v29, %v1110_v13  ;;  %v1134_v56 = vmul.f32 %v1133_v61, %v1110_v13 }
 0x224   :  { %v1138_v14 = vmul.f32 %v1137_v24, %v1110_v13  ;;  %v1183_v21 = vmul.f32 %v1182_v37, %v3047_v42  ;;  %v1187_v40 = vmul.f32 %v1186_v15, %v3047_v42  ;;  %v1191_v13 = vmul.f32 %v1190_v51, %v3047_v42 }
 0x225   :  { %v1117_v26 = vpop.permute.xlu0 %1116  ;;  %1167 = vrot.lane.b32.xlu0 %v3045_v11, %s3340_s3  ;;  %v1131_v38 = vadd.f32 %v1130_v20, %v1120_v1  ;;  %v1135_v22 = vadd.f32 %v1134_v56, %v1123_v44  ;;  %v1157_v16 = vmul.f32 %v1156_v33, %v3045_v11  ;;  %v1161_v17 = vmul.f32 %v1160_v6, %v3045_v11 }
 0x226   :  { %v3056_v8 = vsel %vm47_vm7, %v1117_v26, 0.0  ;;  %v1139_v62 = vadd.f32 %v1138_v14, %v1126_v57  ;;  %v1165_v18 = vmul.f32 %v1164_v0, %v3045_v11  ;;  %v1223_v61 = vstv %s3129_s11 }
 0x227   :  { %1193 = vrot.lane.b32.xlu1 %v3047_v42, %s3340_s3  ;;  %v3063_v45 = vrot.slane %v3056_v8, 1  ;;  %v1262_v24 = vstv %s3131_s25  ;;  %v1210_v1 = vmul.f32 %v1209_v28, %v3054_v46  ;;  %v1227_v44 = vstv %s3138_s30  ;;  %s1699_s25 = sld [smem:[#allocation7 + $0x10f]]  ;;  %s1700_s30 = sld [smem:[#allocation7 + $0x112]] }
 0x228   :  { %v1218_v51 = vmul.f32 %v1217_v7, %v3054_v46 }
 0x229   :  { %1220 = vrot.lane.b32.xlu0 %v3054_v46, %s3340_s3 }
 0x22b   :  { %1246 = vrot.lane.b32.xlu1 %v3056_v8, %s3340_s3 }
 0x22d   :  { %1273 = vrot.lane.b32.xlu0 %v3063_v45, %s3340_s3  ;;  %s3140_s3 = sld [smem:[#allocation7 + $0x106]] }
 0x233   :  { %v1231_v57 = vstv %s3140_s3 }
 0x295   :  { %v1141_v34 = vpop.permute.xlu1 %1140 }
 0x296   :  { %v1144_v32 = vmul.f32 %v1143_v9, %v1141_v34  ;;  %v1148_v30 = vmul.f32 %v1147_v36, %v1141_v34  ;;  %v1152_v39 = vmul.f32 %v1151_v27, %v1141_v34  ;;  %v1214_v27 = vmul.f32 %v1213_v2, %v3054_v46 }
 0x297   :  { %v1168_v63 = vpop.permute.xlu0 %1167  ;;  %v1249_v34 = vstv %s3146_s28  ;;  %v1257_v46 = vstv %s3157_s9 }
 0x298   :  { %v1145_v19 = vadd.f32 %v1144_v32, %v1131_v38  ;;  %v1149_v23 = vadd.f32 %v1148_v30, %v1135_v22  ;;  %v1153_v43 = vadd.f32 %v1152_v39, %v1139_v62  ;;  %v1171_v54 = vmul.f32 %v1170_v41, %v1168_v63 }
 0x299   :  { %v1175_v25 = vmul.f32 %v1174_v5, %v1168_v63  ;;  %v1179_v53 = vmul.f32 %v1178_v59, %v1168_v63  ;;  %v1194_v50 = vpop.permute.xlu1 %1193  ;;  %v1266_v38 = vstv %s3148_s8  ;;  %v1236_v30 = vmul.f32 %v1235_v31, %v3056_v8 }
 0x29a   :  { %v1158_v4 = vadd.f32 %v1157_v16, %v1145_v19  ;;  %v1162_v3 = vadd.f32 %v1161_v17, %v1149_v23  ;;  %v1166_v49 = vadd.f32 %v1165_v18, %v1153_v43  ;;  %v1197_v29 = vmul.f32 %v1196_v47, %v1194_v50 }
 0x29b   :  { %v1201_v56 = vmul.f32 %v1200_v55, %v1194_v50  ;;  %v1205_v15 = vmul.f32 %v1204_v10, %v1194_v50  ;;  %v1221_v14 = vpop.permute.xlu0 %1220  ;;  %v1253_v5 = vstv %s3155_s15  ;;  %v1240_v59 = vmul.f32 %v1239_v52, %v3056_v8 }
 0x29c   :  { %v1172_v12 = vadd.f32 %v1171_v54, %v1158_v4  ;;  %v1176_v35 = vadd.f32 %v1175_v25, %v1162_v3  ;;  %v1180_v11 = vadd.f32 %v1179_v53, %v1166_v49  ;;  %v1224_v6 = vmul.f32 %v1223_v61, %v1221_v14 }
 0x29d   :  { %v1228_v41 = vmul.f32 %v1227_v44, %v1221_v14  ;;  %v1232_v62 = vmul.f32 %v1231_v57, %v1221_v14  ;;  %v1247_v32 = vpop.permute.xlu1 %1246  ;;  %v1244_v16 = vmul.f32 %v1243_v48, %v3056_v8  ;;  %v1276_v18 = vstv %s3162_s29 }
 0x29e   :  { %v1184_v26 = vadd.f32 %v1183_v21, %v1172_v12  ;;  %v1188_v37 = vadd.f32 %v1187_v40, %v1176_v35  ;;  %v1192_v20 = vadd.f32 %v1191_v13, %v1180_v11  ;;  %v1250_v43 = vmul.f32 %v1249_v34, %v1247_v32 }
 0x29f   :  { %v1270_v63 = vstv %s3165_s6  ;;  %v1254_v4 = vmul.f32 %v1253_v5, %v1247_v32  ;;  %v1258_v3 = vmul.f32 %v1257_v46, %v1247_v32  ;;  %v1274_v31 = vpop.permute.xlu0 %1273  ;;  %v1280_v54 = vstv %s3170_s0 }
 0x2a0   :  { %v1198_v42 = vadd.f32 %v1197_v29, %v1184_v26  ;;  %v1202_v9 = vadd.f32 %v1201_v56, %v1188_v37  ;;  %v1206_v36 = vadd.f32 %v1205_v15, %v1192_v20  ;;  %v1263_v25 = vmul.f32 %v1262_v24, %v3063_v45 }
 0x2a1   :  { %v1267_v52 = vmul.f32 %v1266_v38, %v3063_v45  ;;  %v1284_v48 = vstv %s3174_s7  ;;  %v1271_v47 = vmul.f32 %v1270_v63, %v3063_v45  ;;  %v1277_v50 = vmul.f32 %v1276_v18, %v1274_v31 }
 0x2a2   :  { %v1211_v33 = vadd.f32 %v1210_v1, %v1198_v42  ;;  %v1215_v22 = vadd.f32 %v1214_v27, %v1202_v9  ;;  %v1219_v0 = vadd.f32 %v1218_v51, %v1206_v36  ;;  %v1281_v21 = vmul.f32 %v1280_v54, %v1274_v31 }
 0x2a3   :  { %v1285_v10 = vmul.f32 %v1284_v48, %v1274_v31 }
 0x2a4   :  { %v1225_v39 = vadd.f32 %v1224_v6, %v1211_v33  ;;  %v1229_v17 = vadd.f32 %v1228_v41, %v1215_v22  ;;  %v1233_v19 = vadd.f32 %v1232_v62, %v1219_v0 }
 0x2a6   :  { %v1237_v23 = vadd.f32 %v1236_v30, %v1225_v39  ;;  %v1241_v28 = vadd.f32 %v1240_v59, %v1229_v17  ;;  %v1245_v2 = vadd.f32 %v1244_v16, %v1233_v19 }
 0x2a8   :  { %v1251_v49 = vadd.f32 %v1250_v43, %v1237_v23  ;;  %v1255_v53 = vadd.f32 %v1254_v4, %v1241_v28  ;;  %v1259_v8 = vadd.f32 %v1258_v3, %v1245_v2 }
 0x2aa   :  { %v1264_v7 = vadd.f32 %v1263_v25, %v1251_v49  ;;  %v1268_v12 = vadd.f32 %v1267_v52, %v1255_v53  ;;  %v1272_v55 = vadd.f32 %v1271_v47, %v1259_v8 }
 0x2ac   :  { %v3196_v40 = vadd.f32 %v1277_v50, %v1264_v7  ;;  %v3198_v13 = vadd.f32 %v1281_v21, %v1268_v12  ;;  %v3201_v11 = vadd.f32 %v1285_v10, %v1272_v55 }
 0x2ae   :  { %v1287_v35 = vsel %vm48_vm8, %v3196_v40, 0.0  ;;  %v1328_v26 = vsel %vm48_vm8, %v3198_v13, 0.0  ;;  %v1369_v60 = vsel %vm48_vm8, %v3201_v11, 0.0 }
 0x2af   :  { %1288 = vadd.xlane.f32.xlu1 %v1287_v35  ;;  %v1298_v45 = vmul.f32 %v1287_v35, %v1287_v35  ;;  %v1339_v58 = vmul.f32 %v1328_v26, %v1328_v26  ;;  %v1380_v29 = vmul.f32 %v1369_v60, %v1369_v60 }
 0x2b1   :  { %1299 = vadd.xlane.f32.xlu0 %v1298_v45 }
 0x2b3   :  { %1340 = vadd.xlane.f32.xlu1 %v1339_v58 }
 0x2b5   :  { %1329 = vadd.xlane.f32.xlu0 %v1328_v26 }
 0x2b7   :  { %1381 = vadd.xlane.f32.xlu1 %v1380_v29 }
 0x2b9   :  { %1370 = vadd.xlane.f32.xlu0 %v1369_v60 }
 0x33c   :  { %v1289_v61 = vpop.xlane.xlu1 %1288 }
 0x33d   :  { %v1290_v24 = vrot.slane %v1289_v61, 4 }
 0x33e   :  { %v1300_v37 = vpop.xlane.xlu0 %1299 }
 0x33f   :  { %v1291_v20 = vadd.f32 %v1290_v24, %v1289_v61  ;;  %v1301_v56 = vrot.slane %v1300_v37, 4 }
 0x340   :  { %v1341_v33 = vpop.xlane.xlu1 %1340 }
 0x341   :  { %v1292_v15 = vrot.slane %v1291_v20, 2  ;;  %v1302_v14 = vadd.f32 %v1301_v56, %v1300_v37  ;;  %v1342_v34 = vrot.slane %v1341_v33, 4 }
 0x342   :  { %v1330_v51 = vpop.xlane.xlu0 %1329 }
 0x343   :  { %v1303_v42 = vrot.slane %v1302_v14, 2  ;;  %v1293_v1 = vadd.f32 %v1292_v15, %v1291_v20  ;;  %v1331_v6 = vrot.slane %v1330_v51, 4  ;;  %v1343_v22 = vadd.f32 %v1342_v34, %v1341_v33 }
 0x344   :  { %v1382_v19 = vpop.xlane.xlu1 %1381 }
 0x345   :  { %v1294_v44 = vrot.slane %v1293_v1, 1  ;;  %v1304_v57 = vadd.f32 %v1303_v42, %v1302_v14  ;;  %v1332_v38 = vadd.f32 %v1331_v6, %v1330_v51  ;;  %v1344_v41 = vrot.slane %v1343_v22, 2 }
 0x346   :  { %v1371_v17 = vpop.xlane.xlu0 %1370  ;;  %v1383_v43 = vrot.slane %v1382_v19, 4 }
 0x347   :  { %v1295_v9 = vadd.f32 %v1294_v44, %v1293_v1  ;;  %v1305_v36 = vrot.slane %v1304_v57, 1  ;;  %v1333_v0 = vrot.slane %v1332_v38, 2  ;;  %v1345_v30 = vadd.f32 %v1344_v41, %v1343_v22 }
 0x348   :  { %v1372_v23 = vrot.slane %v1371_v17, 4  ;;  %v1384_v2 = vadd.f32 %v1383_v43, %v1382_v19 }
 0x349   :  { %1703 = vpush %v1295_v9  ;;  %v1306_v27 = vadd.f32 %v1305_v36, %v1304_v57  ;;  %v1334_v32 = vadd.f32 %v1333_v0, %v1332_v38  ;;  %v1346_v5 = vrot.slane %v1345_v30, 1 }
 0x34a   :  { %v1373_v63 = vadd.f32 %v1372_v23, %v1371_v17  ;;  %v1385_v49 = vrot.slane %v1384_v2, 2 }
 0x34b   :  { %1705 = vpush %v1306_v27  ;;  %v1335_v39 = vrot.slane %v1334_v32, 1  ;;  %v1347_v16 = vadd.f32 %v1346_v5, %v1345_v30 }
 0x34c   :  { %v1374_v31 = vrot.slane %v1373_v63, 2  ;;  %v1386_v52 = vadd.f32 %v1385_v49, %v1384_v2 }
 0x34d   :  { %v1336_v59 = vadd.f32 %v1335_v39, %v1334_v32 }
 0x34e   :  { %v1375_v25 = vadd.f32 %v1374_v31, %v1373_v63  ;;  %v1387_v8 = vrot.slane %v1386_v52, 1 }
 0x350   :  { %v1376_v53 = vrot.slane %v1375_v25, 1  ;;  %v1388_v50 = vadd.f32 %v1387_v8, %v1386_v52 }
 0x352   :  { %v1377_v47 = vadd.f32 %v1376_v53, %v1375_v25 }
 0x37a   :  { %s1704_s2 = spop %1703 }
 0x37b   :  { %s3205_s14 = smul.f32 0.0625, %s1704_s2 }
 0x37c   :  { %s1706_s4 = spop %1705 }
 0x37d   :  { %s1311_s18 = smul.f32 %s3205_s14, %s3205_s14 }
 0x37e   :  { %s1310_s24 = smul.f32 0.0625, %s1706_s4  ;;  %s1702_s4 = sld [smem:[#allocation7 + $0x113]] }
 0x380   :  { %s1312_s20 = ssub.f32 %s1310_s24, %s1311_s18  ;;  %s1701_s18 = sld [smem:[#allocation7 + $0x110]] }
 0x382   :  { %s1314_s22 = sadd.f32 1e-05, %s1312_s20 }
 0x384   :  { %v1315_v62 = vstv %s1314_s22 }
 0x385   :  { %1733 = vrsqrt.f32 %v1315_v62 }
 0x38f   :  { %v1734_v46 = vpop.eup %1733 }
 0x390   :  { %1707 = vpush %v1734_v46 }
 0x391   :  { %1709 = vpush %v1336_v59 }
 0x392   :  { %1711 = vpush %v1347_v16 }
 0x3c1   :  { %s1708_s17 = spop %1707 }
 0x3c2   :  { %s1318_s16 = smul.f32 %s1708_s17, %s1697_s27  ;;  %s1710_s12 = spop %1709 }
 0x3c3   :  { %s3209_s1 = smul.f32 0.0625, %s1710_s12  ;;  %s1712_s19 = spop %1711 }
 0x3c4   :  { %s1320_s26 = smul.f32 %s1318_s16, %s3205_s14  ;;  %v1322_v18 = vstv %s1318_s16 }
 0x3c5   :  { %s1352_s23 = smul.f32 %s3209_s1, %s3209_s1  ;;  %v1323_v28 = vmul.f32 %v1322_v18, %v3196_v40 }
 0x3c6   :  { %s1321_s5 = ssub.f32 %s1698_s13, %s1320_s26  ;;  %s1351_s21 = smul.f32 0.0625, %s1712_s19 }
 0x3c7   :  { %s1808_s13 = smov [#allocation8]  }
 0x3c8   :  { %v1324_v4 = vstv %s1321_s5  ;;  %s1353_s10 = ssub.f32 %s1351_s21, %s1352_s23  ;;  %s1415_s17 = sshll.u32 %s1808_s13, 4  ;;  %s1416_s17 = int_to_ptr.vmem [resolvable:$true] %s1415_s17 }
 0x3c9   :  { %v1325_v3 = vadd.f32 %v1324_v4, %v1323_v28  ;;  %s1771_s16 = scalar_lea.vmem %s1416_s17, 192  ;;  %p1776_p0 = scmp.lt.s32.totalorder %s1416_s17, %s1416_s17 }
 0x3ca   :  { %s1355_s11 = sadd.f32 1e-05, %s1353_s10  ;;  %p1772_p13 = scmp.ne.s32.totalorder %s1416_s17, %s1771_s16 }
 0x3cb   :  { %1327 = vst.msk [vmem:[#allocation8] sm:$0xf] %vm1326_vm9, %v1325_v3  ;;  %p1777_p1 = scmp.lt.s32.totalorder %s1771_s16, %s1771_s16 }
 0x3cc   :  { %v1356_v54 = vstv %s1355_s11 }
 0x3cd   :  { %1735 = vrsqrt.f32 %v1356_v54  ;;  %p1778_p2 = por %p1777_p1, %p1776_p0 }
 0x3cf   :  { %p1779_p3 = pnand %p1778_p2, %p1772_p13 }
 0x3d7   :  { %v1736_v48 = vpop.eup %1735 }
 0x3d8   :  { %1713 = vpush %v1736_v48 }
 0x3d9   :  { %1715 = vpush %v1377_v47 }
 0x3da   :  { %1717 = vpush %v1388_v50 }
 0x409   :  { %s1714_s3 = spop %1713 }
 0x40a   :  { %s1359_s28 = smul.f32 %s1714_s3, %s1699_s25  ;;  %s1716_s8 = spop %1715 }
 0x40b   :  { %s1391_s15 = smul.f32 0.0625, %s1716_s8  ;;  %s1718_s9 = spop %1717 }
 0x40c   :  { %s1361_s29 = smul.f32 %s1359_s28, %s3209_s1  ;;  %v1363_v7 = vstv %s1359_s28 }
 0x40d   :  { %s1393_s6 = smul.f32 %s1391_s15, %s1391_s15  ;;  %v1364_v21 = vmul.f32 %v1363_v7, %v3198_v13 }
 0x40e   :  { %s1362_s0 = ssub.f32 %s1700_s30, %s1361_s29  ;;  %s1392_s7 = smul.f32 0.0625, %s1718_s9 }
 0x410   :  { %v1365_v12 = vstv %s1362_s0  ;;  %s1394_s2 = ssub.f32 %s1392_s7, %s1393_s6 }
 0x411   :  { %v1366_v55 = vadd.f32 %v1365_v12, %v1364_v21 }
 0x412   :  { %s1396_s14 = sadd.f32 1e-05, %s1394_s2 }
 0x413   :  { %1368 = vst.msk [vmem:[#allocation8 + $0x4] sm:$0xf] %vm1326_vm9, %v1366_v55 }
 0x414   :  { %v1397_v10 = vstv %s1396_s14 }
 0x415   :  { %1737 = vrsqrt.f32 %v1397_v10 }
 0x41f   :  { %v1738_v40 = vpop.eup %1737 }
 0x420   :  { %1719 = vpush %v1738_v40 }
 0x451   :  { %s1720_s24 = spop %1719 }
 0x452   :  { %s1400_s20 = smul.f32 %s1720_s24, %s1701_s18 }
 0x454   :  { %s1402_s22 = smul.f32 %s1400_s20, %s1391_s15  ;;  %v1404_v35 = vstv %s1400_s20 }
 0x455   :  { %v1405_v13 = vmul.f32 %v1404_v35, %v3201_v11 }
 0x456   :  { %s1403_s27 = ssub.f32 %s1702_s4, %s1402_s22 }
 0x458   :  { %v1406_v45 = vstv %s1403_s27 }
 0x459   :  { %v1407_v26 = vadd.f32 %v1406_v45, %v1405_v13 }
 0x45b   :  { %1409 = vst.msk [vmem:[#allocation8 + $0x8] sm:$0xf] %vm1326_vm9, %v1407_v26 }
 0x45c   :  { %1782 = shalt.err (!%p1779_p3)
}
 0x45d   :  { %s3341_s19 = sld [smem:[#allocation30_spill]] }
 0x463   :  { %s1783_s26 = scalar_lea.hbm %s3341_s19, 192 }
 0x464   :  { %p1784_p4 = scmp.ne.s32.totalorder %s3341_s19, %s1783_s26  ;;  %p1787_p5 = scmp.lt.u32.totalorder %s1783_s26, %s3341_s19 }
 0x466   :  { %p1789_p6 = pnand %p1787_p5, %p1784_p4 }
 0x468   :  { %1792 = shalt.err (!%p1789_p6)
}
 0x469   :  { %s1809_s11 = smov 64   ;;  %s1810_s25 = smov 4  }
 0x46a   :  { %1421 = dma.vmem_to_hbm [thread:$0]  %s1416_s17, 192, %s3341_s19, [#allocation5], %s1809_s11, %s1809_s11, %s1810_s25  }
 0x46b   :  { %1797 = dma.done.wait [#allocation5], 192  }
 0x46c   :  { %1798 = vsyncadd [#allocation5], 4294967104 }
 0x46d   :  { %1425 = vsyncpa [#allocation4], 1 }
 0x46e   :  { %1426 = vsyncpa [#allocation5], 1 }
 0x46f   :  { %1427 = vsyncpa [#allocation6], 1 }

</bundles_post_ra>
